<compile_context>
chip_gen: v7x
topology: tpu7x:2x2x1
jax: 0.10.0
libtpu: 0.0.40
codegen_flags: <defaults>
</compile_context>

<pallas_src>
import functools

import jax
import jax.numpy as jnp
from jax.experimental import pallas as pl
from jax.experimental.pallas import tpu as pltpu


# ----------------------------- fused Pallas kernel -------------------------- #

def _fused_conv_kernel(p_ref, w_ref, *rest, n_phase, do_norm, act, add_res):
    """One grid step = one batch sample.

    p_ref : (1, K, L)      bf16 im2col patches of this sample
    w_ref : (P, OC, K)     bf16 GEMM weight (P=1 conv, P=4 deconv polyphase)
    res   : (1, OC, L)     f32 residual (only when add_res, P==1)
    o_ref : (1, P, OC, L)  f32 output

    Per phase: (OC,K)@(K,L) on MXU (f32 acc), then InstanceNorm (stats over all
    phases x L, i.e. the full spatial map of the layer), activation, optional
    residual add - all on VMEM-resident data.
    """
    if add_res:
        res_ref, o_ref = rest
    else:
        (o_ref,) = rest

    p = p_ref[0]                                              # (K, L) bf16
    L = p.shape[-1]
    parts = [jnp.dot(w_ref[i], p, preferred_element_type=jnp.float32)
             for i in range(n_phase)]                         # P x (OC, L) f32

    if do_norm:                                               # InstanceNorm2d (affine=False)
        inv_cnt = 1.0 / (n_phase * L)
        s1 = jnp.sum(parts[0], axis=-1, keepdims=True)
        for q in parts[1:]:
            s1 = s1 + jnp.sum(q, axis=-1, keepdims=True)
        mean = s1 * inv_cnt
        s2 = jnp.sum(jnp.square(parts[0] - mean), axis=-1, keepdims=True)
        for q in parts[1:]:
            s2 = s2 + jnp.sum(jnp.square(q - mean), axis=-1, keepdims=True)
        rstd = jax.lax.rsqrt(s2 * inv_cnt + 1e-5)
        parts = [(q - mean) * rstd for q in parts]

    if act == "leaky":
        parts = [jnp.where(q >= 0.0, q, 0.2 * q) for q in parts]
    elif act == "relu":
        parts = [jnp.maximum(q, 0.0) for q in parts]
    elif act == "tanh":
        parts = [jnp.tanh(q) for q in parts]

    if add_res:                                               # residual skip (P == 1)
        parts = [q + res_ref[0] for q in parts]

    for i in range(n_phase):
        o_ref[0, i] = parts[i]


def fused_conv_call(patches, w_mat, res, *, do_norm, act):
    """patches (N,K,L) bf16, w_mat (P,OC,K) bf16 -> (N,P,OC,L) f32."""
    N, K, L = patches.shape
    P, OC, K2 = w_mat.shape
    assert K == K2, (K, K2)
    add_res = res is not None

    kern = functools.partial(_fused_conv_kernel, n_phase=P, do_norm=do_norm,
                             act=act, add_res=add_res)
    in_specs = [pl.BlockSpec((1, K, L), lambda n: (n, 0, 0)),
                pl.BlockSpec((P, OC, K), lambda n: (0, 0, 0))]
    args = [patches, w_mat]
    if add_res:
        in_specs.append(pl.BlockSpec((1, OC, L), lambda n: (n, 0, 0)))
        args.append(res.astype(jnp.float32))

    # TODO(synk): at real CycleGAN sizes (256x256, conv_dim=64) L must be tiled
    # within a sample (two-pass / Welford InstanceNorm) and vmem_limit_bytes set
    # with headroom for v7x's 64 MiB VMEM; at these toy sizes one block per
    # sample fits trivially.
    return pl.pallas_call(
        kern,
        out_shape=jax.ShapeDtypeStruct((N, P, OC, L), jnp.float32),
        grid=(N,),
        in_specs=in_specs,
        out_specs=pl.BlockSpec((1, P, OC, L), lambda n: (n, 0, 0, 0)),
        compiler_params=pltpu.CompilerParams(
            dimension_semantics=("parallel",)),          # samples -> 2 TCs on v7x
    )(*args)


# ------------------------------ XLA glue (data movement only) --------------- #

def im2col_nchw(x, kh, kw, stride, pad):
    """x (N,C,H,W) f32 -> (N, C*kh*kw, OH*OW) bf16 patches; K order = (c,kh,kw)."""
    N, C, H, W = x.shape
    xp = jnp.pad(x, ((0, 0), (0, 0), (pad, pad), (pad, pad)))
    OH = (H + 2 * pad - kh) // stride + 1
    OW = (W + 2 * pad - kw) // stride + 1
    cols = []
    for d in range(kh):
        for e in range(kw):
            cols.append(xp[:, :, d:d + stride * OH:stride, e:e + stride * OW:stride])
    p = jnp.stack(cols, axis=2)                               # (N, C, kh*kw, OH, OW)
    p = p.reshape(N, C * kh * kw, OH * OW)
    return p.astype(jnp.bfloat16), OH, OW


# ----------------------- one-time weight layout preparation ----------------- #

def _conv_w_to_mat(w):
    """PyTorch Conv2d weight (OC, IC, KH, KW) -> (1, OC, IC*KH*KW) bf16."""
    OC = w.shape[0]
    return w.reshape(OC, -1)[None].astype(jnp.bfloat16)


def _deconv_w_to_phase_mat(w_t):
    """PyTorch ConvTranspose2d weight (IC, OC, 4, 4) -> 4 polyphase 3x3 GEMMs.

    For stride=2, pad=1, k=4: output pixel (2a+r, 2b+s) =
        sum_{ic, d in {r,r+1}, e in {s,s+1}} x_pad1[ic, a+d, b+e]
                                             * w_t[ic, oc, 3+r-2d, 3+s-2e]
    i.e. each phase is a (zero-extended) 3x3 stride-1 conv over the pad-1 input,
    so all 4 phases share ONE 3x3 im2col of the low-res input.
    """
    IC, OC, KH, KW = w_t.shape
    assert KH == 4 and KW == 4
    wph = jnp.zeros((4, OC, IC, 3, 3), jnp.float32)
    for r in range(2):
        for s in range(2):
            ph = 2 * r + s
            for d in (r, r + 1):
                for e in (s, s + 1):
                    kh = 3 + r - 2 * d
                    kw = 3 + s - 2 * e
                    wph = wph.at[ph, :, :, d, e].set(w_t[:, :, kh, kw].T)
    return wph.reshape(4, OC, IC * 9).astype(jnp.bfloat16)


def init_params(key, conv_dim=8, n_res_blocks=2):
    def w(k, shape):
        return jax.random.normal(k, shape, jnp.float32) * 0.1

    ks = list(jax.random.split(key, 6 + 2 * n_res_blocks))
    params = {
        "conv1": w(ks[0], (conv_dim, 3, 4, 4)),                  # Conv2d layout
        "conv2": w(ks[1], (conv_dim * 2, conv_dim, 4, 4)),
        "conv3": w(ks[2], (conv_dim * 4, conv_dim * 2, 4, 4)),
        "res": [],
        "deconv4": w(ks[3], (conv_dim * 4, conv_dim * 2, 4, 4)),  # ConvTranspose2d layout
        "deconv5": w(ks[4], (conv_dim * 2, conv_dim, 4, 4)),
        "deconv6": w(ks[5], (conv_dim, 3, 4, 4)),
    }
    for r in range(n_res_blocks):
        params["res"].append((
            w(ks[6 + 2 * r], (conv_dim * 4, conv_dim * 4, 3, 3)),
            w(ks[7 + 2 * r], (conv_dim * 4, conv_dim * 4, 3, 3)),
        ))
    return params


def prepare_params(params):
    """Lay out / cast all weights for the fused GEMM kernels (done once, outside jit)."""
    return {
        "conv1": _conv_w_to_mat(params["conv1"]),
        "conv2": _conv_w_to_mat(params["conv2"]),
        "conv3": _conv_w_to_mat(params["conv3"]),
        "res": [(_conv_w_to_mat(w1), _conv_w_to_mat(w2)) for (w1, w2) in params["res"]],
        "deconv4": _deconv_w_to_phase_mat(params["deconv4"]),
        "deconv5": _deconv_w_to_phase_mat(params["deconv5"]),
        "deconv6": _deconv_w_to_phase_mat(params["deconv6"]),
    }


# --------------------------------- forward ---------------------------------- #

def cycle_generator_forward(wp, x_nchw):
    x = x_nchw.astype(jnp.float32)

    def conv_block(h, w_mat, ksz, stride, pad, do_norm, act, res=None):
        N, C, H, W = h.shape
        patches, OH, OW = im2col_nchw(h, ksz, ksz, stride, pad)
        out = fused_conv_call(patches, w_mat, res, do_norm=do_norm, act=act)
        OC = w_mat.shape[1]
        return out.reshape(N, OC, OH, OW)                     # P == 1

    def deconv_block(h, w_ph, act):
        N, C, H, W = h.shape
        patches, _, _ = im2col_nchw(h, 3, 3, 1, 1)            # 3x3 "same" im2col
        out = fused_conv_call(patches, w_ph, None, do_norm=True, act=act)
        OC = w_ph.shape[1]
        # interleave 4 phases (r, s) into the 2H x 2W spatial map
        out = out.reshape(N, 2, 2, OC, H, W).transpose(0, 3, 4, 1, 5, 2)
        return out.reshape(N, OC, 2 * H, 2 * W)

    out = conv_block(x, wp["conv1"], 4, 2, 1, False, "leaky")   # conv1 (no IN)
    out = conv_block(out, wp["conv2"], 4, 2, 1, True, "leaky")  # conv2 + IN
    out = conv_block(out, wp["conv3"], 4, 2, 1, True, "leaky")  # conv3 + IN

    # TODO(synk): the two 3x3 convs of a residual block could be fused into one
    # pallas_call by building the intermediate's im2col in-kernel; kept as two
    # fused calls (conv+IN+relu, conv+IN+add) for robust lowering.
    for (w1, w2) in wp["res"]:
        h = conv_block(out, w1, 3, 1, 1, True, "relu")
        res_flat = out.reshape(out.shape[0], out.shape[1], -1)
        out = conv_block(h, w2, 3, 1, 1, True, "none", res=res_flat)

    out = deconv_block(out, wp["deconv4"], "leaky")
    out = deconv_block(out, wp["deconv5"], "leaky")
    out = deconv_block(out, wp["deconv6"], "tanh")
    return out


# ----------------------------------- main ----------------------------------- #

if __name__ == "__main__":
    key = jax.random.PRNGKey(0)
    k_x, k_p = jax.random.split(key)

    conv_dim = 8
    n_res_blocks = 2
    x = jax.random.normal(k_x, (2, 3, 16, 16), jnp.float32)   # NCHW like PyTorch

    raw_params = init_params(k_p, conv_dim=conv_dim, n_res_blocks=n_res_blocks)
    wp = prepare_params(raw_params)                           # one-time, outside jit

    fwd = jax.jit(functools.partial(cycle_generator_forward, wp))
    y = fwd(x)
    jax.block_until_ready(y)

    assert y.shape == (2, 3, 16, 16), y.shape
    assert bool(jnp.all(jnp.isfinite(y)))
    assert bool(jnp.all(jnp.abs(y) <= 1.0 + 1e-6))            # tanh output range
    print("KERNEL_OK")
</pallas_src>

<mosaic_0001>
module attributes {stable_mosaic.version = 11 : i64} {
  func.func @_fused_conv_kernel(%arg0: i32, %arg1: memref<1x48x64xbf16, #tpu.memory_space<vmem>>, %arg2: memref<1x8x48xbf16, #tpu.memory_space<vmem>>, %arg3: memref<1x1x8x64xf32, #tpu.memory_space<vmem>>) attributes {dimension_semantics = [#tpu.dimension_semantics<parallel>], iteration_bounds = array<i64: 2>, scalar_prefetch = 0 : i64, scratch_operands = 0 : i64, tpu.core_type = #tpu.core_type<tc>, window_params = [{transform_indices = @transform_0, window_bounds = array<i64: 1, 48, 64>}, {pipeline_mode = #tpu.pipeline_mode<synchronous>, transform_indices = @transform_1, window_bounds = array<i64: 1, 8, 48>}, {transform_indices = @transform_2, window_bounds = array<i64: 1, 1, 8, 64>}]} {
    %c0 = arith.constant 0 : index
    %c0_0 = arith.constant 0 : index
    %c0_1 = arith.constant 0 : index
    %0 = vector.load %arg1[%c0, %c0_0, %c0_1] : memref<1x48x64xbf16, #tpu.memory_space<vmem>>, vector<1x48x64xbf16>
    %1 = vector.shape_cast %0 : vector<1x48x64xbf16> to vector<48x64xbf16>
    %c0_2 = arith.constant 0 : index
    %c0_3 = arith.constant 0 : index
    %c0_4 = arith.constant 0 : index
    %2 = vector.load %arg2[%c0_2, %c0_3, %c0_4] : memref<1x8x48xbf16, #tpu.memory_space<vmem>>, vector<1x8x48xbf16>
    %3 = vector.shape_cast %2 : vector<1x8x48xbf16> to vector<8x48xbf16>
    %cst = arith.constant dense<0.000000e+00> : vector<8x64xf32>
    %4 = tpu.matmul %3, %1, %cst {dimension_numbers = #tpu.dot_dimension_numbers<[1], [0], [0], [1], [0, 0, 1, 1], [], []>} : vector<8x48xbf16>, vector<48x64xbf16>, vector<8x64xf32> -> vector<8x64xf32>
    %cst_5 = arith.constant 0.000000e+00 : f32
    %5 = vector.broadcast %cst_5 : f32 to vector<8x64xf32>
    %6 = arith.cmpf oge, %4, %5 : vector<8x64xf32>
    %cst_6 = arith.constant 2.000000e-01 : f32
    %7 = vector.broadcast %cst_6 : f32 to vector<8x64xf32>
    %8 = arith.mulf %7, %4 : vector<8x64xf32>
    %9 = arith.select %6, %4, %8 : vector<8x64xi1>, vector<8x64xf32>
    %c0_7 = arith.constant 0 : index
    %c0_8 = arith.constant 0 : index
    %c0_9 = arith.constant 0 : index
    %c0_10 = arith.constant 0 : index
    %10 = vector.load %arg3[%c0_7, %c0_8, %c0_9, %c0_10] : memref<1x1x8x64xf32, #tpu.memory_space<vmem>>, vector<1x1x8x64xf32>
    %11 = vector.shape_cast %10 : vector<1x1x8x64xf32> to vector<8x64xf32>
    %12 = vector.shape_cast %9 : vector<8x64xf32> to vector<1x1x8x64xf32>
    tpu.vector_store %arg3[%c0_7, %c0_8, %c0_9, %c0_10], %12 {strides = array<i32>} : memref<1x1x8x64xf32, #tpu.memory_space<vmem>>, vector<1x1x8x64xf32>,
    return
  }
  func.func @transform_0(%arg0: i32) -> (i32, i32, i32) {
    %c0_i32 = arith.constant 0 : i32
    %c0_i32_0 = arith.constant 0 : i32
    %c0_i32_1 = arith.constant 0 : i32
    return %arg0, %c0_i32, %c0_i32_0 : i32, i32, i32
  }
  func.func @transform_1(%arg0: i32) -> (i32, i32, i32) {
    %c0_i32 = arith.constant 0 : i32
    %c0_i32_0 = arith.constant 0 : i32
    %c0_i32_1 = arith.constant 0 : i32
    %c0_i32_2 = arith.constant 0 : i32
    return %c0_i32, %c0_i32_0, %c0_i32_1 : i32, i32, i32
  }
  func.func @transform_2(%arg0: i32) -> (i32, i32, i32, i32) {
    %c0_i32 = arith.constant 0 : i32
    %c0_i32_0 = arith.constant 0 : i32
    %c0_i32_1 = arith.constant 0 : i32
    %c0_i32_2 = arith.constant 0 : i32
    return %arg0, %c0_i32, %c0_i32_0, %c0_i32_1 : i32, i32, i32, i32
  }
}

module attributes {stable_mosaic.version = 11 : i64} {
  func.func @_fused_conv_kernel(%arg0: i32, %arg1: memref<1x128x16xbf16, #tpu.memory_space<vmem>>, %arg2: memref<1x16x128xbf16, #tpu.memory_space<vmem>>, %arg3: memref<1x1x16x16xf32, #tpu.memory_space<vmem>>) attributes {dimension_semantics = [#tpu.dimension_semantics<parallel>], iteration_bounds = array<i64: 2>, scalar_prefetch = 0 : i64, scratch_operands = 0 : i64, tpu.core_type = #tpu.core_type<tc>, window_params = [{transform_indices = @transform_0, window_bounds = array<i64: 1, 128, 16>}, {pipeline_mode = #tpu.pipeline_mode<synchronous>, transform_indices = @transform_1, window_bounds = array<i64: 1, 16, 128>}, {transform_indices = @transform_2, window_bounds = array<i64: 1, 1, 16, 16>}]} {
    %c0 = arith.constant 0 : index
    %c0_0 = arith.constant 0 : index
    %c0_1 = arith.constant 0 : index
    %0 = vector.load %arg1[%c0, %c0_0, %c0_1] : memref<1x128x16xbf16, #tpu.memory_space<vmem>>, vector<1x128x16xbf16>
    %1 = vector.shape_cast %0 : vector<1x128x16xbf16> to vector<128x16xbf16>
    %c0_2 = arith.constant 0 : index
    %c0_3 = arith.constant 0 : index
    %c0_4 = arith.constant 0 : index
    %2 = vector.load %arg2[%c0_2, %c0_3, %c0_4] : memref<1x16x128xbf16, #tpu.memory_space<vmem>>, vector<1x16x128xbf16>
    %3 = vector.shape_cast %2 : vector<1x16x128xbf16> to vector<16x128xbf16>
    %cst = arith.constant dense<0.000000e+00> : vector<16x16xf32>
    %4 = tpu.matmul %3, %1, %cst {dimension_numbers = #tpu.dot_dimension_numbers<[1], [0], [0], [1], [0, 0, 1, 1], [], []>} : vector<16x128xbf16>, vector<128x16xbf16>, vector<16x16xf32> -> vector<16x16xf32>
    %cst_5 = arith.constant dense<0.000000e+00> : vector<16xf32>
    %5 = vector.multi_reduction <add>, %4, %cst_5 [1] : vector<16x16xf32> to vector<16xf32>
    %6 = vector.shape_cast %5 : vector<16xf32> to vector<16x1xf32>
    %cst_6 = arith.constant 6.250000e-02 : f32
    %7 = vector.broadcast %cst_6 : f32 to vector<16x1xf32>
    %8 = arith.mulf %6, %7 : vector<16x1xf32>
    %9 = vector.broadcast %8 : vector<16x1xf32> to vector<16x16xf32>
    %10 = arith.subf %4, %9 : vector<16x16xf32>
    %11 = arith.mulf %10, %10 : vector<16x16xf32>
    %cst_7 = arith.constant dense<0.000000e+00> : vector<16xf32>
    %12 = vector.multi_reduction <add>, %11, %cst_7 [1] : vector<16x16xf32> to vector<16xf32>
    %13 = vector.shape_cast %12 : vector<16xf32> to vector<16x1xf32>
    %cst_8 = arith.constant 6.250000e-02 : f32
    %14 = vector.broadcast %cst_8 : f32 to vector<16x1xf32>
    %15 = arith.mulf %13, %14 : vector<16x1xf32>
    %cst_9 = arith.constant 9.99999974E-6 : f32
    %16 = vector.broadcast %cst_9 : f32 to vector<16x1xf32>
    %17 = arith.addf %15, %16 : vector<16x1xf32>
    %18 = math.rsqrt %17 : vector<16x1xf32>
    %19 = vector.broadcast %8 : vector<16x1xf32> to vector<16x16xf32>
    %20 = arith.subf %4, %19 : vector<16x16xf32>
    %21 = vector.broadcast %18 : vector<16x1xf32> to vector<16x16xf32>
    %22 = arith.mulf %20, %21 : vector<16x16xf32>
    %cst_10 = arith.constant 0.000000e+00 : f32
    %23 = vector.broadcast %cst_10 : f32 to vector<16x16xf32>
    %24 = arith.cmpf oge, %22, %23 : vector<16x16xf32>
    %cst_11 = arith.constant 2.000000e-01 : f32
    %25 = vector.broadcast %cst_11 : f32 to vector<16x16xf32>
    %26 = arith.mulf %25, %22 : vector<16x16xf32>
    %27 = arith.select %24, %22, %26 : vector<16x16xi1>, vector<16x16xf32>
    %c0_12 = arith.constant 0 : index
    %c0_13 = arith.constant 0 : index
    %c0_14 = arith.constant 0 : index
    %c0_15 = arith.constant 0 : index
    %28 = vector.load %arg3[%c0_12, %c0_13, %c0_14, %c0_15] : memref<1x1x16x16xf32, #tpu.memory_space<vmem>>, vector<1x1x16x16xf32>
    %29 = vector.shape_cast %28 : vector<1x1x16x16xf32> to vector<16x16xf32>
    %30 = vector.shape_cast %27 : vector<16x16xf32> to vector<1x1x16x16xf32>
    tpu.vector_store %arg3[%c0_12, %c0_13, %c0_14, %c0_15], %30 {strides = array<i32>} : memref<1x1x16x16xf32, #tpu.memory_space<vmem>>, vector<1x1x16x16xf32>,
    return
  }
  func.func @transform_0(%arg0: i32) -> (i32, i32, i32) {
    %c0_i32 = arith.constant 0 : i32
    %c0_i32_0 = arith.constant 0 : i32
    %c0_i32_1 = arith.constant 0 : i32
    return %arg0, %c0_i32, %c0_i32_0 : i32, i32, i32
  }
  func.func @transform_1(%arg0: i32) -> (i32, i32, i32) {
    %c0_i32 = arith.constant 0 : i32
    %c0_i32_0 = arith.constant 0 : i32
    %c0_i32_1 = arith.constant 0 : i32
    %c0_i32_2 = arith.constant 0 : i32
    return %c0_i32, %c0_i32_0, %c0_i32_1 : i32, i32, i32
  }
  func.func @transform_2(%arg0: i32) -> (i32, i32, i32, i32) {
    %c0_i32 = arith.constant 0 : i32
    %c0_i32_0 = arith.constant 0 : i32
    %c0_i32_1 = arith.constant 0 : i32
    %c0_i32_2 = arith.constant 0 : i32
    return %arg0, %c0_i32, %c0_i32_0, %c0_i32_1 : i32, i32, i32, i32
  }
}

module attributes {stable_mosaic.version = 11 : i64} {
  func.func @_fused_conv_kernel(%arg0: i32, %arg1: memref<1x256x4xbf16, #tpu.memory_space<vmem>>, %arg2: memref<1x32x256xbf16, #tpu.memory_space<vmem>>, %arg3: memref<1x1x32x4xf32, #tpu.memory_space<vmem>>) attributes {dimension_semantics = [#tpu.dimension_semantics<parallel>], iteration_bounds = array<i64: 2>, scalar_prefetch = 0 : i64, scratch_operands = 0 : i64, tpu.core_type = #tpu.core_type<tc>, window_params = [{transform_indices = @transform_0, window_bounds = array<i64: 1, 256, 4>}, {pipeline_mode = #tpu.pipeline_mode<synchronous>, transform_indices = @transform_1, window_bounds = array<i64: 1, 32, 256>}, {transform_indices = @transform_2, window_bounds = array<i64: 1, 1, 32, 4>}]} {
    %c0 = arith.constant 0 : index
    %c0_0 = arith.constant 0 : index
    %c0_1 = arith.constant 0 : index
    %0 = vector.load %arg1[%c0, %c0_0, %c0_1] : memref<1x256x4xbf16, #tpu.memory_space<vmem>>, vector<1x256x4xbf16>
    %1 = vector.shape_cast %0 : vector<1x256x4xbf16> to vector<256x4xbf16>
    %c0_2 = arith.constant 0 : index
    %c0_3 = arith.constant 0 : index
    %c0_4 = arith.constant 0 : index
    %2 = vector.load %arg2[%c0_2, %c0_3, %c0_4] : memref<1x32x256xbf16, #tpu.memory_space<vmem>>, vector<1x32x256xbf16>
    %3 = vector.shape_cast %2 : vector<1x32x256xbf16> to vector<32x256xbf16>
    %cst = arith.constant dense<0.000000e+00> : vector<32x4xf32>
    %4 = tpu.matmul %3, %1, %cst {dimension_numbers = #tpu.dot_dimension_numbers<[1], [0], [0], [1], [0, 0, 1, 1], [], []>} : vector<32x256xbf16>, vector<256x4xbf16>, vector<32x4xf32> -> vector<32x4xf32>
    %cst_5 = arith.constant dense<0.000000e+00> : vector<32xf32>
    %5 = vector.multi_reduction <add>, %4, %cst_5 [1] : vector<32x4xf32> to vector<32xf32>
    %6 = vector.shape_cast %5 : vector<32xf32> to vector<32x1xf32>
    %cst_6 = arith.constant 2.500000e-01 : f32
    %7 = vector.broadcast %cst_6 : f32 to vector<32x1xf32>
    %8 = arith.mulf %6, %7 : vector<32x1xf32>
    %9 = vector.broadcast %8 : vector<32x1xf32> to vector<32x4xf32>
    %10 = arith.subf %4, %9 : vector<32x4xf32>
    %11 = arith.mulf %10, %10 : vector<32x4xf32>
    %cst_7 = arith.constant dense<0.000000e+00> : vector<32xf32>
    %12 = vector.multi_reduction <add>, %11, %cst_7 [1] : vector<32x4xf32> to vector<32xf32>
    %13 = vector.shape_cast %12 : vector<32xf32> to vector<32x1xf32>
    %cst_8 = arith.constant 2.500000e-01 : f32
    %14 = vector.broadcast %cst_8 : f32 to vector<32x1xf32>
    %15 = arith.mulf %13, %14 : vector<32x1xf32>
    %cst_9 = arith.constant 9.99999974E-6 : f32
    %16 = vector.broadcast %cst_9 : f32 to vector<32x1xf32>
    %17 = arith.addf %15, %16 : vector<32x1xf32>
    %18 = math.rsqrt %17 : vector<32x1xf32>
    %19 = vector.broadcast %8 : vector<32x1xf32> to vector<32x4xf32>
    %20 = arith.subf %4, %19 : vector<32x4xf32>
    %21 = vector.broadcast %18 : vector<32x1xf32> to vector<32x4xf32>
    %22 = arith.mulf %20, %21 : vector<32x4xf32>
    %cst_10 = arith.constant 0.000000e+00 : f32
    %23 = vector.broadcast %cst_10 : f32 to vector<32x4xf32>
    %24 = arith.cmpf oge, %22, %23 : vector<32x4xf32>
    %cst_11 = arith.constant 2.000000e-01 : f32
    %25 = vector.broadcast %cst_11 : f32 to vector<32x4xf32>
    %26 = arith.mulf %25, %22 : vector<32x4xf32>
    %27 = arith.select %24, %22, %26 : vector<32x4xi1>, vector<32x4xf32>
    %c0_12 = arith.constant 0 : index
    %c0_13 = arith.constant 0 : index
    %c0_14 = arith.constant 0 : index
    %c0_15 = arith.constant 0 : index
    %28 = vector.load %arg3[%c0_12, %c0_13, %c0_14, %c0_15] : memref<1x1x32x4xf32, #tpu.memory_space<vmem>>, vector<1x1x32x4xf32>
    %29 = vector.shape_cast %28 : vector<1x1x32x4xf32> to vector<32x4xf32>
    %30 = vector.shape_cast %27 : vector<32x4xf32> to vector<1x1x32x4xf32>
    tpu.vector_store %arg3[%c0_12, %c0_13, %c0_14, %c0_15], %30 {strides = array<i32>} : memref<1x1x32x4xf32, #tpu.memory_space<vmem>>, vector<1x1x32x4xf32>,
    return
  }
  func.func @transform_0(%arg0: i32) -> (i32, i32, i32) {
    %c0_i32 = arith.constant 0 : i32
    %c0_i32_0 = arith.constant 0 : i32
    %c0_i32_1 = arith.constant 0 : i32
    return %arg0, %c0_i32, %c0_i32_0 : i32, i32, i32
  }
  func.func @transform_1(%arg0: i32) -> (i32, i32, i32) {
    %c0_i32 = arith.constant 0 : i32
    %c0_i32_0 = arith.constant 0 : i32
    %c0_i32_1 = arith.constant 0 : i32
    %c0_i32_2 = arith.constant 0 : i32
    return %c0_i32, %c0_i32_0, %c0_i32_1 : i32, i32, i32
  }
  func.func @transform_2(%arg0: i32) -> (i32, i32, i32, i32) {
    %c0_i32 = arith.constant 0 : i32
    %c0_i32_0 = arith.constant 0 : i32
    %c0_i32_1 = arith.constant 0 : i32
    %c0_i32_2 = arith.constant 0 : i32
    return %arg0, %c0_i32, %c0_i32_0, %c0_i32_1 : i32, i32, i32, i32
  }
}

module attributes {stable_mosaic.version = 11 : i64} {
  func.func @_fused_conv_kernel(%arg0: i32, %arg1: memref<1x288x4xbf16, #tpu.memory_space<vmem>>, %arg2: memref<1x32x288xbf16, #tpu.memory_space<vmem>>, %arg3: memref<1x1x32x4xf32, #tpu.memory_space<vmem>>) attributes {dimension_semantics = [#tpu.dimension_semantics<parallel>], iteration_bounds = array<i64: 2>, scalar_prefetch = 0 : i64, scratch_operands = 0 : i64, tpu.core_type = #tpu.core_type<tc>, window_params = [{transform_indices = @transform_0, window_bounds = array<i64: 1, 288, 4>}, {pipeline_mode = #tpu.pipeline_mode<synchronous>, transform_indices = @transform_1, window_bounds = array<i64: 1, 32, 288>}, {transform_indices = @transform_2, window_bounds = array<i64: 1, 1, 32, 4>}]} {
    %c0 = arith.constant 0 : index
    %c0_0 = arith.constant 0 : index
    %c0_1 = arith.constant 0 : index
    %0 = vector.load %arg1[%c0, %c0_0, %c0_1] : memref<1x288x4xbf16, #tpu.memory_space<vmem>>, vector<1x288x4xbf16>
    %1 = vector.shape_cast %0 : vector<1x288x4xbf16> to vector<288x4xbf16>
    %c0_2 = arith.constant 0 : index
    %c0_3 = arith.constant 0 : index
    %c0_4 = arith.constant 0 : index
    %2 = vector.load %arg2[%c0_2, %c0_3, %c0_4] : memref<1x32x288xbf16, #tpu.memory_space<vmem>>, vector<1x32x288xbf16>
    %3 = vector.shape_cast %2 : vector<1x32x288xbf16> to vector<32x288xbf16>
    %cst = arith.constant dense<0.000000e+00> : vector<32x4xf32>
    %4 = tpu.matmul %3, %1, %cst {dimension_numbers = #tpu.dot_dimension_numbers<[1], [0], [0], [1], [0, 0, 1, 1], [], []>} : vector<32x288xbf16>, vector<288x4xbf16>, vector<32x4xf32> -> vector<32x4xf32>
    %cst_5 = arith.constant dense<0.000000e+00> : vector<32xf32>
    %5 = vector.multi_reduction <add>, %4, %cst_5 [1] : vector<32x4xf32> to vector<32xf32>
    %6 = vector.shape_cast %5 : vector<32xf32> to vector<32x1xf32>
    %cst_6 = arith.constant 2.500000e-01 : f32
    %7 = vector.broadcast %cst_6 : f32 to vector<32x1xf32>
    %8 = arith.mulf %6, %7 : vector<32x1xf32>
    %9 = vector.broadcast %8 : vector<32x1xf32> to vector<32x4xf32>
    %10 = arith.subf %4, %9 : vector<32x4xf32>
    %11 = arith.mulf %10, %10 : vector<32x4xf32>
    %cst_7 = arith.constant dense<0.000000e+00> : vector<32xf32>
    %12 = vector.multi_reduction <add>, %11, %cst_7 [1] : vector<32x4xf32> to vector<32xf32>
    %13 = vector.shape_cast %12 : vector<32xf32> to vector<32x1xf32>
    %cst_8 = arith.constant 2.500000e-01 : f32
    %14 = vector.broadcast %cst_8 : f32 to vector<32x1xf32>
    %15 = arith.mulf %13, %14 : vector<32x1xf32>
    %cst_9 = arith.constant 9.99999974E-6 : f32
    %16 = vector.broadcast %cst_9 : f32 to vector<32x1xf32>
    %17 = arith.addf %15, %16 : vector<32x1xf32>
    %18 = math.rsqrt %17 : vector<32x1xf32>
    %19 = vector.broadcast %8 : vector<32x1xf32> to vector<32x4xf32>
    %20 = arith.subf %4, %19 : vector<32x4xf32>
    %21 = vector.broadcast %18 : vector<32x1xf32> to vector<32x4xf32>
    %22 = arith.mulf %20, %21 : vector<32x4xf32>
    %cst_10 = arith.constant 0.000000e+00 : f32
    %23 = vector.broadcast %cst_10 : f32 to vector<32x4xf32>
    %24 = arith.maximumf %22, %23 : vector<32x4xf32>
    %c0_11 = arith.constant 0 : index
    %c0_12 = arith.constant 0 : index
    %c0_13 = arith.constant 0 : index
    %c0_14 = arith.constant 0 : index
    %25 = vector.load %arg3[%c0_11, %c0_12, %c0_13, %c0_14] : memref<1x1x32x4xf32, #tpu.memory_space<vmem>>, vector<1x1x32x4xf32>
    %26 = vector.shape_cast %25 : vector<1x1x32x4xf32> to vector<32x4xf32>
    %27 = vector.shape_cast %24 : vector<32x4xf32> to vector<1x1x32x4xf32>
    tpu.vector_store %arg3[%c0_11, %c0_12, %c0_13, %c0_14], %27 {strides = array<i32>} : memref<1x1x32x4xf32, #tpu.memory_space<vmem>>, vector<1x1x32x4xf32>,
    return
  }
  func.func @transform_0(%arg0: i32) -> (i32, i32, i32) {
    %c0_i32 = arith.constant 0 : i32
    %c0_i32_0 = arith.constant 0 : i32
    %c0_i32_1 = arith.constant 0 : i32
    return %arg0, %c0_i32, %c0_i32_0 : i32, i32, i32
  }
  func.func @transform_1(%arg0: i32) -> (i32, i32, i32) {
    %c0_i32 = arith.constant 0 : i32
    %c0_i32_0 = arith.constant 0 : i32
    %c0_i32_1 = arith.constant 0 : i32
    %c0_i32_2 = arith.constant 0 : i32
    return %c0_i32, %c0_i32_0, %c0_i32_1 : i32, i32, i32
  }
  func.func @transform_2(%arg0: i32) -> (i32, i32, i32, i32) {
    %c0_i32 = arith.constant 0 : i32
    %c0_i32_0 = arith.constant 0 : i32
    %c0_i32_1 = arith.constant 0 : i32
    %c0_i32_2 = arith.constant 0 : i32
    return %arg0, %c0_i32, %c0_i32_0, %c0_i32_1 : i32, i32, i32, i32
  }
}

module attributes {stable_mosaic.version = 11 : i64} {
  func.func @_fused_conv_kernel(%arg0: i32, %arg1: memref<1x288x4xbf16, #tpu.memory_space<vmem>>, %arg2: memref<1x32x288xbf16, #tpu.memory_space<vmem>>, %arg3: memref<1x32x4xf32, #tpu.memory_space<vmem>>, %arg4: memref<1x1x32x4xf32, #tpu.memory_space<vmem>>) attributes {dimension_semantics = [#tpu.dimension_semantics<parallel>], iteration_bounds = array<i64: 2>, scalar_prefetch = 0 : i64, scratch_operands = 0 : i64, tpu.core_type = #tpu.core_type<tc>, window_params = [{transform_indices = @transform_0, window_bounds = array<i64: 1, 288, 4>}, {pipeline_mode = #tpu.pipeline_mode<synchronous>, transform_indices = @transform_1, window_bounds = array<i64: 1, 32, 288>}, {transform_indices = @transform_2, window_bounds = array<i64: 1, 32, 4>}, {transform_indices = @transform_3, window_bounds = array<i64: 1, 1, 32, 4>}]} {
    %c0 = arith.constant 0 : index
    %c0_0 = arith.constant 0 : index
    %c0_1 = arith.constant 0 : index
    %0 = vector.load %arg1[%c0, %c0_0, %c0_1] : memref<1x288x4xbf16, #tpu.memory_space<vmem>>, vector<1x288x4xbf16>
    %1 = vector.shape_cast %0 : vector<1x288x4xbf16> to vector<288x4xbf16>
    %c0_2 = arith.constant 0 : index
    %c0_3 = arith.constant 0 : index
    %c0_4 = arith.constant 0 : index
    %2 = vector.load %arg2[%c0_2, %c0_3, %c0_4] : memref<1x32x288xbf16, #tpu.memory_space<vmem>>, vector<1x32x288xbf16>
    %3 = vector.shape_cast %2 : vector<1x32x288xbf16> to vector<32x288xbf16>
    %cst = arith.constant dense<0.000000e+00> : vector<32x4xf32>
    %4 = tpu.matmul %3, %1, %cst {dimension_numbers = #tpu.dot_dimension_numbers<[1], [0], [0], [1], [0, 0, 1, 1], [], []>} : vector<32x288xbf16>, vector<288x4xbf16>, vector<32x4xf32> -> vector<32x4xf32>
    %cst_5 = arith.constant dense<0.000000e+00> : vector<32xf32>
    %5 = vector.multi_reduction <add>, %4, %cst_5 [1] : vector<32x4xf32> to vector<32xf32>
    %6 = vector.shape_cast %5 : vector<32xf32> to vector<32x1xf32>
    %cst_6 = arith.constant 2.500000e-01 : f32
    %7 = vector.broadcast %cst_6 : f32 to vector<32x1xf32>
    %8 = arith.mulf %6, %7 : vector<32x1xf32>
    %9 = vector.broadcast %8 : vector<32x1xf32> to vector<32x4xf32>
    %10 = arith.subf %4, %9 : vector<32x4xf32>
    %11 = arith.mulf %10, %10 : vector<32x4xf32>
    %cst_7 = arith.constant dense<0.000000e+00> : vector<32xf32>
    %12 = vector.multi_reduction <add>, %11, %cst_7 [1] : vector<32x4xf32> to vector<32xf32>
    %13 = vector.shape_cast %12 : vector<32xf32> to vector<32x1xf32>
    %cst_8 = arith.constant 2.500000e-01 : f32
    %14 = vector.broadcast %cst_8 : f32 to vector<32x1xf32>
    %15 = arith.mulf %13, %14 : vector<32x1xf32>
    %cst_9 = arith.constant 9.99999974E-6 : f32
    %16 = vector.broadcast %cst_9 : f32 to vector<32x1xf32>
    %17 = arith.addf %15, %16 : vector<32x1xf32>
    %18 = math.rsqrt %17 : vector<32x1xf32>
    %19 = vector.broadcast %8 : vector<32x1xf32> to vector<32x4xf32>
    %20 = arith.subf %4, %19 : vector<32x4xf32>
    %21 = vector.broadcast %18 : vector<32x1xf32> to vector<32x4xf32>
    %22 = arith.mulf %20, %21 : vector<32x4xf32>
    %c0_10 = arith.constant 0 : index
    %c0_11 = arith.constant 0 : index
    %c0_12 = arith.constant 0 : index
    %23 = vector.load %arg3[%c0_10, %c0_11, %c0_12] : memref<1x32x4xf32, #tpu.memory_space<vmem>>, vector<1x32x4xf32>
    %24 = vector.shape_cast %23 : vector<1x32x4xf32> to vector<32x4xf32>
    %25 = arith.addf %22, %24 : vector<32x4xf32>
    %c0_13 = arith.constant 0 : index
    %c0_14 = arith.constant 0 : index
    %c0_15 = arith.constant 0 : index
    %c0_16 = arith.constant 0 : index
    %26 = vector.load %arg4[%c0_13, %c0_14, %c0_15, %c0_16] : memref<1x1x32x4xf32, #tpu.memory_space<vmem>>, vector<1x1x32x4xf32>
    %27 = vector.shape_cast %26 : vector<1x1x32x4xf32> to vector<32x4xf32>
    %28 = vector.shape_cast %25 : vector<32x4xf32> to vector<1x1x32x4xf32>
    tpu.vector_store %arg4[%c0_13, %c0_14, %c0_15, %c0_16], %28 {strides = array<i32>} : memref<1x1x32x4xf32, #tpu.memory_space<vmem>>, vector<1x1x32x4xf32>,
    return
  }
  func.func @transform_0(%arg0: i32) -> (i32, i32, i32) {
    %c0_i32 = arith.constant 0 : i32
    %c0_i32_0 = arith.constant 0 : i32
    %c0_i32_1 = arith.constant 0 : i32
    return %arg0, %c0_i32, %c0_i32_0 : i32, i32, i32
  }
  func.func @transform_1(%arg0: i32) -> (i32, i32, i32) {
    %c0_i32 = arith.constant 0 : i32
    %c0_i32_0 = arith.constant 0 : i32
    %c0_i32_1 = arith.constant 0 : i32
    %c0_i32_2 = arith.constant 0 : i32
    return %c0_i32, %c0_i32_0, %c0_i32_1 : i32, i32, i32
  }
  func.func @transform_2(%arg0: i32) -> (i32, i32, i32) {
    %c0_i32 = arith.constant 0 : i32
    %c0_i32_0 = arith.constant 0 : i32
    %c0_i32_1 = arith.constant 0 : i32
    return %arg0, %c0_i32, %c0_i32_0 : i32, i32, i32
  }
  func.func @transform_3(%arg0: i32) -> (i32, i32, i32, i32) {
    %c0_i32 = arith.constant 0 : i32
    %c0_i32_0 = arith.constant 0 : i32
    %c0_i32_1 = arith.constant 0 : i32
    %c0_i32_2 = arith.constant 0 : i32
    return %arg0, %c0_i32, %c0_i32_0, %c0_i32_1 : i32, i32, i32, i32
  }
}

module attributes {stable_mosaic.version = 11 : i64} {
  func.func @_fused_conv_kernel(%arg0: i32, %arg1: memref<1x288x4xbf16, #tpu.memory_space<vmem>>, %arg2: memref<4x16x288xbf16, #tpu.memory_space<vmem>>, %arg3: memref<1x4x16x4xf32, #tpu.memory_space<vmem>>) attributes {dimension_semantics = [#tpu.dimension_semantics<parallel>], iteration_bounds = array<i64: 2>, scalar_prefetch = 0 : i64, scratch_operands = 0 : i64, tpu.core_type = #tpu.core_type<tc>, window_params = [{transform_indices = @transform_0, window_bounds = array<i64: 1, 288, 4>}, {pipeline_mode = #tpu.pipeline_mode<synchronous>, transform_indices = @transform_1, window_bounds = array<i64: 4, 16, 288>}, {transform_indices = @transform_2, window_bounds = array<i64: 1, 4, 16, 4>}]} {
    %c0 = arith.constant 0 : index
    %c0_0 = arith.constant 0 : index
    %c0_1 = arith.constant 0 : index
    %0 = vector.load %arg1[%c0, %c0_0, %c0_1] : memref<1x288x4xbf16, #tpu.memory_space<vmem>>, vector<1x288x4xbf16>
    %1 = vector.shape_cast %0 : vector<1x288x4xbf16> to vector<288x4xbf16>
    %c0_2 = arith.constant 0 : index
    %c0_3 = arith.constant 0 : index
    %c0_4 = arith.constant 0 : index
    %2 = vector.load %arg2[%c0_2, %c0_3, %c0_4] : memref<4x16x288xbf16, #tpu.memory_space<vmem>>, vector<1x16x288xbf16>
    %3 = vector.shape_cast %2 : vector<1x16x288xbf16> to vector<16x288xbf16>
    %cst = arith.constant dense<0.000000e+00> : vector<16x4xf32>
    %4 = tpu.matmul %3, %1, %cst {dimension_numbers = #tpu.dot_dimension_numbers<[1], [0], [0], [1], [0, 0, 1, 1], [], []>} : vector<16x288xbf16>, vector<288x4xbf16>, vector<16x4xf32> -> vector<16x4xf32>
    %c1 = arith.constant 1 : index
    %c0_5 = arith.constant 0 : index
    %c0_6 = arith.constant 0 : index
    %5 = vector.load %arg2[%c1, %c0_5, %c0_6] : memref<4x16x288xbf16, #tpu.memory_space<vmem>>, vector<1x16x288xbf16>
    %6 = vector.shape_cast %5 : vector<1x16x288xbf16> to vector<16x288xbf16>
    %cst_7 = arith.constant dense<0.000000e+00> : vector<16x4xf32>
    %7 = tpu.matmul %6, %1, %cst_7 {dimension_numbers = #tpu.dot_dimension_numbers<[1], [0], [0], [1], [0, 0, 1, 1], [], []>} : vector<16x288xbf16>, vector<288x4xbf16>, vector<16x4xf32> -> vector<16x4xf32>
    %c2 = arith.constant 2 : index
    %c0_8 = arith.constant 0 : index
    %c0_9 = arith.constant 0 : index
    %8 = vector.load %arg2[%c2, %c0_8, %c0_9] : memref<4x16x288xbf16, #tpu.memory_space<vmem>>, vector<1x16x288xbf16>
    %9 = vector.shape_cast %8 : vector<1x16x288xbf16> to vector<16x288xbf16>
    %cst_10 = arith.constant dense<0.000000e+00> : vector<16x4xf32>
    %10 = tpu.matmul %9, %1, %cst_10 {dimension_numbers = #tpu.dot_dimension_numbers<[1], [0], [0], [1], [0, 0, 1, 1], [], []>} : vector<16x288xbf16>, vector<288x4xbf16>, vector<16x4xf32> -> vector<16x4xf32>
    %c3 = arith.constant 3 : index
    %c0_11 = arith.constant 0 : index
    %c0_12 = arith.constant 0 : index
    %11 = vector.load %arg2[%c3, %c0_11, %c0_12] : memref<4x16x288xbf16, #tpu.memory_space<vmem>>, vector<1x16x288xbf16>
    %12 = vector.shape_cast %11 : vector<1x16x288xbf16> to vector<16x288xbf16>
    %cst_13 = arith.constant dense<0.000000e+00> : vector<16x4xf32>
    %13 = tpu.matmul %12, %1, %cst_13 {dimension_numbers = #tpu.dot_dimension_numbers<[1], [0], [0], [1], [0, 0, 1, 1], [], []>} : vector<16x288xbf16>, vector<288x4xbf16>, vector<16x4xf32> -> vector<16x4xf32>
    %cst_14 = arith.constant dense<0.000000e+00> : vector<16xf32>
    %14 = vector.multi_reduction <add>, %4, %cst_14 [1] : vector<16x4xf32> to vector<16xf32>
    %15 = vector.shape_cast %14 : vector<16xf32> to vector<16x1xf32>
    %cst_15 = arith.constant dense<0.000000e+00> : vector<16xf32>
    %16 = vector.multi_reduction <add>, %7, %cst_15 [1] : vector<16x4xf32> to vector<16xf32>
    %17 = vector.shape_cast %16 : vector<16xf32> to vector<16x1xf32>
    %18 = arith.addf %15, %17 : vector<16x1xf32>
    %cst_16 = arith.constant dense<0.000000e+00> : vector<16xf32>
    %19 = vector.multi_reduction <add>, %10, %cst_16 [1] : vector<16x4xf32> to vector<16xf32>
    %20 = vector.shape_cast %19 : vector<16xf32> to vector<16x1xf32>
    %21 = arith.addf %18, %20 : vector<16x1xf32>
    %cst_17 = arith.constant dense<0.000000e+00> : vector<16xf32>
    %22 = vector.multi_reduction <add>, %13, %cst_17 [1] : vector<16x4xf32> to vector<16xf32>
    %23 = vector.shape_cast %22 : vector<16xf32> to vector<16x1xf32>
    %24 = arith.addf %21, %23 : vector<16x1xf32>
    %cst_18 = arith.constant 6.250000e-02 : f32
    %25 = vector.broadcast %cst_18 : f32 to vector<16x1xf32>
    %26 = arith.mulf %24, %25 : vector<16x1xf32>
    %27 = vector.broadcast %26 : vector<16x1xf32> to vector<16x4xf32>
    %28 = arith.subf %4, %27 : vector<16x4xf32>
    %29 = arith.mulf %28, %28 : vector<16x4xf32>
    %cst_19 = arith.constant dense<0.000000e+00> : vector<16xf32>
    %30 = vector.multi_reduction <add>, %29, %cst_19 [1] : vector<16x4xf32> to vector<16xf32>
    %31 = vector.shape_cast %30 : vector<16xf32> to vector<16x1xf32>
    %32 = vector.broadcast %26 : vector<16x1xf32> to vector<16x4xf32>
    %33 = arith.subf %7, %32 : vector<16x4xf32>
    %34 = arith.mulf %33, %33 : vector<16x4xf32>
    %cst_20 = arith.constant dense<0.000000e+00> : vector<16xf32>
    %35 = vector.multi_reduction <add>, %34, %cst_20 [1] : vector<16x4xf32> to vector<16xf32>
    %36 = vector.shape_cast %35 : vector<16xf32> to vector<16x1xf32>
    %37 = arith.addf %31, %36 : vector<16x1xf32>
    %38 = vector.broadcast %26 : vector<16x1xf32> to vector<16x4xf32>
    %39 = arith.subf %10, %38 : vector<16x4xf32>
    %40 = arith.mulf %39, %39 : vector<16x4xf32>
    %cst_21 = arith.constant dense<0.000000e+00> : vector<16xf32>
    %41 = vector.multi_reduction <add>, %40, %cst_21 [1] : vector<16x4xf32> to vector<16xf32>
    %42 = vector.shape_cast %41 : vector<16xf32> to vector<16x1xf32>
    %43 = arith.addf %37, %42 : vector<16x1xf32>
    %44 = vector.broadcast %26 : vector<16x1xf32> to vector<16x4xf32>
    %45 = arith.subf %13, %44 : vector<16x4xf32>
    %46 = arith.mulf %45, %45 : vector<16x4xf32>
    %cst_22 = arith.constant dense<0.000000e+00> : vector<16xf32>
    %47 = vector.multi_reduction <add>, %46, %cst_22 [1] : vector<16x4xf32> to vector<16xf32>
    %48 = vector.shape_cast %47 : vector<16xf32> to vector<16x1xf32>
    %49 = arith.addf %43, %48 : vector<16x1xf32>
    %cst_23 = arith.constant 6.250000e-02 : f32
    %50 = vector.broadcast %cst_23 : f32 to vector<16x1xf32>
    %51 = arith.mulf %49, %50 : vector<16x1xf32>
    %cst_24 = arith.constant 9.99999974E-6 : f32
    %52 = vector.broadcast %cst_24 : f32 to vector<16x1xf32>
    %53 = arith.addf %51, %52 : vector<16x1xf32>
    %54 = math.rsqrt %53 : vector<16x1xf32>
    %55 = vector.broadcast %26 : vector<16x1xf32> to vector<16x4xf32>
    %56 = arith.subf %4, %55 : vector<16x4xf32>
    %57 = vector.broadcast %54 : vector<16x1xf32> to vector<16x4xf32>
    %58 = arith.mulf %56, %57 : vector<16x4xf32>
    %59 = vector.broadcast %26 : vector<16x1xf32> to vector<16x4xf32>
    %60 = arith.subf %7, %59 : vector<16x4xf32>
    %61 = vector.broadcast %54 : vector<16x1xf32> to vector<16x4xf32>
    %62 = arith.mulf %60, %61 : vector<16x4xf32>
    %63 = vector.broadcast %26 : vector<16x1xf32> to vector<16x4xf32>
    %64 = arith.subf %10, %63 : vector<16x4xf32>
    %65 = vector.broadcast %54 : vector<16x1xf32> to vector<16x4xf32>
    %66 = arith.mulf %64, %65 : vector<16x4xf32>
    %67 = vector.broadcast %26 : vector<16x1xf32> to vector<16x4xf32>
    %68 = arith.subf %13, %67 : vector<16x4xf32>
    %69 = vector.broadcast %54 : vector<16x1xf32> to vector<16x4xf32>
    %70 = arith.mulf %68, %69 : vector<16x4xf32>
    %cst_25 = arith.constant 0.000000e+00 : f32
    %71 = vector.broadcast %cst_25 : f32 to vector<16x4xf32>
    %72 = arith.cmpf oge, %58, %71 : vector<16x4xf32>
    %cst_26 = arith.constant 2.000000e-01 : f32
    %73 = vector.broadcast %cst_26 : f32 to vector<16x4xf32>
    %74 = arith.mulf %73, %58 : vector<16x4xf32>
    %75 = arith.select %72, %58, %74 : vector<16x4xi1>, vector<16x4xf32>
    %cst_27 = arith.constant 0.000000e+00 : f32
    %76 = vector.broadcast %cst_27 : f32 to vector<16x4xf32>
    %77 = arith.cmpf oge, %62, %76 : vector<16x4xf32>
    %cst_28 = arith.constant 2.000000e-01 : f32
    %78 = vector.broadcast %cst_28 : f32 to vector<16x4xf32>
    %79 = arith.mulf %78, %62 : vector<16x4xf32>
    %80 = arith.select %77, %62, %79 : vector<16x4xi1>, vector<16x4xf32>
    %cst_29 = arith.constant 0.000000e+00 : f32
    %81 = vector.broadcast %cst_29 : f32 to vector<16x4xf32>
    %82 = arith.cmpf oge, %66, %81 : vector<16x4xf32>
    %cst_30 = arith.constant 2.000000e-01 : f32
    %83 = vector.broadcast %cst_30 : f32 to vector<16x4xf32>
    %84 = arith.mulf %83, %66 : vector<16x4xf32>
    %85 = arith.select %82, %66, %84 : vector<16x4xi1>, vector<16x4xf32>
    %cst_31 = arith.constant 0.000000e+00 : f32
    %86 = vector.broadcast %cst_31 : f32 to vector<16x4xf32>
    %87 = arith.cmpf oge, %70, %86 : vector<16x4xf32>
    %cst_32 = arith.constant 2.000000e-01 : f32
    %88 = vector.broadcast %cst_32 : f32 to vector<16x4xf32>
    %89 = arith.mulf %88, %70 : vector<16x4xf32>
    %90 = arith.select %87, %70, %89 : vector<16x4xi1>, vector<16x4xf32>
    %c0_33 = arith.constant 0 : index
    %c0_34 = arith.constant 0 : index
    %c0_35 = arith.constant 0 : index
    %c0_36 = arith.constant 0 : index
    %91 = vector.load %arg3[%c0_33, %c0_34, %c0_35, %c0_36] : memref<1x4x16x4xf32, #tpu.memory_space<vmem>>, vector<1x1x16x4xf32>
    %92 = vector.shape_cast %91 : vector<1x1x16x4xf32> to vector<16x4xf32>
    %93 = vector.shape_cast %75 : vector<16x4xf32> to vector<1x1x16x4xf32>
    tpu.vector_store %arg3[%c0_33, %c0_34, %c0_35, %c0_36], %93 {strides = array<i32>} : memref<1x4x16x4xf32, #tpu.memory_space<vmem>>, vector<1x1x16x4xf32>,
    %c0_37 = arith.constant 0 : index
    %c1_38 = arith.constant 1 : index
    %c0_39 = arith.constant 0 : index
    %c0_40 = arith.constant 0 : index
    %94 = vector.load %arg3[%c0_37, %c1_38, %c0_39, %c0_40] : memref<1x4x16x4xf32, #tpu.memory_space<vmem>>, vector<1x1x16x4xf32>
    %95 = vector.shape_cast %94 : vector<1x1x16x4xf32> to vector<16x4xf32>
    %96 = vector.shape_cast %80 : vector<16x4xf32> to vector<1x1x16x4xf32>
    tpu.vector_store %arg3[%c0_37, %c1_38, %c0_39, %c0_40], %96 {strides = array<i32>} : memref<1x4x16x4xf32, #tpu.memory_space<vmem>>, vector<1x1x16x4xf32>,
    %c0_41 = arith.constant 0 : index
    %c2_42 = arith.constant 2 : index
    %c0_43 = arith.constant 0 : index
    %c0_44 = arith.constant 0 : index
    %97 = vector.load %arg3[%c0_41, %c2_42, %c0_43, %c0_44] : memref<1x4x16x4xf32, #tpu.memory_space<vmem>>, vector<1x1x16x4xf32>
    %98 = vector.shape_cast %97 : vector<1x1x16x4xf32> to vector<16x4xf32>
    %99 = vector.shape_cast %85 : vector<16x4xf32> to vector<1x1x16x4xf32>
    tpu.vector_store %arg3[%c0_41, %c2_42, %c0_43, %c0_44], %99 {strides = array<i32>} : memref<1x4x16x4xf32, #tpu.memory_space<vmem>>, vector<1x1x16x4xf32>,
    %c0_45 = arith.constant 0 : index
    %c3_46 = arith.constant 3 : index
    %c0_47 = arith.constant 0 : index
    %c0_48 = arith.constant 0 : index
    %100 = vector.load %arg3[%c0_45, %c3_46, %c0_47, %c0_48] : memref<1x4x16x4xf32, #tpu.memory_space<vmem>>, vector<1x1x16x4xf32>
    %101 = vector.shape_cast %100 : vector<1x1x16x4xf32> to vector<16x4xf32>
    %102 = vector.shape_cast %90 : vector<16x4xf32> to vector<1x1x16x4xf32>
    tpu.vector_store %arg3[%c0_45, %c3_46, %c0_47, %c0_48], %102 {strides = array<i32>} : memref<1x4x16x4xf32, #tpu.memory_space<vmem>>, vector<1x1x16x4xf32>,
    return
  }
  func.func @transform_0(%arg0: i32) -> (i32, i32, i32) {
    %c0_i32 = arith.constant 0 : i32
    %c0_i32_0 = arith.constant 0 : i32
    %c0_i32_1 = arith.constant 0 : i32
    return %arg0, %c0_i32, %c0_i32_0 : i32, i32, i32
  }
  func.func @transform_1(%arg0: i32) -> (i32, i32, i32) {
    %c0_i32 = arith.constant 0 : i32
    %c0_i32_0 = arith.constant 0 : i32
    %c0_i32_1 = arith.constant 0 : i32
    %c0_i32_2 = arith.constant 0 : i32
    return %c0_i32, %c0_i32_0, %c0_i32_1 : i32, i32, i32
  }
  func.func @transform_2(%arg0: i32) -> (i32, i32, i32, i32) {
    %c0_i32 = arith.constant 0 : i32
    %c0_i32_0 = arith.constant 0 : i32
    %c0_i32_1 = arith.constant 0 : i32
    %c0_i32_2 = arith.constant 0 : i32
    return %arg0, %c0_i32, %c0_i32_0, %c0_i32_1 : i32, i32, i32, i32
  }
}

module attributes {stable_mosaic.version = 11 : i64} {
  func.func @_fused_conv_kernel(%arg0: i32, %arg1: memref<1x144x16xbf16, #tpu.memory_space<vmem>>, %arg2: memref<4x8x144xbf16, #tpu.memory_space<vmem>>, %arg3: memref<1x4x8x16xf32, #tpu.memory_space<vmem>>) attributes {dimension_semantics = [#tpu.dimension_semantics<parallel>], iteration_bounds = array<i64: 2>, scalar_prefetch = 0 : i64, scratch_operands = 0 : i64, tpu.core_type = #tpu.core_type<tc>, window_params = [{transform_indices = @transform_0, window_bounds = array<i64: 1, 144, 16>}, {pipeline_mode = #tpu.pipeline_mode<synchronous>, transform_indices = @transform_1, window_bounds = array<i64: 4, 8, 144>}, {transform_indices = @transform_2, window_bounds = array<i64: 1, 4, 8, 16>}]} {
    %c0 = arith.constant 0 : index
    %c0_0 = arith.constant 0 : index
    %c0_1 = arith.constant 0 : index
    %0 = vector.load %arg1[%c0, %c0_0, %c0_1] : memref<1x144x16xbf16, #tpu.memory_space<vmem>>, vector<1x144x16xbf16>
    %1 = vector.shape_cast %0 : vector<1x144x16xbf16> to vector<144x16xbf16>
    %c0_2 = arith.constant 0 : index
    %c0_3 = arith.constant 0 : index
    %c0_4 = arith.constant 0 : index
    %2 = vector.load %arg2[%c0_2, %c0_3, %c0_4] : memref<4x8x144xbf16, #tpu.memory_space<vmem>>, vector<1x8x144xbf16>
    %3 = vector.shape_cast %2 : vector<1x8x144xbf16> to vector<8x144xbf16>
    %cst = arith.constant dense<0.000000e+00> : vector<8x16xf32>
    %4 = tpu.matmul %3, %1, %cst {dimension_numbers = #tpu.dot_dimension_numbers<[1], [0], [0], [1], [0, 0, 1, 1], [], []>} : vector<8x144xbf16>, vector<144x16xbf16>, vector<8x16xf32> -> vector<8x16xf32>
    %c1 = arith.constant 1 : index
    %c0_5 = arith.constant 0 : index
    %c0_6 = arith.constant 0 : index
    %5 = vector.load %arg2[%c1, %c0_5, %c0_6] : memref<4x8x144xbf16, #tpu.memory_space<vmem>>, vector<1x8x144xbf16>
    %6 = vector.shape_cast %5 : vector<1x8x144xbf16> to vector<8x144xbf16>
    %cst_7 = arith.constant dense<0.000000e+00> : vector<8x16xf32>
    %7 = tpu.matmul %6, %1, %cst_7 {dimension_numbers = #tpu.dot_dimension_numbers<[1], [0], [0], [1], [0, 0, 1, 1], [], []>} : vector<8x144xbf16>, vector<144x16xbf16>, vector<8x16xf32> -> vector<8x16xf32>
    %c2 = arith.constant 2 : index
    %c0_8 = arith.constant 0 : index
    %c0_9 = arith.constant 0 : index
    %8 = vector.load %arg2[%c2, %c0_8, %c0_9] : memref<4x8x144xbf16, #tpu.memory_space<vmem>>, vector<1x8x144xbf16>
    %9 = vector.shape_cast %8 : vector<1x8x144xbf16> to vector<8x144xbf16>
    %cst_10 = arith.constant dense<0.000000e+00> : vector<8x16xf32>
    %10 = tpu.matmul %9, %1, %cst_10 {dimension_numbers = #tpu.dot_dimension_numbers<[1], [0], [0], [1], [0, 0, 1, 1], [], []>} : vector<8x144xbf16>, vector<144x16xbf16>, vector<8x16xf32> -> vector<8x16xf32>
    %c3 = arith.constant 3 : index
    %c0_11 = arith.constant 0 : index
    %c0_12 = arith.constant 0 : index
    %11 = vector.load %arg2[%c3, %c0_11, %c0_12] : memref<4x8x144xbf16, #tpu.memory_space<vmem>>, vector<1x8x144xbf16>
    %12 = vector.shape_cast %11 : vector<1x8x144xbf16> to vector<8x144xbf16>
    %cst_13 = arith.constant dense<0.000000e+00> : vector<8x16xf32>
    %13 = tpu.matmul %12, %1, %cst_13 {dimension_numbers = #tpu.dot_dimension_numbers<[1], [0], [0], [1], [0, 0, 1, 1], [], []>} : vector<8x144xbf16>, vector<144x16xbf16>, vector<8x16xf32> -> vector<8x16xf32>
    %cst_14 = arith.constant dense<0.000000e+00> : vector<8xf32>
    %14 = vector.multi_reduction <add>, %4, %cst_14 [1] : vector<8x16xf32> to vector<8xf32>
    %15 = vector.shape_cast %14 : vector<8xf32> to vector<8x1xf32>
    %cst_15 = arith.constant dense<0.000000e+00> : vector<8xf32>
    %16 = vector.multi_reduction <add>, %7, %cst_15 [1] : vector<8x16xf32> to vector<8xf32>
    %17 = vector.shape_cast %16 : vector<8xf32> to vector<8x1xf32>
    %18 = arith.addf %15, %17 : vector<8x1xf32>
    %cst_16 = arith.constant dense<0.000000e+00> : vector<8xf32>
    %19 = vector.multi_reduction <add>, %10, %cst_16 [1] : vector<8x16xf32> to vector<8xf32>
    %20 = vector.shape_cast %19 : vector<8xf32> to vector<8x1xf32>
    %21 = arith.addf %18, %20 : vector<8x1xf32>
    %cst_17 = arith.constant dense<0.000000e+00> : vector<8xf32>
    %22 = vector.multi_reduction <add>, %13, %cst_17 [1] : vector<8x16xf32> to vector<8xf32>
    %23 = vector.shape_cast %22 : vector<8xf32> to vector<8x1xf32>
    %24 = arith.addf %21, %23 : vector<8x1xf32>
    %cst_18 = arith.constant 1.562500e-02 : f32
    %25 = vector.broadcast %cst_18 : f32 to vector<8x1xf32>
    %26 = arith.mulf %24, %25 : vector<8x1xf32>
    %27 = vector.broadcast %26 : vector<8x1xf32> to vector<8x16xf32>
    %28 = arith.subf %4, %27 : vector<8x16xf32>
    %29 = arith.mulf %28, %28 : vector<8x16xf32>
    %cst_19 = arith.constant dense<0.000000e+00> : vector<8xf32>
    %30 = vector.multi_reduction <add>, %29, %cst_19 [1] : vector<8x16xf32> to vector<8xf32>
    %31 = vector.shape_cast %30 : vector<8xf32> to vector<8x1xf32>
    %32 = vector.broadcast %26 : vector<8x1xf32> to vector<8x16xf32>
    %33 = arith.subf %7, %32 : vector<8x16xf32>
    %34 = arith.mulf %33, %33 : vector<8x16xf32>
    %cst_20 = arith.constant dense<0.000000e+00> : vector<8xf32>
    %35 = vector.multi_reduction <add>, %34, %cst_20 [1] : vector<8x16xf32> to vector<8xf32>
    %36 = vector.shape_cast %35 : vector<8xf32> to vector<8x1xf32>
    %37 = arith.addf %31, %36 : vector<8x1xf32>
    %38 = vector.broadcast %26 : vector<8x1xf32> to vector<8x16xf32>
    %39 = arith.subf %10, %38 : vector<8x16xf32>
    %40 = arith.mulf %39, %39 : vector<8x16xf32>
    %cst_21 = arith.constant dense<0.000000e+00> : vector<8xf32>
    %41 = vector.multi_reduction <add>, %40, %cst_21 [1] : vector<8x16xf32> to vector<8xf32>
    %42 = vector.shape_cast %41 : vector<8xf32> to vector<8x1xf32>
    %43 = arith.addf %37, %42 : vector<8x1xf32>
    %44 = vector.broadcast %26 : vector<8x1xf32> to vector<8x16xf32>
    %45 = arith.subf %13, %44 : vector<8x16xf32>
    %46 = arith.mulf %45, %45 : vector<8x16xf32>
    %cst_22 = arith.constant dense<0.000000e+00> : vector<8xf32>
    %47 = vector.multi_reduction <add>, %46, %cst_22 [1] : vector<8x16xf32> to vector<8xf32>
    %48 = vector.shape_cast %47 : vector<8xf32> to vector<8x1xf32>
    %49 = arith.addf %43, %48 : vector<8x1xf32>
    %cst_23 = arith.constant 1.562500e-02 : f32
    %50 = vector.broadcast %cst_23 : f32 to vector<8x1xf32>
    %51 = arith.mulf %49, %50 : vector<8x1xf32>
    %cst_24 = arith.constant 9.99999974E-6 : f32
    %52 = vector.broadcast %cst_24 : f32 to vector<8x1xf32>
    %53 = arith.addf %51, %52 : vector<8x1xf32>
    %54 = math.rsqrt %53 : vector<8x1xf32>
    %55 = vector.broadcast %26 : vector<8x1xf32> to vector<8x16xf32>
    %56 = arith.subf %4, %55 : vector<8x16xf32>
    %57 = vector.broadcast %54 : vector<8x1xf32> to vector<8x16xf32>
    %58 = arith.mulf %56, %57 : vector<8x16xf32>
    %59 = vector.broadcast %26 : vector<8x1xf32> to vector<8x16xf32>
    %60 = arith.subf %7, %59 : vector<8x16xf32>
    %61 = vector.broadcast %54 : vector<8x1xf32> to vector<8x16xf32>
    %62 = arith.mulf %60, %61 : vector<8x16xf32>
    %63 = vector.broadcast %26 : vector<8x1xf32> to vector<8x16xf32>
    %64 = arith.subf %10, %63 : vector<8x16xf32>
    %65 = vector.broadcast %54 : vector<8x1xf32> to vector<8x16xf32>
    %66 = arith.mulf %64, %65 : vector<8x16xf32>
    %67 = vector.broadcast %26 : vector<8x1xf32> to vector<8x16xf32>
    %68 = arith.subf %13, %67 : vector<8x16xf32>
    %69 = vector.broadcast %54 : vector<8x1xf32> to vector<8x16xf32>
    %70 = arith.mulf %68, %69 : vector<8x16xf32>
    %cst_25 = arith.constant 0.000000e+00 : f32
    %71 = vector.broadcast %cst_25 : f32 to vector<8x16xf32>
    %72 = arith.cmpf oge, %58, %71 : vector<8x16xf32>
    %cst_26 = arith.constant 2.000000e-01 : f32
    %73 = vector.broadcast %cst_26 : f32 to vector<8x16xf32>
    %74 = arith.mulf %73, %58 : vector<8x16xf32>
    %75 = arith.select %72, %58, %74 : vector<8x16xi1>, vector<8x16xf32>
    %cst_27 = arith.constant 0.000000e+00 : f32
    %76 = vector.broadcast %cst_27 : f32 to vector<8x16xf32>
    %77 = arith.cmpf oge, %62, %76 : vector<8x16xf32>
    %cst_28 = arith.constant 2.000000e-01 : f32
    %78 = vector.broadcast %cst_28 : f32 to vector<8x16xf32>
    %79 = arith.mulf %78, %62 : vector<8x16xf32>
    %80 = arith.select %77, %62, %79 : vector<8x16xi1>, vector<8x16xf32>
    %cst_29 = arith.constant 0.000000e+00 : f32
    %81 = vector.broadcast %cst_29 : f32 to vector<8x16xf32>
    %82 = arith.cmpf oge, %66, %81 : vector<8x16xf32>
    %cst_30 = arith.constant 2.000000e-01 : f32
    %83 = vector.broadcast %cst_30 : f32 to vector<8x16xf32>
    %84 = arith.mulf %83, %66 : vector<8x16xf32>
    %85 = arith.select %82, %66, %84 : vector<8x16xi1>, vector<8x16xf32>
    %cst_31 = arith.constant 0.000000e+00 : f32
    %86 = vector.broadcast %cst_31 : f32 to vector<8x16xf32>
    %87 = arith.cmpf oge, %70, %86 : vector<8x16xf32>
    %cst_32 = arith.constant 2.000000e-01 : f32
    %88 = vector.broadcast %cst_32 : f32 to vector<8x16xf32>
    %89 = arith.mulf %88, %70 : vector<8x16xf32>
    %90 = arith.select %87, %70, %89 : vector<8x16xi1>, vector<8x16xf32>
    %c0_33 = arith.constant 0 : index
    %c0_34 = arith.constant 0 : index
    %c0_35 = arith.constant 0 : index
    %c0_36 = arith.constant 0 : index
    %91 = vector.load %arg3[%c0_33, %c0_34, %c0_35, %c0_36] : memref<1x4x8x16xf32, #tpu.memory_space<vmem>>, vector<1x1x8x16xf32>
    %92 = vector.shape_cast %91 : vector<1x1x8x16xf32> to vector<8x16xf32>
    %93 = vector.shape_cast %75 : vector<8x16xf32> to vector<1x1x8x16xf32>
    tpu.vector_store %arg3[%c0_33, %c0_34, %c0_35, %c0_36], %93 {strides = array<i32>} : memref<1x4x8x16xf32, #tpu.memory_space<vmem>>, vector<1x1x8x16xf32>,
    %c0_37 = arith.constant 0 : index
    %c1_38 = arith.constant 1 : index
    %c0_39 = arith.constant 0 : index
    %c0_40 = arith.constant 0 : index
    %94 = vector.load %arg3[%c0_37, %c1_38, %c0_39, %c0_40] : memref<1x4x8x16xf32, #tpu.memory_space<vmem>>, vector<1x1x8x16xf32>
    %95 = vector.shape_cast %94 : vector<1x1x8x16xf32> to vector<8x16xf32>
    %96 = vector.shape_cast %80 : vector<8x16xf32> to vector<1x1x8x16xf32>
    tpu.vector_store %arg3[%c0_37, %c1_38, %c0_39, %c0_40], %96 {strides = array<i32>} : memref<1x4x8x16xf32, #tpu.memory_space<vmem>>, vector<1x1x8x16xf32>,
    %c0_41 = arith.constant 0 : index
    %c2_42 = arith.constant 2 : index
    %c0_43 = arith.constant 0 : index
    %c0_44 = arith.constant 0 : index
    %97 = vector.load %arg3[%c0_41, %c2_42, %c0_43, %c0_44] : memref<1x4x8x16xf32, #tpu.memory_space<vmem>>, vector<1x1x8x16xf32>
    %98 = vector.shape_cast %97 : vector<1x1x8x16xf32> to vector<8x16xf32>
    %99 = vector.shape_cast %85 : vector<8x16xf32> to vector<1x1x8x16xf32>
    tpu.vector_store %arg3[%c0_41, %c2_42, %c0_43, %c0_44], %99 {strides = array<i32>} : memref<1x4x8x16xf32, #tpu.memory_space<vmem>>, vector<1x1x8x16xf32>,
    %c0_45 = arith.constant 0 : index
    %c3_46 = arith.constant 3 : index
    %c0_47 = arith.constant 0 : index
    %c0_48 = arith.constant 0 : index
    %100 = vector.load %arg3[%c0_45, %c3_46, %c0_47, %c0_48] : memref<1x4x8x16xf32, #tpu.memory_space<vmem>>, vector<1x1x8x16xf32>
    %101 = vector.shape_cast %100 : vector<1x1x8x16xf32> to vector<8x16xf32>
    %102 = vector.shape_cast %90 : vector<8x16xf32> to vector<1x1x8x16xf32>
    tpu.vector_store %arg3[%c0_45, %c3_46, %c0_47, %c0_48], %102 {strides = array<i32>} : memref<1x4x8x16xf32, #tpu.memory_space<vmem>>, vector<1x1x8x16xf32>,
    return
  }
  func.func @transform_0(%arg0: i32) -> (i32, i32, i32) {
    %c0_i32 = arith.constant 0 : i32
    %c0_i32_0 = arith.constant 0 : i32
    %c0_i32_1 = arith.constant 0 : i32
    return %arg0, %c0_i32, %c0_i32_0 : i32, i32, i32
  }
  func.func @transform_1(%arg0: i32) -> (i32, i32, i32) {
    %c0_i32 = arith.constant 0 : i32
    %c0_i32_0 = arith.constant 0 : i32
    %c0_i32_1 = arith.constant 0 : i32
    %c0_i32_2 = arith.constant 0 : i32
    return %c0_i32, %c0_i32_0, %c0_i32_1 : i32, i32, i32
  }
  func.func @transform_2(%arg0: i32) -> (i32, i32, i32, i32) {
    %c0_i32 = arith.constant 0 : i32
    %c0_i32_0 = arith.constant 0 : i32
    %c0_i32_1 = arith.constant 0 : i32
    %c0_i32_2 = arith.constant 0 : i32
    return %arg0, %c0_i32, %c0_i32_0, %c0_i32_1 : i32, i32, i32, i32
  }
}

module attributes {stable_mosaic.version = 11 : i64} {
  func.func @_fused_conv_kernel(%arg0: i32, %arg1: memref<1x72x64xbf16, #tpu.memory_space<vmem>>, %arg2: memref<4x3x72xbf16, #tpu.memory_space<vmem>>, %arg3: memref<1x4x3x64xf32, #tpu.memory_space<vmem>>) attributes {dimension_semantics = [#tpu.dimension_semantics<parallel>], iteration_bounds = array<i64: 2>, scalar_prefetch = 0 : i64, scratch_operands = 0 : i64, tpu.core_type = #tpu.core_type<tc>, window_params = [{transform_indices = @transform_0, window_bounds = array<i64: 1, 72, 64>}, {pipeline_mode = #tpu.pipeline_mode<synchronous>, transform_indices = @transform_1, window_bounds = array<i64: 4, 3, 72>}, {transform_indices = @transform_2, window_bounds = array<i64: 1, 4, 3, 64>}]} {
    %c0 = arith.constant 0 : index
    %c0_0 = arith.constant 0 : index
    %c0_1 = arith.constant 0 : index
    %0 = vector.load %arg1[%c0, %c0_0, %c0_1] : memref<1x72x64xbf16, #tpu.memory_space<vmem>>, vector<1x72x64xbf16>
    %1 = vector.shape_cast %0 : vector<1x72x64xbf16> to vector<72x64xbf16>
    %c0_2 = arith.constant 0 : index
    %c0_3 = arith.constant 0 : index
    %c0_4 = arith.constant 0 : index
    %2 = vector.load %arg2[%c0_2, %c0_3, %c0_4] : memref<4x3x72xbf16, #tpu.memory_space<vmem>>, vector<1x3x72xbf16>
    %3 = vector.shape_cast %2 : vector<1x3x72xbf16> to vector<3x72xbf16>
    %cst = arith.constant dense<0.000000e+00> : vector<3x64xf32>
    %4 = tpu.matmul %3, %1, %cst {dimension_numbers = #tpu.dot_dimension_numbers<[1], [0], [0], [1], [0, 0, 1, 1], [], []>} : vector<3x72xbf16>, vector<72x64xbf16>, vector<3x64xf32> -> vector<3x64xf32>
    %c1 = arith.constant 1 : index
    %c0_5 = arith.constant 0 : index
    %c0_6 = arith.constant 0 : index
    %5 = vector.load %arg2[%c1, %c0_5, %c0_6] : memref<4x3x72xbf16, #tpu.memory_space<vmem>>, vector<1x3x72xbf16>
    %6 = vector.shape_cast %5 : vector<1x3x72xbf16> to vector<3x72xbf16>
    %cst_7 = arith.constant dense<0.000000e+00> : vector<3x64xf32>
    %7 = tpu.matmul %6, %1, %cst_7 {dimension_numbers = #tpu.dot_dimension_numbers<[1], [0], [0], [1], [0, 0, 1, 1], [], []>} : vector<3x72xbf16>, vector<72x64xbf16>, vector<3x64xf32> -> vector<3x64xf32>
    %c2 = arith.constant 2 : index
    %c0_8 = arith.constant 0 : index
    %c0_9 = arith.constant 0 : index
    %8 = vector.load %arg2[%c2, %c0_8, %c0_9] : memref<4x3x72xbf16, #tpu.memory_space<vmem>>, vector<1x3x72xbf16>
    %9 = vector.shape_cast %8 : vector<1x3x72xbf16> to vector<3x72xbf16>
    %cst_10 = arith.constant dense<0.000000e+00> : vector<3x64xf32>
    %10 = tpu.matmul %9, %1, %cst_10 {dimension_numbers = #tpu.dot_dimension_numbers<[1], [0], [0], [1], [0, 0, 1, 1], [], []>} : vector<3x72xbf16>, vector<72x64xbf16>, vector<3x64xf32> -> vector<3x64xf32>
    %c3 = arith.constant 3 : index
    %c0_11 = arith.constant 0 : index
    %c0_12 = arith.constant 0 : index
    %11 = vector.load %arg2[%c3, %c0_11, %c0_12] : memref<4x3x72xbf16, #tpu.memory_space<vmem>>, vector<1x3x72xbf16>
    %12 = vector.shape_cast %11 : vector<1x3x72xbf16> to vector<3x72xbf16>
    %cst_13 = arith.constant dense<0.000000e+00> : vector<3x64xf32>
    %13 = tpu.matmul %12, %1, %cst_13 {dimension_numbers = #tpu.dot_dimension_numbers<[1], [0], [0], [1], [0, 0, 1, 1], [], []>} : vector<3x72xbf16>, vector<72x64xbf16>, vector<3x64xf32> -> vector<3x64xf32>
    %cst_14 = arith.constant dense<0.000000e+00> : vector<3xf32>
    %14 = vector.multi_reduction <add>, %4, %cst_14 [1] : vector<3x64xf32> to vector<3xf32>
    %15 = vector.shape_cast %14 : vector<3xf32> to vector<3x1xf32>
    %cst_15 = arith.constant dense<0.000000e+00> : vector<3xf32>
    %16 = vector.multi_reduction <add>, %7, %cst_15 [1] : vector<3x64xf32> to vector<3xf32>
    %17 = vector.shape_cast %16 : vector<3xf32> to vector<3x1xf32>
    %18 = arith.addf %15, %17 : vector<3x1xf32>
    %cst_16 = arith.constant dense<0.000000e+00> : vector<3xf32>
    %19 = vector.multi_reduction <add>, %10, %cst_16 [1] : vector<3x64xf32> to vector<3xf32>
    %20 = vector.shape_cast %19 : vector<3xf32> to vector<3x1xf32>
    %21 = arith.addf %18, %20 : vector<3x1xf32>
    %cst_17 = arith.constant dense<0.000000e+00> : vector<3xf32>
    %22 = vector.multi_reduction <add>, %13, %cst_17 [1] : vector<3x64xf32> to vector<3xf32>
    %23 = vector.shape_cast %22 : vector<3xf32> to vector<3x1xf32>
    %24 = arith.addf %21, %23 : vector<3x1xf32>
    %cst_18 = arith.constant 3.906250e-03 : f32
    %25 = vector.broadcast %cst_18 : f32 to vector<3x1xf32>
    %26 = arith.mulf %24, %25 : vector<3x1xf32>
    %27 = vector.broadcast %26 : vector<3x1xf32> to vector<3x64xf32>
    %28 = arith.subf %4, %27 : vector<3x64xf32>
    %29 = arith.mulf %28, %28 : vector<3x64xf32>
    %cst_19 = arith.constant dense<0.000000e+00> : vector<3xf32>
    %30 = vector.multi_reduction <add>, %29, %cst_19 [1] : vector<3x64xf32> to vector<3xf32>
    %31 = vector.shape_cast %30 : vector<3xf32> to vector<3x1xf32>
    %32 = vector.broadcast %26 : vector<3x1xf32> to vector<3x64xf32>
    %33 = arith.subf %7, %32 : vector<3x64xf32>
    %34 = arith.mulf %33, %33 : vector<3x64xf32>
    %cst_20 = arith.constant dense<0.000000e+00> : vector<3xf32>
    %35 = vector.multi_reduction <add>, %34, %cst_20 [1] : vector<3x64xf32> to vector<3xf32>
    %36 = vector.shape_cast %35 : vector<3xf32> to vector<3x1xf32>
    %37 = arith.addf %31, %36 : vector<3x1xf32>
    %38 = vector.broadcast %26 : vector<3x1xf32> to vector<3x64xf32>
    %39 = arith.subf %10, %38 : vector<3x64xf32>
    %40 = arith.mulf %39, %39 : vector<3x64xf32>
    %cst_21 = arith.constant dense<0.000000e+00> : vector<3xf32>
    %41 = vector.multi_reduction <add>, %40, %cst_21 [1] : vector<3x64xf32> to vector<3xf32>
    %42 = vector.shape_cast %41 : vector<3xf32> to vector<3x1xf32>
    %43 = arith.addf %37, %42 : vector<3x1xf32>
    %44 = vector.broadcast %26 : vector<3x1xf32> to vector<3x64xf32>
    %45 = arith.subf %13, %44 : vector<3x64xf32>
    %46 = arith.mulf %45, %45 : vector<3x64xf32>
    %cst_22 = arith.constant dense<0.000000e+00> : vector<3xf32>
    %47 = vector.multi_reduction <add>, %46, %cst_22 [1] : vector<3x64xf32> to vector<3xf32>
    %48 = vector.shape_cast %47 : vector<3xf32> to vector<3x1xf32>
    %49 = arith.addf %43, %48 : vector<3x1xf32>
    %cst_23 = arith.constant 3.906250e-03 : f32
    %50 = vector.broadcast %cst_23 : f32 to vector<3x1xf32>
    %51 = arith.mulf %49, %50 : vector<3x1xf32>
    %cst_24 = arith.constant 9.99999974E-6 : f32
    %52 = vector.broadcast %cst_24 : f32 to vector<3x1xf32>
    %53 = arith.addf %51, %52 : vector<3x1xf32>
    %54 = math.rsqrt %53 : vector<3x1xf32>
    %55 = vector.broadcast %26 : vector<3x1xf32> to vector<3x64xf32>
    %56 = arith.subf %4, %55 : vector<3x64xf32>
    %57 = vector.broadcast %54 : vector<3x1xf32> to vector<3x64xf32>
    %58 = arith.mulf %56, %57 : vector<3x64xf32>
    %59 = vector.broadcast %26 : vector<3x1xf32> to vector<3x64xf32>
    %60 = arith.subf %7, %59 : vector<3x64xf32>
    %61 = vector.broadcast %54 : vector<3x1xf32> to vector<3x64xf32>
    %62 = arith.mulf %60, %61 : vector<3x64xf32>
    %63 = vector.broadcast %26 : vector<3x1xf32> to vector<3x64xf32>
    %64 = arith.subf %10, %63 : vector<3x64xf32>
    %65 = vector.broadcast %54 : vector<3x1xf32> to vector<3x64xf32>
    %66 = arith.mulf %64, %65 : vector<3x64xf32>
    %67 = vector.broadcast %26 : vector<3x1xf32> to vector<3x64xf32>
    %68 = arith.subf %13, %67 : vector<3x64xf32>
    %69 = vector.broadcast %54 : vector<3x1xf32> to vector<3x64xf32>
    %70 = arith.mulf %68, %69 : vector<3x64xf32>
    %71 = math.tanh %58 : vector<3x64xf32>
    %72 = math.tanh %62 : vector<3x64xf32>
    %73 = math.tanh %66 : vector<3x64xf32>
    %74 = math.tanh %70 : vector<3x64xf32>
    %c0_25 = arith.constant 0 : index
    %c0_26 = arith.constant 0 : index
    %c0_27 = arith.constant 0 : index
    %c0_28 = arith.constant 0 : index
    %75 = vector.load %arg3[%c0_25, %c0_26, %c0_27, %c0_28] : memref<1x4x3x64xf32, #tpu.memory_space<vmem>>, vector<1x1x3x64xf32>
    %76 = vector.shape_cast %75 : vector<1x1x3x64xf32> to vector<3x64xf32>
    %77 = vector.shape_cast %71 : vector<3x64xf32> to vector<1x1x3x64xf32>
    tpu.vector_store %arg3[%c0_25, %c0_26, %c0_27, %c0_28], %77 {strides = array<i32>} : memref<1x4x3x64xf32, #tpu.memory_space<vmem>>, vector<1x1x3x64xf32>,
    %c0_29 = arith.constant 0 : index
    %c1_30 = arith.constant 1 : index
    %c0_31 = arith.constant 0 : index
    %c0_32 = arith.constant 0 : index
    %78 = vector.load %arg3[%c0_29, %c1_30, %c0_31, %c0_32] : memref<1x4x3x64xf32, #tpu.memory_space<vmem>>, vector<1x1x3x64xf32>
    %79 = vector.shape_cast %78 : vector<1x1x3x64xf32> to vector<3x64xf32>
    %80 = vector.shape_cast %72 : vector<3x64xf32> to vector<1x1x3x64xf32>
    tpu.vector_store %arg3[%c0_29, %c1_30, %c0_31, %c0_32], %80 {strides = array<i32>} : memref<1x4x3x64xf32, #tpu.memory_space<vmem>>, vector<1x1x3x64xf32>,
    %c0_33 = arith.constant 0 : index
    %c2_34 = arith.constant 2 : index
    %c0_35 = arith.constant 0 : index
    %c0_36 = arith.constant 0 : index
    %81 = vector.load %arg3[%c0_33, %c2_34, %c0_35, %c0_36] : memref<1x4x3x64xf32, #tpu.memory_space<vmem>>, vector<1x1x3x64xf32>
    %82 = vector.shape_cast %81 : vector<1x1x3x64xf32> to vector<3x64xf32>
    %83 = vector.shape_cast %73 : vector<3x64xf32> to vector<1x1x3x64xf32>
    tpu.vector_store %arg3[%c0_33, %c2_34, %c0_35, %c0_36], %83 {strides = array<i32>} : memref<1x4x3x64xf32, #tpu.memory_space<vmem>>, vector<1x1x3x64xf32>,
    %c0_37 = arith.constant 0 : index
    %c3_38 = arith.constant 3 : index
    %c0_39 = arith.constant 0 : index
    %c0_40 = arith.constant 0 : index
    %84 = vector.load %arg3[%c0_37, %c3_38, %c0_39, %c0_40] : memref<1x4x3x64xf32, #tpu.memory_space<vmem>>, vector<1x1x3x64xf32>
    %85 = vector.shape_cast %84 : vector<1x1x3x64xf32> to vector<3x64xf32>
    %86 = vector.shape_cast %74 : vector<3x64xf32> to vector<1x1x3x64xf32>
    tpu.vector_store %arg3[%c0_37, %c3_38, %c0_39, %c0_40], %86 {strides = array<i32>} : memref<1x4x3x64xf32, #tpu.memory_space<vmem>>, vector<1x1x3x64xf32>,
    return
  }
  func.func @transform_0(%arg0: i32) -> (i32, i32, i32) {
    %c0_i32 = arith.constant 0 : i32
    %c0_i32_0 = arith.constant 0 : i32
    %c0_i32_1 = arith.constant 0 : i32
    return %arg0, %c0_i32, %c0_i32_0 : i32, i32, i32
  }
  func.func @transform_1(%arg0: i32) -> (i32, i32, i32) {
    %c0_i32 = arith.constant 0 : i32
    %c0_i32_0 = arith.constant 0 : i32
    %c0_i32_1 = arith.constant 0 : i32
    %c0_i32_2 = arith.constant 0 : i32
    return %c0_i32, %c0_i32_0, %c0_i32_1 : i32, i32, i32
  }
  func.func @transform_2(%arg0: i32) -> (i32, i32, i32, i32) {
    %c0_i32 = arith.constant 0 : i32
    %c0_i32_0 = arith.constant 0 : i32
    %c0_i32_1 = arith.constant 0 : i32
    %c0_i32_2 = arith.constant 0 : i32
    return %arg0, %c0_i32, %c0_i32_0, %c0_i32_1 : i32, i32, i32, i32
  }
}

</mosaic_0001>

<bundles_post_ra>
// kernel: cycle_generator_forward.10
= control target key start
LH: loop header
LB: loop body
LE: loop exit
PB: predicated region body
PF: predicated region fallthrough
CT: control target
= control target key end

     0   :  { %s336_s9 = smov 0   ;;  %s356_s0 = inlined_call_operand.vmem [shape: bf16[2,48,64], index: 0, kind: input, shape index: {}]   ;;  %s357_s1 = inlined_call_operand.vmem [shape: bf16[1,8,48], index: 1, kind: input, shape index: {}]   ;;  %s358_s2 = inlined_call_operand.vmem [shape: f32[2,1,8,64], index: 2, kind: output, shape index: {}]  }
   0x1 LB: > { %s270_s10 = sadd.s32 4294967295, %s317_s9   ;;  %p274_p0 = scmp.ge.s32.totalorder %s317_s9, 1  ;;  %s317_s9 = sphi %s336_s9, %s12_s9  }
   0x2   : > { %p112_p1 = scmp.lt.s32.totalorder %s317_s9, 3 }
   0x4   : > { %p113_p2 = pnand %p274_p0, %p112_p1 }
   0x5   : > { %p133_p3 = scmp.lt.s32.totalorder (!%p113_p2), %s270_s10, 1  ;;  %v319_v0 = vmov (!%p113_p2), 0.0   ;;  %vm320_vm0 = vmmov (!%p113_p2), 0   ;;  %v149_v4 = vld [vmem:[%s357_s1] sm:$0xf] (!%p113_p2)  ;;  %vm168_vm1 = vcmask (!%p113_p2), 392192  }
   0x6   : > { %116 = sbr.rel (%p113_p2) target bundleno = 245 (0xf5), region = 28  ;;  %287 = vmatprep.subr.bf16.mxu0 (!%p113_p2), %v319_v0  ;;  %293 = vmatprep.mubr.msk.bf16.mxu0 (!%p113_p2), %vm320_vm0, %v319_v0  ;;  %vm215_vm3 = vcmask (!%p113_p2), 523264  }
   0xd   : > { %s360_s10 = smov (!%p133_p3, %s270_s10), 1 }
   0xe   : > { %s297_s11 = smul.u32 24, %s360_s10  ;;  %s276_s17 = sshll.u32 %s360_s10, 3 }
   0xf   : > { %s141_s20 = scalar_lea.vmem %s358_s2, %s276_s17 }
  0x10   : > { %s137_s14 = scalar_lea.vmem %s356_s0, %s297_s11 }
  0x11   : > { %v308_v1 = vld [vmem:[%s137_s14] sm:$0xff]   ;;  %v309_v2 = vld [vmem:[%s137_s14 + $0x8] sm:$0xff]   ;;  %v310_v3 = vld [vmem:[%s137_s14 + $0x10] sm:$0xff]  }
  0x12   : > { %288 = vmatpush3.bf16.msra.mxu0 %v308_v1 }
  0x13   : > { %289 = vmatprep.subr.bf16.mxu0 %v319_v0 }
  0x16   : > { %290 = vmatpush3.bf16.msra.mxu0 %v309_v2 }
  0x17   : > { %291 = vmatprep.subr.bf16.mxu0 %v319_v0 }
  0x1a   : > { %292 = vmatpush3.bf16.msra.mxu0 %v310_v3 }
  0x1d   : > { %294 = vmatmul.mubr.msk.bf16.vlgmr.msra.gmra.mrb[0].mxu0 %vm168_vm1, %v149_v4 }
  0xf0   : > { %v206_v5 = vpop.f32.mrb[0].mxu0 }
  0xf1   : > { %vm212_vm2 = vcmp.ge.f32.partialorder %v206_v5, 0.0  ;;  %v213_v6 = vmul.f32 0.2, %v206_v5  ;;  %v295_v7 = vpop.f32.mrb[1].mxu0 }
  0xf2   : > { %v209_v8 = vpop.f32.mrb[2].mxu0 }
  0xf3   : > { %v214_v9 = vsel %vm212_vm2, %v206_v5, %v213_v6  ;;  %v296_v10 = vpop.f32.mrb[3].mxu0 }
  0xf4   : > { %216 = vst.msk [vmem:[%s141_s20] sm:$0xff] %vm215_vm3, %v214_v9 }
  0xf5 PF: > { %s12_s9 = sadd.s32 1, %s317_s9  }
  0xf6   : > { %p9_p4 = scmp.ge.s32.totalorder %s12_s9, 4  }
  0xf8   :  { %11 = sbr.rel (!%p9_p4) target bundleno = 1 (0x1), region = 58 }

// kernel: cycle_generator_forward.11
= control target key start
LH: loop header
LB: loop body
LE: loop exit
PB: predicated region body
PF: predicated region fallthrough
CT: control target
= control target key end

     0   :  { %s447_s9 = smov 0   ;;  %s477_s0 = inlined_call_operand.vmem [shape: bf16[2,128,16], index: 0, kind: input, shape index: {}]   ;;  %s478_s1 = inlined_call_operand.vmem [shape: bf16[1,16,128], index: 1, kind: input, shape index: {}]   ;;  %s479_s2 = inlined_call_operand.vmem [shape: f32[2,1,16,16], index: 2, kind: output, shape index: {}]  }
   0x1 LB: > { %s348_s10 = sadd.s32 4294967295, %s428_s9   ;;  %p352_p0 = scmp.ge.s32.totalorder %s428_s9, 1  ;;  %s428_s9 = sphi %s447_s9, %s12_s9  }
   0x2   : > { %p112_p1 = scmp.lt.s32.totalorder %s428_s9, 3 }
   0x4   : > { %p113_p2 = pnand %p352_p0, %p112_p1 }
   0x5   : > { %p134_p3 = scmp.lt.s32.totalorder (!%p113_p2), %s348_s10, 1  ;;  %v430_v0 = vmov (!%p113_p2), 0.0   ;;  %vm431_vm0 = vmmov (!%p113_p2), 0   ;;  %v417_v9 = vld [vmem:[%s478_s1] sm:$0xff] (!%p113_p2)   ;;  %vm258_vm1 = vcmask (!%p113_p2), 130048  }
   0x6   : > { %116 = sbr.rel (%p113_p2) target bundleno = 577 (0x241), region = 28  ;;  %379 = vmatprep.subr.bf16.mxu0 (!%p113_p2), %v430_v0  ;;  %395 = vmatprep.mubr.msk.bf16.mxu0 (!%p113_p2), %vm431_vm0, %v430_v0 }
   0xd   : > { %s481_s10 = smov (!%p134_p3, %s348_s10), 1 }
   0xe   : > { %s368_s11 = sshll.u32 %s481_s10, 6  ;;  %s369_s17 = sshll.u32 %s481_s10, 4 }
   0xf   : > { %s138_s14 = scalar_lea.vmem %s477_s0, %s368_s11  ;;  %s143_s20 = scalar_lea.vmem %s479_s2, %s369_s17 }
  0x10   : > { %v409_v1 = vld [vmem:[%s138_s14] sm:$0xff]   ;;  %v410_v2 = vld [vmem:[%s138_s14 + $0x8] sm:$0xff]   ;;  %v411_v3 = vld [vmem:[%s138_s14 + $0x10] sm:$0xff]  }
  0x11   : > { %380 = vmatpush3.bf16.msra.mxu0 %v409_v1  ;;  %v412_v4 = vld [vmem:[%s138_s14 + $0x18] sm:$0xff]   ;;  %v413_v5 = vld [vmem:[%s138_s14 + $0x20] sm:$0xff]   ;;  %v414_v6 = vld [vmem:[%s138_s14 + $0x28] sm:$0xff]  }
  0x12   : > { %381 = vmatprep.subr.bf16.mxu0 %v430_v0  ;;  %v415_v7 = vld [vmem:[%s138_s14 + $0x30] sm:$0xff]   ;;  %v416_v8 = vld [vmem:[%s138_s14 + $0x38] sm:$0xff]  }
  0x15   : > { %382 = vmatpush3.bf16.msra.mxu0 %v410_v2 }
  0x16   : > { %383 = vmatprep.subr.bf16.mxu0 %v430_v0 }
  0x19   : > { %384 = vmatpush3.bf16.msra.mxu0 %v411_v3 }
  0x1a   : > { %385 = vmatprep.subr.bf16.mxu0 %v430_v0 }
  0x1d   : > { %386 = vmatpush3.bf16.msra.mxu0 %v412_v4 }
  0x1e   : > { %387 = vmatprep.subr.bf16.mxu0 %v430_v0 }
  0x21   : > { %388 = vmatpush3.bf16.msra.mxu0 %v413_v5 }
  0x22   : > { %389 = vmatprep.subr.bf16.mxu0 %v430_v0 }
  0x25   : > { %390 = vmatpush3.bf16.msra.mxu0 %v414_v6 }
  0x26   : > { %391 = vmatprep.subr.bf16.mxu0 %v430_v0 }
  0x29   : > { %392 = vmatpush3.bf16.msra.mxu0 %v415_v7 }
  0x2a   : > { %393 = vmatprep.subr.bf16.mxu0 %v430_v0 }
  0x2d   : > { %394 = vmatpush3.bf16.msra.mxu0 %v416_v8 }
  0x30   : > { %396 = vmatmul.mubr.bf16.vlgmr.msra.gmra.mrb[0].mxu0 %v417_v9 }
 0x103   : > { %v251_v10 = vpop.f32.mrb[0].mxu0 }
 0x104   : > { %v397_v11 = vpop.f32.mrb[1].mxu0  ;;  %v259_v12 = vsel %vm258_vm1, %v251_v10, 0.0 }
 0x105   : > { %260 = vadd.xlane.f32.xlu0 %v259_v12  ;;  %v254_v13 = vpop.f32.mrb[2].mxu0 }
 0x106   : > { %v398_v14 = vpop.f32.mrb[3].mxu0  ;;  %v262_v15 = vsel %vm258_vm1, %v254_v13, 0.0 }
 0x109   : > { %263 = vadd.xlane.f32.xlu0 %v262_v15 }
 0x192   : > { %v261_v16 = vpop.xlane.xlu0 %260 }
 0x193   : > { %v265_v17 = vmul.f32 0.0625, %v261_v16 }
 0x195   : > { %v267_v18 = vsub.f32 %v251_v10, %v265_v17 }
 0x196   : > { %v264_v19 = vpop.xlane.xlu0 %263 }
 0x197   : > { %v266_v20 = vmul.f32 0.0625, %v264_v19  ;;  %v269_v21 = vmul.f32 %v267_v18, %v267_v18 }
 0x199   : > { %v268_v22 = vsub.f32 %v254_v13, %v266_v20  ;;  %v271_v23 = vsel %vm258_vm1, %v269_v21, 0.0 }
 0x19a   : > { %272 = vadd.xlane.f32.xlu1 %v271_v23 }
 0x19b   : > { %v270_v24 = vmul.f32 %v268_v22, %v268_v22 }
 0x19d   : > { %v274_v25 = vsel %vm258_vm1, %v270_v24, 0.0 }
 0x19e   : > { %275 = vadd.xlane.f32.xlu1 %v274_v25 }
 0x227   : > { %v273_v26 = vpop.xlane.xlu1 %272 }
 0x228   : > { %v277_v27 = vmul.f32 0.0625, %v273_v26 }
 0x22a   : > { %v279_v28 = vadd.f32 1e-05, %v277_v27 }
 0x22b   : > { %v276_v29 = vpop.xlane.xlu1 %275 }
 0x22c   : > { %418 = vrsqrt.f32 %v279_v28  ;;  %v278_v30 = vmul.f32 0.0625, %v276_v29 }
 0x22e   : > { %v280_v31 = vadd.f32 1e-05, %v278_v30 }
 0x230   : > { %420 = vrsqrt.f32 %v280_v31 }
 0x236   : > { %v419_v32 = vpop.eup %418 }
 0x237   : > { %v283_v33 = vmul.f32 %v419_v32, %v267_v18 }
 0x239   : > { %vm285_vm2 = vcmp.ge.f32.partialorder %v283_v33, 0.0  ;;  %v287_v34 = vmul.f32 0.2, %v283_v33 }
 0x23a   : > { %v421_v35 = vpop.eup %420 }
 0x23b   : > { %v289_v36 = vsel %vm285_vm2, %v283_v33, %v287_v34  ;;  %v284_v37 = vmul.f32 %v421_v35, %v268_v22 }
 0x23c   : > { %291 = vst.msk [vmem:[%s143_s20] sm:$0xff] %vm258_vm1, %v289_v36 }
 0x23d   : > { %vm286_vm3 = vcmp.ge.f32.partialorder %v284_v37, 0.0  ;;  %v288_v38 = vmul.f32 0.2, %v284_v37 }
 0x23f   : > { %v290_v39 = vsel %vm286_vm3, %v284_v37, %v288_v38 }
 0x240   : > { %292 = vst.msk [vmem:[%s143_s20 + $0x8] sm:$0xff] %vm258_vm1, %v290_v39 }
 0x241 PF: > { %s12_s9 = sadd.s32 1, %s428_s9  }
 0x242   : > { %p9_p4 = scmp.ge.s32.totalorder %s12_s9, 4  }
 0x244   :  { %11 = sbr.rel (!%p9_p4) target bundleno = 1 (0x1), region = 58 }

// kernel: cycle_generator_forward.12
= control target key start
LH: loop header
LB: loop body
LE: loop exit
PB: predicated region body
PF: predicated region fallthrough
CT: control target
= control target key end

     0   :  { %s608_s9 = smov 0   ;;  %s671_s0 = inlined_call_operand.vmem [shape: bf16[2,256,4], index: 0, kind: input, shape index: {}]   ;;  %s672_s1 = inlined_call_operand.vmem [shape: bf16[1,32,256], index: 1, kind: input, shape index: {}]   ;;  %s673_s2 = inlined_call_operand.vmem [shape: f32[2,1,32,4], index: 2, kind: output, shape index: {}]  }
   0x1 LB: > { %s470_s10 = sadd.s32 4294967295, %s591_s9   ;;  %p474_p0 = scmp.ge.s32.totalorder %s591_s9, 1  ;;  %s591_s9 = sphi %s608_s9, %s12_s9  }
   0x2   : > { %p112_p1 = scmp.lt.s32.totalorder %s591_s9, 3 }
   0x4   : > { %p113_p2 = pnand %p474_p0, %p112_p1 }
   0x5   : > { %p134_p3 = scmp.lt.s32.totalorder (!%p113_p2), %s470_s10, 1  ;;  %v573_v0 = vld [vmem:[%s672_s1 + $0x4] ss:$8 sps:$4 sm:$0xff] (!%p113_p2)   ;;  %v576_v1 = vld [vmem:[%s672_s1 + $0x14] ss:$8 sps:$4 sm:$0xff] (!%p113_p2)   ;;  %vm346_vm0 = vcmask (!%p113_p2), 31744  }
   0x6   : > { %116 = sbr.rel (%p113_p2) target bundleno = 585 (0x249), region = 28  ;;  %329 = vmatprep.mubr.bf16.mxu0 (!%p113_p2), %v573_v0  ;;  %337 = vmatprep.mubr.bf16.mxu1 (!%p113_p2), %v576_v1  ;;  %v571_v18 = vld [vmem:[%s672_s1] ss:$8 sps:$4 sm:$0xff] (!%p113_p2)   ;;  %v574_v19 = vld [vmem:[%s672_s1 + $0x10] ss:$8 sps:$4 sm:$0xff] (!%p113_p2)  }
   0xd   : > { %s675_s10 = smov (!%p134_p3, %s470_s10), 1 }
   0xe   : > { %s501_s15 = sshll.u32 %s675_s10, 7  ;;  %s502_s23 = sshll.u32 %s675_s10, 5 }
   0xf   : > { %s628_s18 = scalar_lea.vmem %s671_s0, %s501_s15  ;;  %s143_s26 = scalar_lea.vmem %s673_s2, %s502_s23 }
  0x10   : > { %v555_v2 = vld [vmem:[%s628_s18 + $0x40] sm:$0xff]   ;;  %v557_v4 = vld [vmem:[%s628_s18 + $0x48] sm:$0xff]   ;;  %v559_v6 = vld [vmem:[%s628_s18 + $0x50] sm:$0xff]  }
  0x11   : > { %v556_v3 = vld [vmem:[%s628_s18] sm:$0xff]   ;;  %503 = vmatprep.subr.bf16.mxu0 %v555_v2  ;;  %531 = vmatprep.subr.bf16.mxu1 %v555_v2  ;;  %v558_v5 = vld [vmem:[%s628_s18 + $0x8] sm:$0xff]   ;;  %v560_v7 = vld [vmem:[%s628_s18 + $0x10] sm:$0xff]  }
  0x12   : > { %504 = vmatpush3.bf16.msra.mxu0 %v556_v3  ;;  %539 = vmatpush3.bf16.msra.mxu1 %v556_v3  ;;  %v561_v8 = vld [vmem:[%s628_s18 + $0x58] sm:$0xff]   ;;  %v563_v10 = vld [vmem:[%s628_s18 + $0x60] sm:$0xff]   ;;  %v565_v12 = vld [vmem:[%s628_s18 + $0x68] sm:$0xff]  }
  0x13   : > { %505 = vmatprep.subr.bf16.mxu0 %v557_v4  ;;  %532 = vmatprep.subr.bf16.mxu1 %v557_v4  ;;  %v562_v9 = vld [vmem:[%s628_s18 + $0x18] sm:$0xff]   ;;  %v564_v11 = vld [vmem:[%s628_s18 + $0x20] sm:$0xff]   ;;  %v566_v13 = vld [vmem:[%s628_s18 + $0x28] sm:$0xff]  }
  0x14   : > { %v567_v14 = vld [vmem:[%s628_s18 + $0x70] sm:$0xff]   ;;  %v569_v16 = vld [vmem:[%s628_s18 + $0x78] sm:$0xff]  }
  0x15   : > { %v568_v15 = vld [vmem:[%s628_s18 + $0x30] sm:$0xff]   ;;  %v570_v17 = vld [vmem:[%s628_s18 + $0x38] sm:$0xff]  }
  0x16   : > { %506 = vmatpush3.bf16.msra.mxu0 %v558_v5  ;;  %540 = vmatpush3.bf16.msra.mxu1 %v558_v5 }
  0x17   : > { %507 = vmatprep.subr.bf16.mxu0 %v559_v6  ;;  %533 = vmatprep.subr.bf16.mxu1 %v559_v6 }
  0x1a   : > { %508 = vmatpush3.bf16.msra.mxu0 %v560_v7  ;;  %541 = vmatpush3.bf16.msra.mxu1 %v560_v7 }
  0x1b   : > { %509 = vmatprep.subr.bf16.mxu0 %v561_v8  ;;  %534 = vmatprep.subr.bf16.mxu1 %v561_v8 }
  0x1e   : > { %510 = vmatpush3.bf16.msra.mxu0 %v562_v9  ;;  %542 = vmatpush3.bf16.msra.mxu1 %v562_v9 }
  0x1f   : > { %511 = vmatprep.subr.bf16.mxu0 %v563_v10  ;;  %535 = vmatprep.subr.bf16.mxu1 %v563_v10 }
  0x22   : > { %512 = vmatpush3.bf16.msra.mxu0 %v564_v11  ;;  %543 = vmatpush3.bf16.msra.mxu1 %v564_v11 }
  0x23   : > { %513 = vmatprep.subr.bf16.mxu0 %v565_v12  ;;  %536 = vmatprep.subr.bf16.mxu1 %v565_v12 }
  0x26   : > { %514 = vmatpush3.bf16.msra.mxu0 %v566_v13  ;;  %544 = vmatpush3.bf16.msra.mxu1 %v566_v13 }
  0x27   : > { %515 = vmatprep.subr.bf16.mxu0 %v567_v14  ;;  %537 = vmatprep.subr.bf16.mxu1 %v567_v14 }
  0x2a   : > { %516 = vmatpush3.bf16.msra.mxu0 %v568_v15  ;;  %545 = vmatpush3.bf16.msra.mxu1 %v568_v15 }
  0x2b   : > { %517 = vmatprep.subr.bf16.mxu0 %v569_v16  ;;  %538 = vmatprep.subr.bf16.mxu1 %v569_v16 }
  0x2e   : > { %518 = vmatpush3.bf16.msra.mxu0 %v570_v17  ;;  %546 = vmatpush3.bf16.msra.mxu1 %v570_v17 }
  0x31   : > { %330 = vmatmul.mubr.bf16.vlgmr.msra.gmra.mrb[0].mxu0 %v571_v18  ;;  %338 = vmatmul.mubr.bf16.vlgmr.msra.gmra.mrb[0].mxu1 %v574_v19 }
 0x104   : > { %v519_v20 = vpop.f32.mrb[0].mxu0  ;;  %v525_v21 = vpop.f32.mrb[0].mxu1 }
 0x105   : > { %v520_v22 = vpop.f32.mrb[1].mxu0  ;;  %v526_v23 = vpop.f32.mrb[1].mxu1 }
 0x106   : > { %v521_v24 = vadd.f32 %v520_v22, %v519_v20  ;;  %v527_v25 = vadd.f32 %v526_v23, %v525_v21  ;;  %v522_v26 = vpop.f32.mrb[2].mxu0  ;;  %v528_v27 = vpop.f32.mrb[2].mxu1 }
 0x107   : > { %v523_v28 = vpop.f32.mrb[3].mxu0  ;;  %v529_v29 = vpop.f32.mrb[3].mxu1 }
 0x108   : > { %v524_v30 = vadd.f32 %v523_v28, %v522_v26  ;;  %v530_v31 = vadd.f32 %v529_v29, %v528_v27  ;;  %v353_v32 = vsel %vm346_vm0, %v527_v25, 0.0  ;;  %v347_v33 = vsel %vm346_vm0, %v521_v24, 0.0 }
 0x109   : > { %354 = vadd.xlane.f32.xlu1 %v353_v32  ;;  %348 = vadd.xlane.f32.xlu0 %v347_v33 }
 0x10a   : > { %v356_v34 = vsel %vm346_vm0, %v530_v31, 0.0  ;;  %v350_v35 = vsel %vm346_vm0, %v524_v30, 0.0 }
 0x10d   : > { %357 = vadd.xlane.f32.xlu1 %v356_v34  ;;  %351 = vadd.xlane.f32.xlu0 %v350_v35 }
 0x196   : > { %v355_v36 = vpop.xlane.xlu1 %354  ;;  %v349_v37 = vpop.xlane.xlu0 %348 }
 0x197   : > { %v361_v38 = vmul.f32 0.25, %v355_v36  ;;  %v359_v39 = vmul.f32 0.25, %v349_v37 }
 0x199   : > { %v365_v40 = vsub.f32 %v527_v25, %v361_v38  ;;  %v363_v41 = vsub.f32 %v521_v24, %v359_v39 }
 0x19a   : > { %v358_v42 = vpop.xlane.xlu1 %357  ;;  %v352_v43 = vpop.xlane.xlu0 %351 }
 0x19b   : > { %v362_v44 = vmul.f32 0.25, %v358_v42  ;;  %v360_v45 = vmul.f32 0.25, %v352_v43  ;;  %v367_v46 = vmul.f32 %v363_v41, %v363_v41  ;;  %v369_v50 = vmul.f32 %v365_v40, %v365_v40 }
 0x19d   : > { %v366_v47 = vsub.f32 %v530_v31, %v362_v44  ;;  %v364_v48 = vsub.f32 %v524_v30, %v360_v45  ;;  %v371_v49 = vsel %vm346_vm0, %v367_v46, 0.0  ;;  %v377_v52 = vsel %vm346_vm0, %v369_v50, 0.0 }
 0x19e   : > { %372 = vadd.xlane.f32.xlu0 %v371_v49 }
 0x19f   : > { %v368_v51 = vmul.f32 %v364_v48, %v364_v48  ;;  %v370_v54 = vmul.f32 %v366_v47, %v366_v47 }
 0x1a1   : > { %v374_v53 = vsel %vm346_vm0, %v368_v51, 0.0  ;;  %v380_v55 = vsel %vm346_vm0, %v370_v54, 0.0 }
 0x1a2   : > { %378 = vadd.xlane.f32.xlu0 %v377_v52  ;;  %375 = vadd.xlane.f32.xlu1 %v374_v53 }
 0x1a6   : > { %381 = vadd.xlane.f32.xlu1 %v380_v55 }
 0x22b   : > { %v373_v56 = vpop.xlane.xlu0 %372 }
 0x22c   : > { %v383_v57 = vmul.f32 0.25, %v373_v56 }
 0x22e   : > { %v387_v58 = vadd.f32 1e-05, %v383_v57 }
 0x22f   : > { %v376_v59 = vpop.xlane.xlu1 %375  ;;  %v379_v60 = vpop.xlane.xlu0 %378 }
 0x230   : > { %577 = vrsqrt.f32 %v387_v58  ;;  %v384_v61 = vmul.f32 0.25, %v376_v59  ;;  %v385_v62 = vmul.f32 0.25, %v379_v60 }
 0x232   : > { %v388_v63 = vadd.f32 1e-05, %v384_v61  ;;  %v389_v0 = vadd.f32 1e-05, %v385_v62 }
 0x233   : > { %v382_v1 = vpop.xlane.xlu1 %381 }
 0x234   : > { %579 = vrsqrt.f32 %v388_v63  ;;  %v386_v2 = vmul.f32 0.25, %v382_v1 }
 0x235   : > { %581 = vrsqrt.f32 %v389_v0 }
 0x236   : > { %v390_v3 = vadd.f32 1e-05, %v386_v2 }
 0x238   : > { %583 = vrsqrt.f32 %v390_v3 }
 0x23a   : > { %v578_v4 = vpop.eup %577 }
 0x23b   : > { %v395_v5 = vmul.f32 %v578_v4, %v363_v41 }
 0x23d   : > { %vm399_vm1 = vcmp.ge.f32.partialorder %v395_v5, 0.0  ;;  %v403_v6 = vmul.f32 0.2, %v395_v5 }
 0x23e   : > { %v580_v7 = vpop.eup %579 }
 0x23f   : > { %v582_v8 = vpop.eup %581  ;;  %v407_v9 = vsel %vm399_vm1, %v395_v5, %v403_v6  ;;  %v396_v10 = vmul.f32 %v580_v7, %v364_v48 }
 0x240   : > { %411 = vst.msk [vmem:[%s143_s26] sm:$0xff] %vm346_vm0, %v407_v9  ;;  %v397_v11 = vmul.f32 %v582_v8, %v365_v40 }
 0x241   : > { %vm400_vm2 = vcmp.ge.f32.partialorder %v396_v10, 0.0  ;;  %v404_v12 = vmul.f32 0.2, %v396_v10 }
 0x242   : > { %v584_v13 = vpop.eup %583  ;;  %vm401_vm3 = vcmp.ge.f32.partialorder %v397_v11, 0.0  ;;  %v405_v14 = vmul.f32 0.2, %v397_v11 }
 0x243   : > { %v408_v15 = vsel %vm400_vm2, %v396_v10, %v404_v12  ;;  %v398_v16 = vmul.f32 %v584_v13, %v366_v47 }
 0x244   : > { %412 = vst.msk [vmem:[%s143_s26 + $0x8] sm:$0xff] %vm346_vm0, %v408_v15  ;;  %v409_v17 = vsel %vm401_vm3, %v397_v11, %v405_v14 }
 0x245   : > { %413 = vst.msk [vmem:[%s143_s26 + $0x10] sm:$0xff] %vm346_vm0, %v409_v17  ;;  %vm402_vm4 = vcmp.ge.f32.partialorder %v398_v16, 0.0  ;;  %v406_v18 = vmul.f32 0.2, %v398_v16 }
 0x247   : > { %v410_v19 = vsel %vm402_vm4, %v398_v16, %v406_v18 }
 0x248   : > { %414 = vst.msk [vmem:[%s143_s26 + $0x18] sm:$0xff] %vm346_vm0, %v410_v19 }
 0x249 PF: > { %s12_s9 = sadd.s32 1, %s591_s9  }
 0x24a   : > { %p9_p4 = scmp.ge.s32.totalorder %s12_s9, 4  }
 0x24c   :  { %11 = sbr.rel (!%p9_p4) target bundleno = 1 (0x1), region = 58 }

// kernel: cycle_generator_forward.13
= control target key start
LH: loop header
LB: loop body
LE: loop exit
PB: predicated region body
PF: predicated region fallthrough
CT: control target
= control target key end

     0   :  { %s691_s9 = smov 0   ;;  %s764_s0 = inlined_call_operand.vmem [shape: bf16[2,288,4], index: 0, kind: input, shape index: {}]   ;;  %s765_s1 = inlined_call_operand.vmem [shape: bf16[1,32,288], index: 1, kind: input, shape index: {}]   ;;  %s766_s2 = inlined_call_operand.vmem [shape: f32[2,1,32,4], index: 2, kind: output, shape index: {}]  }
   0x1 LB: > { %s548_s10 = sadd.s32 4294967295, %s674_s9   ;;  %p552_p0 = scmp.ge.s32.totalorder %s674_s9, 1  ;;  %s674_s9 = sphi %s691_s9, %s12_s9  }
   0x2   : > { %p112_p1 = scmp.lt.s32.totalorder %s674_s9, 3 }
   0x4   : > { %p113_p2 = pnand %p552_p0, %p112_p1 }
   0x5   : > { %p134_p3 = scmp.lt.s32.totalorder (!%p113_p2), %s548_s10, 1  ;;  %vm327_vm0 = vcmask (!%p113_p2), 261120   ;;  %v654_v0 = vld [vmem:[%s765_s1 + $0x4] ss:$12 sps:$4 sm:$0xff] (!%p113_p2)   ;;  %v655_v1 = vld [vmem:[%s765_s1 + $0x8] ss:$12 sps:$4 sm:$0xff] (!%p113_p2)  }
   0x6   : > { %116 = sbr.rel (%p113_p2) target bundleno = 591 (0x24f), region = 28  ;;  %366 = vmatprep.mubr.bf16.mxu0 (!%p113_p2), %v654_v0  ;;  %621 = vmatprep.mubr.msk.bf16.mxu1 (!%p113_p2), %vm327_vm0, %v655_v1  ;;  %v656_v17 = vld [vmem:[%s765_s1 + $0x20] ss:$12 sps:$4 sm:$0xff] (!%p113_p2)   ;;  %v657_v22 = vld [vmem:[%s765_s1 + $0x1c] ss:$12 sps:$4 sm:$0xff] (!%p113_p2)   ;;  %vm432_vm1 = vcmask (!%p113_p2), 31744  }
   0x7   : > { %v652_v21 = vld [vmem:[%s765_s1] ss:$12 sps:$4 sm:$0xff] (!%p113_p2)   ;;  %v659_v23 = vld [vmem:[%s765_s1 + $0x18] ss:$12 sps:$4 sm:$0xff] (!%p113_p2)  }
   0xd   : > { %s768_s10 = smov (!%p134_p3, %s548_s10), 1 }
   0xe   : > { %s625_s15 = smul.u32 144, %s768_s10  ;;  %s584_s27 = sshll.u32 %s768_s10, 5 }
   0xf   : > { %s143_s30 = scalar_lea.vmem %s766_s2, %s584_s27 }
  0x10   : > { %s712_s18 = scalar_lea.vmem %s764_s0, %s625_s15 }
  0x11   : > { %v634_v2 = vld [vmem:[%s712_s18 + $0x40] sm:$0xff]   ;;  %v636_v4 = vld [vmem:[%s712_s18 + $0x48] sm:$0xff]   ;;  %v638_v6 = vld [vmem:[%s712_s18 + $0x50] sm:$0xff]  }
  0x12   : > { %v635_v3 = vld [vmem:[%s712_s18] sm:$0xff]   ;;  %585 = vmatprep.subr.bf16.mxu0 %v634_v2  ;;  %v637_v5 = vld [vmem:[%s712_s18 + $0x8] sm:$0xff]   ;;  %v639_v7 = vld [vmem:[%s712_s18 + $0x10] sm:$0xff]  }
  0x13   : > { %586 = vmatpush3.bf16.msra.mxu0 %v635_v3  ;;  %v640_v8 = vld [vmem:[%s712_s18 + $0x58] sm:$0xff]   ;;  %v642_v10 = vld [vmem:[%s712_s18 + $0x60] sm:$0xff]   ;;  %v644_v13 = vld [vmem:[%s712_s18 + $0x68] sm:$0xff]  }
  0x14   : > { %587 = vmatprep.subr.bf16.mxu0 %v636_v4  ;;  %v641_v9 = vld [vmem:[%s712_s18 + $0x18] sm:$0xff]   ;;  %v648_v11 = vld [vmem:[%s712_s18 + $0x80] sm:$0xff]   ;;  %v651_v14 = vld [vmem:[%s712_s18 + $0x88] sm:$0xff]  }
  0x15   : > { %v643_v12 = vld [vmem:[%s712_s18 + $0x20] sm:$0xff]   ;;  %617 = vmatprep.subr.bf16.mxu1 %v648_v11  ;;  %v645_v15 = vld [vmem:[%s712_s18 + $0x28] sm:$0xff]   ;;  %v646_v16 = vld [vmem:[%s712_s18 + $0x70] sm:$0xff]  }
  0x16   : > { %618 = vmatpush3.bf16.msra.mxu1 %v648_v11  ;;  %v647_v18 = vld [vmem:[%s712_s18 + $0x30] sm:$0xff]   ;;  %v649_v19 = vld [vmem:[%s712_s18 + $0x78] sm:$0xff]  }
  0x17   : > { %588 = vmatpush3.bf16.msra.mxu0 %v637_v5  ;;  %619 = vmatprep.subr.bf16.mxu1 %v651_v14  ;;  %v650_v20 = vld [vmem:[%s712_s18 + $0x38] sm:$0xff]  }
  0x18   : > { %589 = vmatprep.subr.bf16.mxu0 %v638_v6 }
  0x1a   : > { %620 = vmatpush3.bf16.msra.mxu1 %v651_v14 }
  0x1b   : > { %590 = vmatpush3.bf16.msra.mxu0 %v639_v7 }
  0x1c   : > { %591 = vmatprep.subr.bf16.mxu0 %v640_v8 }
  0x1d   : > { %622 = vmatmul.mubr.msk.bf16.vlgmr.msra.gmra.mrb[0].mxu1 %vm327_vm0, %v656_v17 }
  0x1f   : > { %592 = vmatpush3.bf16.msra.mxu0 %v641_v9 }
  0x20   : > { %593 = vmatprep.subr.bf16.mxu0 %v642_v10 }
  0x23   : > { %594 = vmatpush3.bf16.msra.mxu0 %v643_v12 }
  0x24   : > { %595 = vmatprep.subr.bf16.mxu0 %v644_v13 }
  0x27   : > { %596 = vmatpush3.bf16.msra.mxu0 %v645_v15 }
  0x28   : > { %597 = vmatprep.subr.bf16.mxu0 %v646_v16 }
  0x2b   : > { %598 = vmatpush3.bf16.msra.mxu0 %v647_v18 }
  0x2c   : > { %599 = vmatprep.subr.bf16.mxu0 %v649_v19 }
  0x2f   : > { %600 = vmatpush3.bf16.msra.mxu0 %v650_v20 }
  0x32   : > { %367 = vmatmul.mubr.bf16.vlgmr.msra.gmra.mrb[0].mxu0 %v652_v21 }
  0x33   : > { %374 = vmatprep.mubr.bf16.mxu0 %v657_v22 }
  0x3a   : > { %375 = vmatmul.mubr.bf16.gmra.mrb[4].mxu0 %v659_v23 }
  0xf0   : > { %v623_v24 = vpop.f32.mrb[0].mxu1 }
  0xf1   : > { %v417_v25 = vpop.f32.mrb[1].mxu1 }
  0xf2   : > { %v624_v26 = vpop.f32.mrb[2].mxu1 }
  0xf3   : > { %v420_v27 = vpop.f32.mrb[3].mxu1 }
 0x105   : > { %v601_v28 = vpop.f32.mrb[0].mxu0 }
 0x106   : > { %v602_v29 = vpop.f32.mrb[1].mxu0 }
 0x107   : > { %v603_v30 = vadd.f32 %v602_v29, %v601_v28  ;;  %v604_v31 = vpop.f32.mrb[2].mxu0 }
 0x108   : > { %v605_v32 = vpop.f32.mrb[3].mxu0 }
 0x109   : > { %v606_v33 = vadd.f32 %v605_v32, %v604_v31  ;;  %v418_v34 = vadd.f32 %v603_v30, %v417_v25 }
 0x10b   : > { %v421_v35 = vadd.f32 %v606_v33, %v420_v27  ;;  %v433_v36 = vsel %vm432_vm1, %v418_v34, 0.0 }
 0x10c   : > { %434 = vadd.xlane.f32.xlu0 %v433_v36 }
 0x10d   : > { %v607_v37 = vpop.f32.mrb[4].mxu0  ;;  %v436_v41 = vsel %vm432_vm1, %v421_v35, 0.0 }
 0x10e   : > { %v608_v38 = vpop.f32.mrb[5].mxu0 }
 0x10f   : > { %v609_v39 = vadd.f32 %v608_v38, %v607_v37  ;;  %v610_v40 = vpop.f32.mrb[6].mxu0 }
 0x110   : > { %v611_v42 = vpop.f32.mrb[7].mxu0  ;;  %437 = vadd.xlane.f32.xlu0 %v436_v41 }
 0x111   : > { %v612_v43 = vadd.f32 %v611_v42, %v610_v40  ;;  %v426_v44 = vadd.f32 %v623_v24, %v609_v39 }
 0x113   : > { %v439_v45 = vsel %vm432_vm1, %v426_v44, 0.0  ;;  %v429_v46 = vadd.f32 %v624_v26, %v612_v43 }
 0x114   : > { %440 = vadd.xlane.f32.xlu1 %v439_v45 }
 0x115   : > { %v442_v47 = vsel %vm432_vm1, %v429_v46, 0.0 }
 0x118   : > { %443 = vadd.xlane.f32.xlu1 %v442_v47 }
 0x199   : > { %v435_v48 = vpop.xlane.xlu0 %434 }
 0x19a   : > { %v445_v49 = vmul.f32 0.25, %v435_v48 }
 0x19c   : > { %v449_v50 = vsub.f32 %v418_v34, %v445_v49 }
 0x19d   : > { %v438_v51 = vpop.xlane.xlu0 %437 }
 0x19e   : > { %v446_v52 = vmul.f32 0.25, %v438_v51  ;;  %v453_v53 = vmul.f32 %v449_v50, %v449_v50 }
 0x1a0   : > { %v450_v54 = vsub.f32 %v421_v35, %v446_v52  ;;  %v457_v55 = vsel %vm432_vm1, %v453_v53, 0.0 }
 0x1a1   : > { %v441_v56 = vpop.xlane.xlu1 %440  ;;  %458 = vadd.xlane.f32.xlu0 %v457_v55 }
 0x1a2   : > { %v447_v57 = vmul.f32 0.25, %v441_v56  ;;  %v454_v58 = vmul.f32 %v450_v54, %v450_v54 }
 0x1a4   : > { %v451_v59 = vsub.f32 %v426_v44, %v447_v57  ;;  %v460_v60 = vsel %vm432_vm1, %v454_v58, 0.0 }
 0x1a5   : > { %v444_v61 = vpop.xlane.xlu1 %443  ;;  %461 = vadd.xlane.f32.xlu1 %v460_v60 }
 0x1a6   : > { %v448_v62 = vmul.f32 0.25, %v444_v61  ;;  %v455_v63 = vmul.f32 %v451_v59, %v451_v59 }
 0x1a8   : > { %v452_v0 = vsub.f32 %v429_v46, %v448_v62  ;;  %v463_v1 = vsel %vm432_vm1, %v455_v63, 0.0 }
 0x1a9   : > { %464 = vadd.xlane.f32.xlu0 %v463_v1 }
 0x1aa   : > { %v456_v2 = vmul.f32 %v452_v0, %v452_v0 }
 0x1ac   : > { %v466_v3 = vsel %vm432_vm1, %v456_v2, 0.0 }
 0x1ad   : > { %467 = vadd.xlane.f32.xlu1 %v466_v3 }
 0x22e   : > { %v459_v4 = vpop.xlane.xlu0 %458 }
 0x22f   : > { %v469_v5 = vmul.f32 0.25, %v459_v4 }
 0x231   : > { %v473_v6 = vadd.f32 1e-05, %v469_v5 }
 0x232   : > { %v462_v7 = vpop.xlane.xlu1 %461 }
 0x233   : > { %660 = vrsqrt.f32 %v473_v6  ;;  %v470_v8 = vmul.f32 0.25, %v462_v7 }
 0x235   : > { %v474_v9 = vadd.f32 1e-05, %v470_v8 }
 0x236   : > { %v465_v10 = vpop.xlane.xlu0 %464 }
 0x237   : > { %662 = vrsqrt.f32 %v474_v9  ;;  %v471_v11 = vmul.f32 0.25, %v465_v10 }
 0x239   : > { %v475_v12 = vadd.f32 1e-05, %v471_v11 }
 0x23a   : > { %v468_v13 = vpop.xlane.xlu1 %467 }
 0x23b   : > { %664 = vrsqrt.f32 %v475_v12  ;;  %v472_v14 = vmul.f32 0.25, %v468_v13 }
 0x23d   : > { %v661_v15 = vpop.eup %660  ;;  %v476_v16 = vadd.f32 1e-05, %v472_v14 }
 0x23e   : > { %v481_v17 = vmul.f32 %v661_v15, %v449_v50 }
 0x23f   : > { %666 = vrsqrt.f32 %v476_v16 }
 0x240   : > { %v485_v18 = vmax.f32 %v481_v17, 0.0 }
 0x241   : > { %v663_v19 = vpop.eup %662 }
 0x242   : > { %489 = vst.msk [vmem:[%s143_s30] sm:$0xff] %vm432_vm1, %v485_v18  ;;  %v482_v20 = vmul.f32 %v663_v19, %v450_v54 }
 0x244   : > { %v486_v21 = vmax.f32 %v482_v20, 0.0 }
 0x245   : > { %v665_v22 = vpop.eup %664 }
 0x246   : > { %490 = vst.msk [vmem:[%s143_s30 + $0x8] sm:$0xff] %vm432_vm1, %v486_v21  ;;  %v483_v23 = vmul.f32 %v665_v22, %v451_v59 }
 0x248   : > { %v487_v24 = vmax.f32 %v483_v23, 0.0 }
 0x249   : > { %v667_v25 = vpop.eup %666 }
 0x24a   : > { %491 = vst.msk [vmem:[%s143_s30 + $0x10] sm:$0xff] %vm432_vm1, %v487_v24  ;;  %v484_v26 = vmul.f32 %v667_v25, %v452_v0 }
 0x24c   : > { %v488_v27 = vmax.f32 %v484_v26, 0.0 }
 0x24e   : > { %492 = vst.msk [vmem:[%s143_s30 + $0x18] sm:$0xff] %vm432_vm1, %v488_v27 }
 0x24f PF: > { %s12_s9 = sadd.s32 1, %s674_s9  }
 0x250   : > { %p9_p4 = scmp.ge.s32.totalorder %s12_s9, 4  }
 0x252   :  { %11 = sbr.rel (!%p9_p4) target bundleno = 1 (0x1), region = 58 }

// kernel: cycle_generator_forward.14
= control target key start
LH: loop header
LB: loop body
LE: loop exit
PB: predicated region body
PF: predicated region fallthrough
CT: control target
= control target key end

     0   :  { %s762_s12 = smov 0   ;;  %s838_s0 = inlined_call_operand.vmem [shape: bf16[2,288,4], index: 0, kind: input, shape index: {}]   ;;  %s839_s1 = inlined_call_operand.vmem [shape: bf16[1,32,288], index: 1, kind: input, shape index: {}]   ;;  %s840_s2 = inlined_call_operand.vmem [shape: f32[2,32,4], index: 2, kind: input, shape index: {}]   ;;  %s841_s3 = inlined_call_operand.vmem [shape: f32[2,1,32,4], index: 3, kind: output, shape index: {}]  }
   0x1 LB: > { %s611_s13 = sadd.s32 4294967295, %s740_s12   ;;  %p615_p0 = scmp.ge.s32.totalorder %s740_s12, 1  ;;  %s740_s12 = sphi %s762_s12, %s13_s12  }
   0x2   : > { %p147_p1 = scmp.lt.s32.totalorder %s740_s12, 3 }
   0x4   : > { %p148_p2 = pnand %p615_p0, %p147_p1 }
   0x5   : > { %p176_p3 = scmp.lt.s32.totalorder (!%p148_p2), %s611_s13, 1  ;;  %vm374_vm0 = vcmask (!%p148_p2), 261120   ;;  %v720_v0 = vld [vmem:[%s839_s1 + $0x4] ss:$12 sps:$4 sm:$0xff] (!%p148_p2)   ;;  %v721_v1 = vld [vmem:[%s839_s1 + $0x8] ss:$12 sps:$4 sm:$0xff] (!%p148_p2)  }
   0x6   : > { %151 = sbr.rel (%p148_p2) target bundleno = 591 (0x24f), region = 32  ;;  %413 = vmatprep.mubr.bf16.mxu0 (!%p148_p2), %v720_v0  ;;  %687 = vmatprep.mubr.msk.bf16.mxu1 (!%p148_p2), %vm374_vm0, %v721_v1  ;;  %v722_v17 = vld [vmem:[%s839_s1 + $0x20] ss:$12 sps:$4 sm:$0xff] (!%p148_p2)   ;;  %v723_v22 = vld [vmem:[%s839_s1 + $0x1c] ss:$12 sps:$4 sm:$0xff] (!%p148_p2)   ;;  %vm479_vm1 = vcmask (!%p148_p2), 31744  }
   0x7   : > { %v718_v21 = vld [vmem:[%s839_s1] ss:$12 sps:$4 sm:$0xff] (!%p148_p2)   ;;  %v725_v23 = vld [vmem:[%s839_s1 + $0x18] ss:$12 sps:$4 sm:$0xff] (!%p148_p2)  }
   0xd   : > { %s843_s13 = smov (!%p176_p3, %s611_s13), 1 }
   0xe   : > { %s691_s18 = smul.u32 144, %s843_s13  ;;  %s649_s30 = sshll.u32 %s843_s13, 5 }
   0xf   : > { %s185_s6 = scalar_lea.vmem %s840_s2, %s649_s30  ;;  %s190_s9 = scalar_lea.vmem %s841_s3, %s649_s30 }
  0x10   : > { %s783_s21 = scalar_lea.vmem %s838_s0, %s691_s18 }
  0x11   : > { %v700_v2 = vld [vmem:[%s783_s21 + $0x40] sm:$0xff]   ;;  %v702_v4 = vld [vmem:[%s783_s21 + $0x48] sm:$0xff]   ;;  %v704_v6 = vld [vmem:[%s783_s21 + $0x50] sm:$0xff]  }
  0x12   : > { %v701_v3 = vld [vmem:[%s783_s21] sm:$0xff]   ;;  %651 = vmatprep.subr.bf16.mxu0 %v700_v2  ;;  %v703_v5 = vld [vmem:[%s783_s21 + $0x8] sm:$0xff]   ;;  %v705_v7 = vld [vmem:[%s783_s21 + $0x10] sm:$0xff]  }
  0x13   : > { %652 = vmatpush3.bf16.msra.mxu0 %v701_v3  ;;  %v706_v8 = vld [vmem:[%s783_s21 + $0x58] sm:$0xff]   ;;  %v708_v10 = vld [vmem:[%s783_s21 + $0x60] sm:$0xff]   ;;  %v710_v13 = vld [vmem:[%s783_s21 + $0x68] sm:$0xff]  }
  0x14   : > { %653 = vmatprep.subr.bf16.mxu0 %v702_v4  ;;  %v707_v9 = vld [vmem:[%s783_s21 + $0x18] sm:$0xff]   ;;  %v714_v11 = vld [vmem:[%s783_s21 + $0x80] sm:$0xff]   ;;  %v717_v14 = vld [vmem:[%s783_s21 + $0x88] sm:$0xff]  }
  0x15   : > { %v709_v12 = vld [vmem:[%s783_s21 + $0x20] sm:$0xff]   ;;  %683 = vmatprep.subr.bf16.mxu1 %v714_v11  ;;  %v711_v15 = vld [vmem:[%s783_s21 + $0x28] sm:$0xff]   ;;  %v712_v16 = vld [vmem:[%s783_s21 + $0x70] sm:$0xff]  }
  0x16   : > { %684 = vmatpush3.bf16.msra.mxu1 %v714_v11  ;;  %v713_v18 = vld [vmem:[%s783_s21 + $0x30] sm:$0xff]   ;;  %v715_v19 = vld [vmem:[%s783_s21 + $0x78] sm:$0xff]  }
  0x17   : > { %654 = vmatpush3.bf16.msra.mxu0 %v703_v5  ;;  %685 = vmatprep.subr.bf16.mxu1 %v717_v14  ;;  %v716_v20 = vld [vmem:[%s783_s21 + $0x38] sm:$0xff]  }
  0x18   : > { %655 = vmatprep.subr.bf16.mxu0 %v704_v6 }
  0x1a   : > { %686 = vmatpush3.bf16.msra.mxu1 %v717_v14 }
  0x1b   : > { %656 = vmatpush3.bf16.msra.mxu0 %v705_v7 }
  0x1c   : > { %657 = vmatprep.subr.bf16.mxu0 %v706_v8 }
  0x1d   : > { %688 = vmatmul.mubr.msk.bf16.vlgmr.msra.gmra.mrb[0].mxu1 %vm374_vm0, %v722_v17 }
  0x1f   : > { %658 = vmatpush3.bf16.msra.mxu0 %v707_v9 }
  0x20   : > { %659 = vmatprep.subr.bf16.mxu0 %v708_v10 }
  0x23   : > { %660 = vmatpush3.bf16.msra.mxu0 %v709_v12 }
  0x24   : > { %661 = vmatprep.subr.bf16.mxu0 %v710_v13 }
  0x27   : > { %662 = vmatpush3.bf16.msra.mxu0 %v711_v15 }
  0x28   : > { %663 = vmatprep.subr.bf16.mxu0 %v712_v16  ;;  %v532_v16 = vld [vmem:[%s185_s6] sm:$0xff] }
  0x2b   : > { %664 = vmatpush3.bf16.msra.mxu0 %v713_v18 }
  0x2c   : > { %665 = vmatprep.subr.bf16.mxu0 %v715_v19 }
  0x2f   : > { %666 = vmatpush3.bf16.msra.mxu0 %v716_v20 }
  0x32   : > { %414 = vmatmul.mubr.bf16.vlgmr.msra.gmra.mrb[0].mxu0 %v718_v21  ;;  %v533_v21 = vld [vmem:[%s185_s6 + $0x8] sm:$0xff] }
  0x33   : > { %421 = vmatprep.mubr.bf16.mxu0 %v723_v22 }
  0x3a   : > { %422 = vmatmul.mubr.bf16.gmra.mrb[4].mxu0 %v725_v23 }
  0xf0   : > { %v689_v24 = vpop.f32.mrb[0].mxu1 }
  0xf1   : > { %v464_v25 = vpop.f32.mrb[1].mxu1 }
  0xf2   : > { %v690_v26 = vpop.f32.mrb[2].mxu1 }
  0xf3   : > { %v467_v27 = vpop.f32.mrb[3].mxu1 }
 0x105   : > { %v667_v28 = vpop.f32.mrb[0].mxu0 }
 0x106   : > { %v668_v29 = vpop.f32.mrb[1].mxu0 }
 0x107   : > { %v669_v30 = vadd.f32 %v668_v29, %v667_v28  ;;  %v670_v31 = vpop.f32.mrb[2].mxu0  ;;  %v535_v29 = vld [vmem:[%s185_s6 + $0x18] sm:$0xff] }
 0x108   : > { %v671_v32 = vpop.f32.mrb[3].mxu0 }
 0x109   : > { %v672_v33 = vadd.f32 %v671_v32, %v670_v31  ;;  %v465_v34 = vadd.f32 %v669_v30, %v464_v25  ;;  %v534_v25 = vld [vmem:[%s185_s6 + $0x10] sm:$0xff] }
 0x10b   : > { %v468_v35 = vadd.f32 %v672_v33, %v467_v27  ;;  %v480_v36 = vsel %vm479_vm1, %v465_v34, 0.0 }
 0x10c   : > { %481 = vadd.xlane.f32.xlu0 %v480_v36 }
 0x10d   : > { %v673_v37 = vpop.f32.mrb[4].mxu0  ;;  %v483_v41 = vsel %vm479_vm1, %v468_v35, 0.0 }
 0x10e   : > { %v674_v38 = vpop.f32.mrb[5].mxu0 }
 0x10f   : > { %v675_v39 = vadd.f32 %v674_v38, %v673_v37  ;;  %v676_v40 = vpop.f32.mrb[6].mxu0 }
 0x110   : > { %v677_v42 = vpop.f32.mrb[7].mxu0  ;;  %484 = vadd.xlane.f32.xlu0 %v483_v41 }
 0x111   : > { %v678_v43 = vadd.f32 %v677_v42, %v676_v40  ;;  %v473_v44 = vadd.f32 %v689_v24, %v675_v39 }
 0x113   : > { %v486_v45 = vsel %vm479_vm1, %v473_v44, 0.0  ;;  %v476_v46 = vadd.f32 %v690_v26, %v678_v43 }
 0x114   : > { %487 = vadd.xlane.f32.xlu1 %v486_v45 }
 0x115   : > { %v489_v47 = vsel %vm479_vm1, %v476_v46, 0.0 }
 0x118   : > { %490 = vadd.xlane.f32.xlu1 %v489_v47 }
 0x199   : > { %v482_v48 = vpop.xlane.xlu0 %481 }
 0x19a   : > { %v492_v49 = vmul.f32 0.25, %v482_v48 }
 0x19c   : > { %v496_v50 = vsub.f32 %v465_v34, %v492_v49 }
 0x19d   : > { %v485_v51 = vpop.xlane.xlu0 %484 }
 0x19e   : > { %v493_v52 = vmul.f32 0.25, %v485_v51  ;;  %v500_v53 = vmul.f32 %v496_v50, %v496_v50 }
 0x1a0   : > { %v497_v54 = vsub.f32 %v468_v35, %v493_v52  ;;  %v504_v55 = vsel %vm479_vm1, %v500_v53, 0.0 }
 0x1a1   : > { %v488_v56 = vpop.xlane.xlu1 %487  ;;  %505 = vadd.xlane.f32.xlu0 %v504_v55 }
 0x1a2   : > { %v494_v57 = vmul.f32 0.25, %v488_v56  ;;  %v501_v58 = vmul.f32 %v497_v54, %v497_v54 }
 0x1a4   : > { %v498_v59 = vsub.f32 %v473_v44, %v494_v57  ;;  %v507_v60 = vsel %vm479_vm1, %v501_v58, 0.0 }
 0x1a5   : > { %v491_v61 = vpop.xlane.xlu1 %490  ;;  %508 = vadd.xlane.f32.xlu1 %v507_v60 }
 0x1a6   : > { %v495_v62 = vmul.f32 0.25, %v491_v61  ;;  %v502_v63 = vmul.f32 %v498_v59, %v498_v59 }
 0x1a8   : > { %v499_v0 = vsub.f32 %v476_v46, %v495_v62  ;;  %v510_v1 = vsel %vm479_vm1, %v502_v63, 0.0 }
 0x1a9   : > { %511 = vadd.xlane.f32.xlu0 %v510_v1 }
 0x1aa   : > { %v503_v2 = vmul.f32 %v499_v0, %v499_v0 }
 0x1ac   : > { %v513_v3 = vsel %vm479_vm1, %v503_v2, 0.0 }
 0x1ad   : > { %514 = vadd.xlane.f32.xlu1 %v513_v3 }
 0x22e   : > { %v506_v4 = vpop.xlane.xlu0 %505 }
 0x22f   : > { %v516_v5 = vmul.f32 0.25, %v506_v4 }
 0x231   : > { %v520_v6 = vadd.f32 1e-05, %v516_v5 }
 0x232   : > { %v509_v7 = vpop.xlane.xlu1 %508 }
 0x233   : > { %726 = vrsqrt.f32 %v520_v6  ;;  %v517_v8 = vmul.f32 0.25, %v509_v7 }
 0x235   : > { %v521_v9 = vadd.f32 1e-05, %v517_v8 }
 0x236   : > { %v512_v10 = vpop.xlane.xlu0 %511 }
 0x237   : > { %728 = vrsqrt.f32 %v521_v9  ;;  %v518_v11 = vmul.f32 0.25, %v512_v10 }
 0x239   : > { %v522_v12 = vadd.f32 1e-05, %v518_v11 }
 0x23a   : > { %v515_v13 = vpop.xlane.xlu1 %514 }
 0x23b   : > { %730 = vrsqrt.f32 %v522_v12  ;;  %v519_v14 = vmul.f32 0.25, %v515_v13 }
 0x23d   : > { %v727_v15 = vpop.eup %726  ;;  %v523_v17 = vadd.f32 1e-05, %v519_v14 }
 0x23e   : > { %v528_v18 = vmul.f32 %v727_v15, %v496_v50 }
 0x23f   : > { %732 = vrsqrt.f32 %v523_v17 }
 0x240   : > { %v536_v19 = vadd.f32 %v532_v16, %v528_v18 }
 0x241   : > { %v729_v20 = vpop.eup %728 }
 0x242   : > { %540 = vst.msk [vmem:[%s190_s9] sm:$0xff] %vm479_vm1, %v536_v19  ;;  %v529_v22 = vmul.f32 %v729_v20, %v497_v54 }
 0x244   : > { %v537_v23 = vadd.f32 %v533_v21, %v529_v22 }
 0x245   : > { %v731_v24 = vpop.eup %730 }
 0x246   : > { %541 = vst.msk [vmem:[%s190_s9 + $0x8] sm:$0xff] %vm479_vm1, %v537_v23  ;;  %v530_v26 = vmul.f32 %v731_v24, %v498_v59 }
 0x248   : > { %v538_v27 = vadd.f32 %v534_v25, %v530_v26 }
 0x249   : > { %v733_v28 = vpop.eup %732 }
 0x24a   : > { %542 = vst.msk [vmem:[%s190_s9 + $0x10] sm:$0xff] %vm479_vm1, %v538_v27  ;;  %v531_v30 = vmul.f32 %v733_v28, %v499_v0 }
 0x24c   : > { %v539_v31 = vadd.f32 %v535_v29, %v531_v30 }
 0x24e   : > { %543 = vst.msk [vmem:[%s190_s9 + $0x18] sm:$0xff] %vm479_vm1, %v539_v31 }
 0x24f PF: > { %s13_s12 = sadd.s32 1, %s740_s12  }
 0x250   : > { %p10_p4 = scmp.ge.s32.totalorder %s13_s12, 4  }
 0x252   :  { %12 = sbr.rel (!%p10_p4) target bundleno = 1 (0x1), region = 65 }

// kernel: cycle_generator_forward.17
= control target key start
LH: loop header
LB: loop body
LE: loop exit
PB: predicated region body
PF: predicated region fallthrough
CT: control target
= control target key end

     0   :  { %s1161_s9 = smov 0   ;;  %s1423_s0 = inlined_call_operand.vmem [shape: bf16[2,288,4], index: 0, kind: input, shape index: {}]   ;;  %s1424_s1 = inlined_call_operand.vmem [shape: bf16[4,16,288], index: 1, kind: input, shape index: {}]   ;;  %s1425_s2 = inlined_call_operand.vmem [shape: f32[2,4,16,4], index: 2, kind: output, shape index: {}]  }
   0x1 LB: > { %s892_s10 = sadd.s32 4294967295, %s1142_s9   ;;  %p896_p0 = scmp.ge.s32.totalorder %s1142_s9, 1  ;;  %s1142_s9 = sphi %s1161_s9, %s12_s9  }
   0x2   : > { %p112_p1 = scmp.lt.s32.totalorder %s1142_s9, 3 }
   0x4   : > { %p113_p2 = pnand %p896_p0, %p112_p1 }
   0x5   : > { %p134_p3 = scmp.lt.s32.totalorder (!%p113_p2), %s892_s10, 1  ;;  %v1144_v0 = vmov (!%p113_p2), 0.0   ;;  %vm1145_vm0 = vmmov (!%p113_p2), 0   ;;  %v1119_v1 = vld [vmem:[%s1424_s1 + $0x4] ss:$12 sps:$4 sm:$0xff] (!%p113_p2)   ;;  %vm308_vm1 = vcmask (!%p113_p2), 261120  }
   0x6   : > { %116 = sbr.rel (%p113_p2) target bundleno = 650 (0x28a), region = 28  ;;  %1055 = vmatprep.subr.bf16.mxu1 (!%p113_p2), %v1144_v0  ;;  %1059 = vmatprep.mubr.msk.bf16.mxu1 (!%p113_p2), %vm1145_vm0, %v1144_v0  ;;  %v1104_v7 = vld [vmem:[%s1424_s1 + $0x8] ss:$12 sps:$4 sm:$0xff] (!%p113_p2)   ;;  %v1117_v22 = vld [vmem:[%s1424_s1] ss:$12 sps:$4 sm:$0xff] (!%p113_p2)   ;;  %vm709_vm2 = vcmask (!%p113_p2), 31744  }
   0x7   : > { %344 = vmatprep.mubr.bf16.mxu0 (!%p113_p2), %v1119_v1  ;;  %v1122_v10 = vld [vmem:[%s1424_s1 + $0x1c] ss:$12 sps:$4 sm:$0xff] (!%p113_p2)   ;;  %v1120_v23 = vld [vmem:[%s1424_s1 + $0x18] ss:$12 sps:$4 sm:$0xff] (!%p113_p2)   ;;  %v1123_v24 = vld [vmem:[%s1424_s1 + $0x20] ss:$12 sps:$4 sm:$0xff] (!%p113_p2)  }
   0x8   : > { %v1127_v25 = vld [vmem:[%s1424_s1 + $0x34] ss:$12 sps:$4 sm:$0xff] (!%p113_p2)   ;;  %v1124_v26 = vld [vmem:[%s1424_s1 + $0x38] ss:$12 sps:$4 sm:$0xff] (!%p113_p2)   ;;  %v1125_v28 = vld [vmem:[%s1424_s1 + $0x30] ss:$12 sps:$4 sm:$0xff] (!%p113_p2)  }
   0x9   : > { %v1130_v27 = vld [vmem:[%s1424_s1 + $0x4c] ss:$12 sps:$4 sm:$0xff] (!%p113_p2)   ;;  %v1128_v29 = vld [vmem:[%s1424_s1 + $0x48] ss:$12 sps:$4 sm:$0xff] (!%p113_p2)   ;;  %v1131_v30 = vld [vmem:[%s1424_s1 + $0x50] ss:$12 sps:$4 sm:$0xff] (!%p113_p2)  }
   0xd   : > { %s1427_s10 = smov (!%p134_p3, %s892_s10), 1 }
   0xe   : > { %s1087_s13 = smul.u32 144, %s1427_s10 }
  0x10   : > { %s1181_s16 = scalar_lea.vmem %s1423_s0, %s1087_s13  ;;  %s954_s13 = sshll.u32 %s1427_s10, 6 }
  0x11   : > { %v1184_v2 = vld [vmem:[%s1181_s16 + $0x40] sm:$0xff]   ;;  %v1195_v5 = vld [vmem:[%s1181_s16 + $0x48] sm:$0xff]   ;;  %v1210_v9 = vld [vmem:[%s1181_s16 + $0x50] sm:$0xff]  }
  0x12   : > { %v1187_v3 = vld [vmem:[%s1181_s16 + $0x80] sm:$0xff]   ;;  %955 = vmatprep.subr.bf16.mxu0 %v1184_v2  ;;  %v1200_v6 = vld [vmem:[%s1181_s16 + $0x88] sm:$0xff]   ;;  %v1219_v11 = vld [vmem:[%s1181_s16 + $0x10] sm:$0xff]  }
  0x13   : > { %v1191_v4 = vld [vmem:[%s1181_s16] sm:$0xff]   ;;  %1056 = vmatpush3.bf16.msra.mxu1 %v1187_v3  ;;  %v1207_v8 = vld [vmem:[%s1181_s16 + $0x8] sm:$0xff]   ;;  %v1223_v12 = vld [vmem:[%s1181_s16 + $0x58] sm:$0xff]  }
  0x14   : > { %956 = vmatpush3.bf16.msra.mxu0 %v1191_v4  ;;  %1057 = vmatprep.subr.bf16.mxu1 %v1144_v0  ;;  %v1230_v13 = vld [vmem:[%s1181_s16 + $0x18] sm:$0xff]   ;;  %v1234_v14 = vld [vmem:[%s1181_s16 + $0x60] sm:$0xff]   ;;  %v1244_v16 = vld [vmem:[%s1181_s16 + $0x68] sm:$0xff]  }
  0x15   : > { %957 = vmatprep.subr.bf16.mxu0 %v1195_v5  ;;  %v1240_v15 = vld [vmem:[%s1181_s16 + $0x20] sm:$0xff]   ;;  %v1250_v17 = vld [vmem:[%s1181_s16 + $0x28] sm:$0xff]   ;;  %v1254_v18 = vld [vmem:[%s1181_s16 + $0x70] sm:$0xff]  }
  0x16   : > { %v1260_v19 = vld [vmem:[%s1181_s16 + $0x30] sm:$0xff]   ;;  %v1264_v20 = vld [vmem:[%s1181_s16 + $0x78] sm:$0xff]  }
  0x17   : > { %1058 = vmatpush3.bf16.msra.mxu1 %v1200_v6  ;;  %v1270_v21 = vld [vmem:[%s1181_s16 + $0x38] sm:$0xff]   ;;  %s1399_s16 = scalar_lea.vmem %s1425_s2, %s954_s13 }
  0x18   : > { %958 = vmatpush3.bf16.msra.mxu0 %v1207_v8  ;;  %980 = vmatprep.subr.bf16.mxu1 %v1184_v2 }
  0x19   : > { %959 = vmatprep.subr.bf16.mxu0 %v1210_v9 }
  0x1a   : > { %1060 = vmatmul.mubr.msk.bf16.vlgmr.msra.gmra.mrb[0].mxu1 %vm308_vm1, %v1104_v7 }
  0x1b   : > { %981 = vmatpush3.bf16.msra.mxu1 %v1191_v4  ;;  %449 = vmatprep.mubr.bf16.mxu1 %v1122_v10 }
  0x1c   : > { %960 = vmatpush3.bf16.msra.mxu0 %v1219_v11  ;;  %982 = vmatprep.subr.bf16.mxu1 %v1195_v5 }
  0x1d   : > { %961 = vmatprep.subr.bf16.mxu0 %v1223_v12 }
  0x1f   : > { %983 = vmatpush3.bf16.msra.mxu1 %v1207_v8 }
  0x20   : > { %962 = vmatpush3.bf16.msra.mxu0 %v1230_v13  ;;  %984 = vmatprep.subr.bf16.mxu1 %v1210_v9 }
  0x21   : > { %963 = vmatprep.subr.bf16.mxu0 %v1234_v14 }
  0x23   : > { %985 = vmatpush3.bf16.msra.mxu1 %v1219_v11 }
  0x24   : > { %964 = vmatpush3.bf16.msra.mxu0 %v1240_v15  ;;  %986 = vmatprep.subr.bf16.mxu1 %v1223_v12 }
  0x25   : > { %965 = vmatprep.subr.bf16.mxu0 %v1244_v16 }
  0x27   : > { %987 = vmatpush3.bf16.msra.mxu1 %v1230_v13 }
  0x28   : > { %966 = vmatpush3.bf16.msra.mxu0 %v1250_v17  ;;  %988 = vmatprep.subr.bf16.mxu1 %v1234_v14 }
  0x29   : > { %967 = vmatprep.subr.bf16.mxu0 %v1254_v18 }
  0x2b   : > { %989 = vmatpush3.bf16.msra.mxu1 %v1240_v15 }
  0x2c   : > { %968 = vmatpush3.bf16.msra.mxu0 %v1260_v19  ;;  %990 = vmatprep.subr.bf16.mxu1 %v1244_v16 }
  0x2d   : > { %969 = vmatprep.subr.bf16.mxu0 %v1264_v20 }
  0x2f   : > { %991 = vmatpush3.bf16.msra.mxu1 %v1250_v17 }
  0x30   : > { %970 = vmatpush3.bf16.msra.mxu0 %v1270_v21  ;;  %992 = vmatprep.subr.bf16.mxu1 %v1254_v18 }
  0x31   : > { %1063 = vmatprep.subr.bf16.mxu0 %v1144_v0 }
  0x33   : > { %345 = vmatmul.mubr.bf16.vlgmr.msra.gmra.mrb[0].mxu0 %v1117_v22  ;;  %993 = vmatpush3.bf16.msra.mxu1 %v1260_v19 }
  0x34   : > { %1064 = vmatpush3.bf16.msra.mxu0 %v1187_v3  ;;  %994 = vmatprep.subr.bf16.mxu1 %v1264_v20 }
  0x35   : > { %1065 = vmatprep.subr.bf16.mxu0 %v1144_v0  ;;  %1067 = vmatprep.mubr.msk.bf16.mxu0 %vm1145_vm0, %v1144_v0 }
  0x37   : > { %995 = vmatpush3.bf16.msra.mxu1 %v1270_v21 }
  0x38   : > { %1066 = vmatpush3.bf16.msra.mxu0 %v1200_v6  ;;  %1071 = vmatprep.subr.bf16.mxu1 %v1144_v0 }
  0x39   : > { %1005 = vmatprep.subr.bf16.mxu0 %v1184_v2 }
  0x3a   : > { %450 = vmatmul.mubr.bf16.vlgmr.msra.gmra.mrb[4].mxu1 %v1120_v23 }
  0x3b   : > { %1068 = vmatmul.mubr.msk.bf16.vlgmr.msra.gmra.mrb[4].mxu0 %vm308_vm1, %v1123_v24  ;;  %1072 = vmatpush3.bf16.msra.mxu1 %v1187_v3 }
  0x3c   : > { %1006 = vmatpush3.bf16.msra.mxu0 %v1191_v4  ;;  %1073 = vmatprep.subr.bf16.mxu1 %v1144_v0 }
  0x3d   : > { %1007 = vmatprep.subr.bf16.mxu0 %v1195_v5  ;;  %1075 = vmatprep.mubr.msk.bf16.mxu1 %vm1145_vm0, %v1144_v0 }
  0x3e   : > { %554 = vmatprep.mubr.bf16.mxu0 %v1127_v25 }
  0x3f   : > { %1074 = vmatpush3.bf16.msra.mxu1 %v1200_v6 }
  0x40   : > { %1008 = vmatpush3.bf16.msra.mxu0 %v1207_v8  ;;  %1030 = vmatprep.subr.bf16.mxu1 %v1184_v2 }
  0x41   : > { %1009 = vmatprep.subr.bf16.mxu0 %v1210_v9 }
  0x42   : > { %1076 = vmatmul.mubr.msk.bf16.vlgmr.msra.gmra.mrb[8].mxu1 %vm308_vm1, %v1124_v26 }
  0x43   : > { %1031 = vmatpush3.bf16.msra.mxu1 %v1191_v4  ;;  %659 = vmatprep.mubr.bf16.mxu1 %v1130_v27 }
  0x44   : > { %1010 = vmatpush3.bf16.msra.mxu0 %v1219_v11  ;;  %1032 = vmatprep.subr.bf16.mxu1 %v1195_v5 }
  0x45   : > { %1011 = vmatprep.subr.bf16.mxu0 %v1223_v12 }
  0x47   : > { %1033 = vmatpush3.bf16.msra.mxu1 %v1207_v8 }
  0x48   : > { %1012 = vmatpush3.bf16.msra.mxu0 %v1230_v13  ;;  %1034 = vmatprep.subr.bf16.mxu1 %v1210_v9 }
  0x49   : > { %1013 = vmatprep.subr.bf16.mxu0 %v1234_v14 }
  0x4b   : > { %1035 = vmatpush3.bf16.msra.mxu1 %v1219_v11 }
  0x4c   : > { %1014 = vmatpush3.bf16.msra.mxu0 %v1240_v15  ;;  %1036 = vmatprep.subr.bf16.mxu1 %v1223_v12 }
  0x4d   : > { %1015 = vmatprep.subr.bf16.mxu0 %v1244_v16 }
  0x4f   : > { %1037 = vmatpush3.bf16.msra.mxu1 %v1230_v13 }
  0x50   : > { %1016 = vmatpush3.bf16.msra.mxu0 %v1250_v17  ;;  %1038 = vmatprep.subr.bf16.mxu1 %v1234_v14 }
  0x51   : > { %1017 = vmatprep.subr.bf16.mxu0 %v1254_v18 }
  0x53   : > { %1039 = vmatpush3.bf16.msra.mxu1 %v1240_v15 }
  0x54   : > { %1018 = vmatpush3.bf16.msra.mxu0 %v1260_v19  ;;  %1040 = vmatprep.subr.bf16.mxu1 %v1244_v16 }
  0x55   : > { %1019 = vmatprep.subr.bf16.mxu0 %v1264_v20 }
  0x57   : > { %1041 = vmatpush3.bf16.msra.mxu1 %v1250_v17 }
  0x58   : > { %1020 = vmatpush3.bf16.msra.mxu0 %v1270_v21  ;;  %1042 = vmatprep.subr.bf16.mxu1 %v1254_v18 }
  0x59   : > { %1079 = vmatprep.subr.bf16.mxu0 %v1144_v0 }
  0x5b   : > { %555 = vmatmul.mubr.bf16.vlgmr.msra.gmra.mrb[8].mxu0 %v1125_v28  ;;  %1043 = vmatpush3.bf16.msra.mxu1 %v1260_v19 }
  0x5c   : > { %1080 = vmatpush3.bf16.msra.mxu0 %v1187_v3  ;;  %1044 = vmatprep.subr.bf16.mxu1 %v1264_v20 }
  0x5d   : > { %1081 = vmatprep.subr.bf16.mxu0 %v1144_v0  ;;  %1083 = vmatprep.mubr.msk.bf16.mxu0 %vm1145_vm0, %v1144_v0 }
  0x5f   : > { %1045 = vmatpush3.bf16.msra.mxu1 %v1270_v21 }
  0x60   : > { %1082 = vmatpush3.bf16.msra.mxu0 %v1200_v6 }
  0x62   : > { %660 = vmatmul.mubr.bf16.vlgmr.msra.gmra.mrb[12].mxu1 %v1128_v29 }
  0x63   : > { %1084 = vmatmul.mubr.msk.bf16.vlgmr.msra.gmra.mrb[12].mxu0 %vm308_vm1, %v1131_v30 }
  0xed   : > { %v387_v31 = vpop.f32.mrb[0].mxu1 }
  0xee   : > { %v1061_v32 = vpop.f32.mrb[1].mxu1 }
  0xef   : > { %v390_v33 = vpop.f32.mrb[2].mxu1 }
  0xf0   : > { %v1062_v34 = vpop.f32.mrb[3].mxu1 }
 0x106   : > { %v971_v35 = vpop.f32.mrb[0].mxu0 }
 0x107   : > { %v972_v36 = vpop.f32.mrb[1].mxu0 }
 0x108   : > { %v973_v37 = vadd.f32 %v972_v36, %v971_v35  ;;  %v974_v38 = vpop.f32.mrb[2].mxu0 }
 0x109   : > { %v975_v39 = vpop.f32.mrb[3].mxu0 }
 0x10a   : > { %v976_v40 = vadd.f32 %v975_v39, %v974_v38  ;;  %v1359_v41 = vadd.f32 %v973_v37, %v387_v31 }
 0x10c   : > { %v710_v42 = vsel %vm709_vm2, %v1359_v41, 0.0  ;;  %v1363_v43 = vadd.f32 %v976_v40, %v390_v33 }
 0x10d   : > { %v996_v44 = vpop.f32.mrb[4].mxu1  ;;  %711 = vadd.xlane.f32.xlu0 %v710_v42 }
 0x10e   : > { %v997_v45 = vpop.f32.mrb[5].mxu1  ;;  %v492_v46 = vpop.f32.mrb[4].mxu0  ;;  %v713_v52 = vsel %vm709_vm2, %v1363_v43, 0.0 }
 0x10f   : > { %v998_v47 = vadd.f32 %v997_v45, %v996_v44  ;;  %v999_v48 = vpop.f32.mrb[6].mxu1  ;;  %v1069_v49 = vpop.f32.mrb[5].mxu0 }
 0x110   : > { %v1000_v50 = vpop.f32.mrb[7].mxu1  ;;  %v495_v51 = vpop.f32.mrb[6].mxu0 }
 0x111   : > { %v493_v53 = vadd.f32 %v998_v47, %v492_v46  ;;  %v1001_v54 = vadd.f32 %v1000_v50, %v999_v48  ;;  %v1070_v55 = vpop.f32.mrb[7].mxu0  ;;  %714 = vadd.xlane.f32.xlu0 %v713_v52 }
 0x113   : > { %v496_v56 = vadd.f32 %v1001_v54, %v495_v51  ;;  %v716_v57 = vsel %vm709_vm2, %v493_v53, 0.0 }
 0x114   : > { %717 = vadd.xlane.f32.xlu1 %v716_v57 }
 0x115   : > { %v597_v58 = vpop.f32.mrb[8].mxu1  ;;  %v719_v61 = vsel %vm709_vm2, %v496_v56, 0.0 }
 0x116   : > { %v1077_v59 = vpop.f32.mrb[9].mxu1 }
 0x117   : > { %v600_v60 = vpop.f32.mrb[10].mxu1 }
 0x118   : > { %v1078_v62 = vpop.f32.mrb[11].mxu1  ;;  %720 = vadd.xlane.f32.xlu1 %v719_v61 }
 0x12e   : > { %v1021_v63 = vpop.f32.mrb[8].mxu0 }
 0x12f   : > { %v1022_v0 = vpop.f32.mrb[9].mxu0 }
 0x130   : > { %v1023_v1 = vadd.f32 %v1022_v0, %v1021_v63  ;;  %v1024_v2 = vpop.f32.mrb[10].mxu0 }
 0x131   : > { %v1025_v3 = vpop.f32.mrb[11].mxu0 }
 0x132   : > { %v1026_v4 = vadd.f32 %v1025_v3, %v1024_v2  ;;  %v598_v5 = vadd.f32 %v1023_v1, %v597_v58 }
 0x134   : > { %v724_v6 = vsel %vm709_vm2, %v598_v5, 0.0  ;;  %v601_v7 = vadd.f32 %v1026_v4, %v600_v60 }
 0x135   : > { %v1046_v8 = vpop.f32.mrb[12].mxu1  ;;  %725 = vadd.xlane.f32.xlu0 %v724_v6 }
 0x136   : > { %v1047_v9 = vpop.f32.mrb[13].mxu1  ;;  %v702_v10 = vpop.f32.mrb[12].mxu0  ;;  %v727_v11 = vsel %vm709_vm2, %v601_v7, 0.0 }
 0x137   : > { %v1048_v12 = vadd.f32 %v1047_v9, %v1046_v8  ;;  %v1049_v13 = vpop.f32.mrb[14].mxu1  ;;  %v1085_v14 = vpop.f32.mrb[13].mxu0  ;;  %728 = vadd.xlane.f32.xlu1 %v727_v11 }
 0x138   : > { %v1050_v15 = vpop.f32.mrb[15].mxu1  ;;  %v705_v16 = vpop.f32.mrb[14].mxu0 }
 0x139   : > { %v703_v17 = vadd.f32 %v1048_v12, %v702_v10  ;;  %v1051_v18 = vadd.f32 %v1050_v15, %v1049_v13  ;;  %v1086_v19 = vpop.f32.mrb[15].mxu0 }
 0x13b   : > { %v706_v20 = vadd.f32 %v1051_v18, %v705_v16  ;;  %v732_v21 = vsel %vm709_vm2, %v703_v17, 0.0 }
 0x13c   : > { %733 = vadd.xlane.f32.xlu0 %v732_v21 }
 0x13d   : > { %v735_v22 = vsel %vm709_vm2, %v706_v20, 0.0 }
 0x13e   : > { %736 = vadd.xlane.f32.xlu1 %v735_v22 }
 0x19a   : > { %v712_v23 = vpop.xlane.xlu0 %711 }
 0x19e   : > { %v715_v25 = vpop.xlane.xlu0 %714 }
 0x1a1   : > { %v718_v24 = vpop.xlane.xlu1 %717 }
 0x1a2   : > { %v722_v28 = vadd.f32 %v718_v24, %v712_v23 }
 0x1a5   : > { %v721_v26 = vpop.xlane.xlu1 %720 }
 0x1a6   : > { %v723_v30 = vadd.f32 %v721_v26, %v715_v25 }
 0x1c2   : > { %v726_v27 = vpop.xlane.xlu0 %725 }
 0x1c3   : > { %v730_v31 = vadd.f32 %v726_v27, %v722_v28 }
 0x1c4   : > { %v729_v29 = vpop.xlane.xlu1 %728 }
 0x1c5   : > { %v731_v33 = vadd.f32 %v729_v29, %v723_v30 }
 0x1c9   : > { %v734_v32 = vpop.xlane.xlu0 %733 }
 0x1ca   : > { %v738_v34 = vadd.f32 %v734_v32, %v730_v31 }
 0x1cb   : > { %v737_v35 = vpop.xlane.xlu1 %736 }
 0x1cc   : > { %v740_v36 = vmul.f32 0.0625, %v738_v34  ;;  %v739_v37 = vadd.f32 %v737_v35, %v731_v33 }
 0x1ce   : > { %v741_v38 = vmul.f32 0.0625, %v739_v37  ;;  %v742_v39 = vsub.f32 %v1359_v41, %v740_v36  ;;  %v752_v40 = vsub.f32 %v493_v53, %v740_v36  ;;  %v764_v49 = vsub.f32 %v598_v5, %v740_v36 }
 0x1cf   : > { %v776_v53 = vsub.f32 %v703_v17, %v740_v36 }
 0x1d0   : > { %v744_v42 = vmul.f32 %v742_v39, %v742_v39  ;;  %v1375_v44 = vsub.f32 %v1363_v43, %v741_v38  ;;  %v1377_v45 = vsub.f32 %v496_v56, %v741_v38  ;;  %v754_v48 = vmul.f32 %v752_v40, %v752_v40 }
 0x1d1   : > { %v1385_v51 = vsub.f32 %v601_v7, %v741_v38  ;;  %v766_v52 = vmul.f32 %v764_v49, %v764_v49  ;;  %v777_v56 = vsub.f32 %v706_v20, %v741_v38  ;;  %v778_v58 = vmul.f32 %v776_v53, %v776_v53 }
 0x1d2   : > { %v746_v46 = vsel %vm709_vm2, %v744_v42, 0.0  ;;  %v745_v47 = vmul.f32 %v1375_v44, %v1375_v44  ;;  %v755_v41 = vmul.f32 %v1377_v45, %v1377_v45  ;;  %v756_v43 = vsel %vm709_vm2, %v754_v48, 0.0 }
 0x1d3   : > { %747 = vadd.xlane.f32.xlu0 %v746_v46  ;;  %v767_v55 = vmul.f32 %v1385_v51, %v1385_v51  ;;  %v768_v57 = vsel %vm709_vm2, %v766_v52, 0.0  ;;  %v779_v60 = vmul.f32 %v777_v56, %v777_v56  ;;  %v780_v61 = vsel %vm709_vm2, %v778_v58, 0.0 }
 0x1d4   : > { %v749_v50 = vsel %vm709_vm2, %v745_v47, 0.0  ;;  %v759_v54 = vsel %vm709_vm2, %v755_v41, 0.0 }
 0x1d5   : > { %750 = vadd.xlane.f32.xlu1 %v749_v50  ;;  %v771_v59 = vsel %vm709_vm2, %v767_v55, 0.0  ;;  %v783_v62 = vsel %vm709_vm2, %v779_v60, 0.0 }
 0x1d7   : > { %757 = vadd.xlane.f32.xlu0 %v756_v43 }
 0x1d9   : > { %760 = vadd.xlane.f32.xlu1 %v759_v54 }
 0x1db   : > { %769 = vadd.xlane.f32.xlu0 %v768_v57 }
 0x1dd   : > { %772 = vadd.xlane.f32.xlu1 %v771_v59 }
 0x1df   : > { %781 = vadd.xlane.f32.xlu0 %v780_v61 }
 0x1e1   : > { %784 = vadd.xlane.f32.xlu1 %v783_v62 }
 0x260   : > { %v748_v63 = vpop.xlane.xlu0 %747 }
 0x262   : > { %v751_v0 = vpop.xlane.xlu1 %750 }
 0x264   : > { %v758_v1 = vpop.xlane.xlu0 %757 }
 0x265   : > { %v762_v4 = vadd.f32 %v758_v1, %v748_v63 }
 0x266   : > { %v761_v2 = vpop.xlane.xlu1 %760 }
 0x267   : > { %v763_v6 = vadd.f32 %v761_v2, %v751_v0 }
 0x268   : > { %v770_v3 = vpop.xlane.xlu0 %769 }
 0x269   : > { %v774_v7 = vadd.f32 %v770_v3, %v762_v4 }
 0x26a   : > { %v773_v5 = vpop.xlane.xlu1 %772 }
 0x26b   : > { %v775_v9 = vadd.f32 %v773_v5, %v763_v6 }
 0x26c   : > { %v782_v8 = vpop.xlane.xlu0 %781 }
 0x26d   : > { %v786_v10 = vadd.f32 %v782_v8, %v774_v7 }
 0x26e   : > { %v785_v11 = vpop.xlane.xlu1 %784 }
 0x26f   : > { %v788_v12 = vmul.f32 0.0625, %v786_v10  ;;  %v787_v13 = vadd.f32 %v785_v11, %v775_v9 }
 0x271   : > { %v790_v14 = vadd.f32 1e-05, %v788_v12  ;;  %v789_v15 = vmul.f32 0.0625, %v787_v13 }
 0x273   : > { %1132 = vrsqrt.f32 %v790_v14  ;;  %v791_v16 = vadd.f32 1e-05, %v789_v15 }
 0x275   : > { %1134 = vrsqrt.f32 %v791_v16 }
 0x27d   : > { %v1133_v17 = vpop.eup %1132 }
 0x27e   : > { %v794_v18 = vmul.f32 %v1133_v17, %v742_v39  ;;  %v796_v19 = vmul.f32 %v1133_v17, %v752_v40  ;;  %v798_v20 = vmul.f32 %v1133_v17, %v764_v49  ;;  %v800_v21 = vmul.f32 %v1133_v17, %v776_v53 }
 0x27f   : > { %v1135_v22 = vpop.eup %1134 }
 0x280   : > { %vm802_vm3 = vcmp.ge.f32.partialorder %v794_v18, 0.0  ;;  %v804_v23 = vmul.f32 0.2, %v794_v18  ;;  %vm808_vm4 = vcmp.ge.f32.partialorder %v796_v19, 0.0  ;;  %v810_v24 = vmul.f32 0.2, %v796_v19 }
 0x281   : > { %vm814_vm5 = vcmp.ge.f32.partialorder %v798_v20, 0.0  ;;  %v816_v25 = vmul.f32 0.2, %v798_v20  ;;  %vm820_vm6 = vcmp.ge.f32.partialorder %v800_v21, 0.0  ;;  %v822_v26 = vmul.f32 0.2, %v800_v21 }
 0x282   : > { %v806_v27 = vsel %vm802_vm3, %v794_v18, %v804_v23  ;;  %v812_v28 = vsel %vm808_vm4, %v796_v19, %v810_v24  ;;  %v795_v29 = vmul.f32 %v1135_v22, %v1375_v44  ;;  %v797_v30 = vmul.f32 %v1135_v22, %v1377_v45 }
 0x283   : > { %v818_v31 = vsel %vm814_vm5, %v798_v20, %v816_v25  ;;  %v824_v32 = vsel %vm820_vm6, %v800_v21, %v822_v26  ;;  %826 = vst.msk [vmem:[%s1399_s16] sm:$0xff] %vm709_vm2, %v806_v27  ;;  %946 = vst.msk [vmem:[%s1399_s16 + $0x10] sm:$0xff] %vm709_vm2, %v812_v28  ;;  %v799_v33 = vmul.f32 %v1135_v22, %v1385_v51 }
 0x284   : > { %v801_v34 = vmul.f32 %v1135_v22, %v777_v56  ;;  %948 = vst.msk [vmem:[%s1399_s16 + $0x20] sm:$0xff] %vm709_vm2, %v818_v31  ;;  %950 = vst.msk [vmem:[%s1399_s16 + $0x30] sm:$0xff] %vm709_vm2, %v824_v32  ;;  %vm803_vm7 = vcmp.ge.f32.partialorder %v795_v29, 0.0  ;;  %v805_v35 = vmul.f32 0.2, %v795_v29  ;;  %vm809_vm8 = vcmp.ge.f32.partialorder %v797_v30, 0.0 }
 0x285   : > { %v811_v36 = vmul.f32 0.2, %v797_v30  ;;  %vm815_vm9 = vcmp.ge.f32.partialorder %v799_v33, 0.0  ;;  %v817_v37 = vmul.f32 0.2, %v799_v33 }
 0x286   : > { %vm821_vm10 = vcmp.ge.f32.partialorder %v801_v34, 0.0  ;;  %v823_v38 = vmul.f32 0.2, %v801_v34  ;;  %v807_v39 = vsel %vm803_vm7, %v795_v29, %v805_v35 }
 0x287   : > { %v813_v40 = vsel %vm809_vm8, %v797_v30, %v811_v36  ;;  %v819_v42 = vsel %vm815_vm9, %v799_v33, %v817_v37  ;;  %827 = vst.msk [vmem:[%s1399_s16 + $0x8] sm:$0xff] %vm709_vm2, %v807_v39 }
 0x288   : > { %v825_v44 = vsel %vm821_vm10, %v801_v34, %v823_v38  ;;  %947 = vst.msk [vmem:[%s1399_s16 + $0x18] sm:$0xff] %vm709_vm2, %v813_v40  ;;  %949 = vst.msk [vmem:[%s1399_s16 + $0x28] sm:$0xff] %vm709_vm2, %v819_v42 }
 0x289   : > { %951 = vst.msk [vmem:[%s1399_s16 + $0x38] sm:$0xff] %vm709_vm2, %v825_v44 }
 0x28a PF: > { %s12_s9 = sadd.s32 1, %s1142_s9  }
 0x28b   : > { %p9_p4 = scmp.ge.s32.totalorder %s12_s9, 4  }
 0x28d   :  { %11 = sbr.rel (!%p9_p4) target bundleno = 1 (0x1), region = 64 }

// kernel: cycle_generator_forward.18
= control target key start
LH: loop header
LB: loop body
LE: loop exit
PB: predicated region body
PF: predicated region fallthrough
CT: control target
= control target key end

     0   :  { %s632_s9 = smov 0   ;;  %s740_s0 = inlined_call_operand.vmem [shape: bf16[2,144,16], index: 0, kind: input, shape index: {}]   ;;  %s741_s1 = inlined_call_operand.vmem [shape: bf16[4,8,144], index: 1, kind: input, shape index: {}]   ;;  %s742_s2 = inlined_call_operand.vmem [shape: f32[2,4,8,16], index: 2, kind: output, shape index: {}]  }
   0x1 LB: > { %s541_s10 = sadd.s32 4294967295, %s614_s9   ;;  %p545_p0 = scmp.ge.s32.totalorder %s614_s9, 1  ;;  %s614_s9 = sphi %s632_s9, %s12_s9  }
   0x2   : > { %p112_p1 = scmp.lt.s32.totalorder %s614_s9, 3 }
   0x4   : > { %p113_p2 = pnand %p545_p0, %p112_p1 }
   0x5   : > { %p134_p3 = scmp.lt.s32.totalorder (!%p113_p2), %s541_s10, 1  ;;  %v643_v0 = vld [vmem:[%s741_s1] sm:$0xff] (!%p113_p2)  ;;  %vm224_vm0 = vcmask (!%p113_p2), 130048   ;;  %v648_v1 = vld [vmem:[%s741_s1 + $0x8] sm:$0xff] (!%p113_p2)  ;;  %v616_v2 = vmov (!%p113_p2), 0   ;;  %v565_v16 = vld [vmem:[%s741_s1 + $0x10] sm:$0xff] (!%p113_p2) }
   0x6   : > { %116 = sbr.rel (%p113_p2) target bundleno = 629 (0x275), region = 28  ;;  %228 = vmatprep.subr.bf16.mxu0 (!%p113_p2), %v616_v2  ;;  %279 = vmatprep.subr.bf16.mxu1 (!%p113_p2), %v616_v2  ;;  %v550_v3 = vcombine.high (!%p113_p2), %v643_v0, %v643_v0  ;;  %v563_v4 = vcombine.high (!%p113_p2), %v648_v1, %v648_v1  ;;  %v549_v14 = vcombine.low (!%p113_p2), %v643_v0, %v643_v0  ;;  %v569_v17 = vld [vmem:[%s741_s1 + $0x18] sm:$0xff] (!%p113_p2) }
   0x7   : > { %v562_v15 = vcombine.low (!%p113_p2), %v648_v1, %v648_v1  ;;  %v567_v18 = vcombine.high (!%p113_p2), %v565_v16, %v565_v16  ;;  %v571_v19 = vcombine.high (!%p113_p2), %v569_v17, %v569_v17  ;;  %v566_v20 = vcombine.low (!%p113_p2), %v565_v16, %v565_v16 }
   0x8   : > { %560 = vmatprep.mubr.msk.bf16.mxu0 (!%p113_p2), %vm224_vm0, %v550_v3  ;;  %564 = vmatprep.mubr.msk.bf16.mxu1 (!%p113_p2), %vm224_vm0, %v563_v4  ;;  %v570_v21 = vcombine.low (!%p113_p2), %v569_v17, %v569_v17 }
   0xd   : > { %s744_s10 = smov (!%p134_p3, %s541_s10), 1 }
   0xe   : > { %s579_s15 = smul.u32 72, %s744_s10  ;;  %s578_s23 = sshll.u32 %s744_s10, 5 }
   0xf   : > { %s143_s26 = scalar_lea.vmem %s742_s2, %s578_s23 }
  0x10   : > { %s664_s18 = scalar_lea.vmem %s740_s0, %s579_s15 }
  0x11   : > { %v589_v5 = vld [vmem:[%s664_s18] sm:$0xff]   ;;  %v590_v6 = vld [vmem:[%s664_s18 + $0x8] sm:$0xff]   ;;  %v591_v7 = vld [vmem:[%s664_s18 + $0x10] sm:$0xff]  }
  0x12   : > { %229 = vmatpush1.bf16.msra.mxu0 %v589_v5  ;;  %280 = vmatpush1.bf16.msra.mxu1 %v589_v5  ;;  %v592_v8 = vld [vmem:[%s664_s18 + $0x18] sm:$0xff]   ;;  %v593_v9 = vld [vmem:[%s664_s18 + $0x20] sm:$0xff]   ;;  %v594_v10 = vld [vmem:[%s664_s18 + $0x28] sm:$0xff]  }
  0x13   : > { %230 = vmatprep.subr.bf16.mxu0 %v616_v2  ;;  %281 = vmatprep.subr.bf16.mxu1 %v616_v2  ;;  %v595_v11 = vld [vmem:[%s664_s18 + $0x30] sm:$0xff]   ;;  %v596_v12 = vld [vmem:[%s664_s18 + $0x38] sm:$0xff]   ;;  %v597_v13 = vld [vmem:[%s664_s18 + $0x40] sm:$0xff]  }
  0x16   : > { %231 = vmatpush1.bf16.msra.mxu0 %v590_v6  ;;  %282 = vmatpush1.bf16.msra.mxu1 %v590_v6 }
  0x17   : > { %232 = vmatprep.subr.bf16.mxu0 %v616_v2  ;;  %283 = vmatprep.subr.bf16.mxu1 %v616_v2 }
  0x1a   : > { %233 = vmatpush1.bf16.msra.mxu0 %v591_v7  ;;  %284 = vmatpush1.bf16.msra.mxu1 %v591_v7 }
  0x1b   : > { %234 = vmatprep.subr.bf16.mxu0 %v616_v2  ;;  %285 = vmatprep.subr.bf16.mxu1 %v616_v2 }
  0x1e   : > { %235 = vmatpush1.bf16.msra.mxu0 %v592_v8  ;;  %286 = vmatpush1.bf16.msra.mxu1 %v592_v8 }
  0x1f   : > { %236 = vmatprep.subr.bf16.mxu0 %v616_v2  ;;  %287 = vmatprep.subr.bf16.mxu1 %v616_v2 }
  0x22   : > { %237 = vmatpush1.bf16.msra.mxu0 %v593_v9  ;;  %288 = vmatpush1.bf16.msra.mxu1 %v593_v9 }
  0x23   : > { %238 = vmatprep.subr.bf16.mxu0 %v616_v2  ;;  %289 = vmatprep.subr.bf16.mxu1 %v616_v2 }
  0x26   : > { %239 = vmatpush1.bf16.msra.mxu0 %v594_v10  ;;  %290 = vmatpush1.bf16.msra.mxu1 %v594_v10 }
  0x27   : > { %240 = vmatprep.subr.bf16.mxu0 %v616_v2  ;;  %291 = vmatprep.subr.bf16.mxu1 %v616_v2 }
  0x2a   : > { %241 = vmatpush1.bf16.msra.mxu0 %v595_v11  ;;  %292 = vmatpush1.bf16.msra.mxu1 %v595_v11 }
  0x2b   : > { %242 = vmatprep.subr.bf16.mxu0 %v616_v2  ;;  %293 = vmatprep.subr.bf16.mxu1 %v616_v2 }
  0x2e   : > { %243 = vmatpush1.bf16.msra.mxu0 %v596_v12  ;;  %294 = vmatpush1.bf16.msra.mxu1 %v596_v12 }
  0x2f   : > { %244 = vmatprep.subr.bf16.mxu0 %v616_v2  ;;  %295 = vmatprep.subr.bf16.mxu1 %v616_v2 }
  0x32   : > { %245 = vmatpush1.bf16.msra.mxu0 %v597_v13  ;;  %296 = vmatpush1.bf16.msra.mxu1 %v597_v13 }
  0x33   : > { %330 = vmatprep.subr.bf16.mxu0 %v616_v2  ;;  %381 = vmatprep.subr.bf16.mxu1 %v616_v2 }
  0x35   : > { %261 = vmatmul.mubr.bf16.vlgmr.msra.gmra.mrb[0].mxu0 %v549_v14  ;;  %312 = vmatmul.mubr.bf16.vlgmr.msra.gmra.mrb[0].mxu1 %v562_v15 }
  0x36   : > { %331 = vmatpush1.bf16.msra.mxu0 %v589_v5  ;;  %382 = vmatpush1.bf16.msra.mxu1 %v589_v5 }
  0x37   : > { %332 = vmatprep.subr.bf16.mxu0 %v616_v2  ;;  %383 = vmatprep.subr.bf16.mxu1 %v616_v2 }
  0x38   : > { %568 = vmatprep.mubr.msk.bf16.mxu0 %vm224_vm0, %v567_v18  ;;  %572 = vmatprep.mubr.msk.bf16.mxu1 %vm224_vm0, %v571_v19 }
  0x3a   : > { %333 = vmatpush1.bf16.msra.mxu0 %v590_v6  ;;  %384 = vmatpush1.bf16.msra.mxu1 %v590_v6 }
  0x3b   : > { %334 = vmatprep.subr.bf16.mxu0 %v616_v2  ;;  %385 = vmatprep.subr.bf16.mxu1 %v616_v2 }
  0x3e   : > { %335 = vmatpush1.bf16.msra.mxu0 %v591_v7  ;;  %386 = vmatpush1.bf16.msra.mxu1 %v591_v7 }
  0x3f   : > { %336 = vmatprep.subr.bf16.mxu0 %v616_v2  ;;  %387 = vmatprep.subr.bf16.mxu1 %v616_v2 }
  0x42   : > { %337 = vmatpush1.bf16.msra.mxu0 %v592_v8  ;;  %388 = vmatpush1.bf16.msra.mxu1 %v592_v8 }
  0x43   : > { %338 = vmatprep.subr.bf16.mxu0 %v616_v2  ;;  %389 = vmatprep.subr.bf16.mxu1 %v616_v2 }
  0x46   : > { %339 = vmatpush1.bf16.msra.mxu0 %v593_v9  ;;  %390 = vmatpush1.bf16.msra.mxu1 %v593_v9 }
  0x47   : > { %340 = vmatprep.subr.bf16.mxu0 %v616_v2  ;;  %391 = vmatprep.subr.bf16.mxu1 %v616_v2 }
  0x4a   : > { %341 = vmatpush1.bf16.msra.mxu0 %v594_v10  ;;  %392 = vmatpush1.bf16.msra.mxu1 %v594_v10 }
  0x4b   : > { %342 = vmatprep.subr.bf16.mxu0 %v616_v2  ;;  %393 = vmatprep.subr.bf16.mxu1 %v616_v2 }
  0x4e   : > { %343 = vmatpush1.bf16.msra.mxu0 %v595_v11  ;;  %394 = vmatpush1.bf16.msra.mxu1 %v595_v11 }
  0x4f   : > { %344 = vmatprep.subr.bf16.mxu0 %v616_v2  ;;  %395 = vmatprep.subr.bf16.mxu1 %v616_v2 }
  0x52   : > { %345 = vmatpush1.bf16.msra.mxu0 %v596_v12  ;;  %396 = vmatpush1.bf16.msra.mxu1 %v596_v12 }
  0x53   : > { %346 = vmatprep.subr.bf16.mxu0 %v616_v2  ;;  %397 = vmatprep.subr.bf16.mxu1 %v616_v2 }
  0x56   : > { %347 = vmatpush1.bf16.msra.mxu0 %v597_v13  ;;  %398 = vmatpush1.bf16.msra.mxu1 %v597_v13 }
  0x59   : > { %363 = vmatmul.mubr.bf16.vlgmr.msra.gmra.mrb[4].mxu0 %v566_v20  ;;  %414 = vmatmul.mubr.bf16.vlgmr.msra.gmra.mrb[4].mxu1 %v570_v21 }
 0x108   : > { %v262_v22 = vpop.f32.mrb[0].mxu0  ;;  %v313_v23 = vpop.f32.mrb[0].mxu1 }
 0x109   : > { %v264_v24 = vpop.f32.mrb[1].mxu0  ;;  %v421_v25 = vsel %vm224_vm0, %v262_v22, 0.0  ;;  %v315_v26 = vpop.f32.mrb[1].mxu1  ;;  %v424_v31 = vsel %vm224_vm0, %v313_v23, 0.0 }
 0x10a   : > { %422 = vadd.xlane.f32.xlu0 %v421_v25  ;;  %v265_v27 = vpop.f32.mrb[2].mxu0  ;;  %v316_v28 = vpop.f32.mrb[2].mxu1 }
 0x10b   : > { %v266_v29 = vpop.f32.mrb[3].mxu0  ;;  %v317_v30 = vpop.f32.mrb[3].mxu1 }
 0x10e   : > { %425 = vadd.xlane.f32.xlu0 %v424_v31 }
 0x12c   : > { %v364_v32 = vpop.f32.mrb[4].mxu0  ;;  %v415_v33 = vpop.f32.mrb[4].mxu1 }
 0x12d   : > { %v366_v34 = vpop.f32.mrb[5].mxu0  ;;  %v417_v35 = vpop.f32.mrb[5].mxu1  ;;  %v428_v36 = vsel %vm224_vm0, %v364_v32, 0.0  ;;  %v432_v41 = vsel %vm224_vm0, %v415_v33, 0.0 }
 0x12e   : > { %429 = vadd.xlane.f32.xlu1 %v428_v36  ;;  %v367_v37 = vpop.f32.mrb[6].mxu0  ;;  %v418_v38 = vpop.f32.mrb[6].mxu1 }
 0x12f   : > { %v368_v39 = vpop.f32.mrb[7].mxu0  ;;  %v419_v40 = vpop.f32.mrb[7].mxu1 }
 0x132   : > { %433 = vadd.xlane.f32.xlu1 %v432_v41 }
 0x197   : > { %v423_v42 = vpop.xlane.xlu0 %422 }
 0x19b   : > { %v426_v43 = vpop.xlane.xlu0 %425 }
 0x19c   : > { %v427_v45 = vadd.f32 %v426_v43, %v423_v42 }
 0x1bb   : > { %v430_v44 = vpop.xlane.xlu1 %429 }
 0x1bc   : > { %v431_v46 = vadd.f32 %v430_v44, %v427_v45 }
 0x1bf   : > { %v434_v47 = vpop.xlane.xlu1 %433 }
 0x1c0   : > { %v435_v48 = vadd.f32 %v434_v47, %v431_v46 }
 0x1c2   : > { %v436_v49 = vmul.f32 0.015625, %v435_v48 }
 0x1c4   : > { %v442_v50 = vsub.f32 %v313_v23, %v436_v49  ;;  %v437_v51 = vsub.f32 %v262_v22, %v436_v49  ;;  %v454_v52 = vsub.f32 %v415_v33, %v436_v49  ;;  %v448_v53 = vsub.f32 %v364_v32, %v436_v49 }
 0x1c6   : > { %v443_v54 = vmul.f32 %v442_v50, %v442_v50  ;;  %v438_v55 = vmul.f32 %v437_v51, %v437_v51  ;;  %v455_v58 = vmul.f32 %v454_v52, %v454_v52  ;;  %v449_v59 = vmul.f32 %v448_v53, %v448_v53 }
 0x1c8   : > { %v444_v56 = vsel %vm224_vm0, %v443_v54, 0.0  ;;  %v439_v57 = vsel %vm224_vm0, %v438_v55, 0.0  ;;  %v456_v60 = vsel %vm224_vm0, %v455_v58, 0.0  ;;  %v450_v61 = vsel %vm224_vm0, %v449_v59, 0.0 }
 0x1c9   : > { %445 = vadd.xlane.f32.xlu1 %v444_v56  ;;  %440 = vadd.xlane.f32.xlu0 %v439_v57 }
 0x1cd   : > { %457 = vadd.xlane.f32.xlu1 %v456_v60  ;;  %451 = vadd.xlane.f32.xlu0 %v450_v61 }
 0x256   : > { %v446_v62 = vpop.xlane.xlu1 %445  ;;  %v441_v63 = vpop.xlane.xlu0 %440 }
 0x257   : > { %v447_v0 = vadd.f32 %v446_v62, %v441_v63 }
 0x25a   : > { %v452_v1 = vpop.xlane.xlu0 %451  ;;  %v458_v3 = vpop.xlane.xlu1 %457 }
 0x25b   : > { %v453_v2 = vadd.f32 %v452_v1, %v447_v0 }
 0x25d   : > { %v459_v4 = vadd.f32 %v458_v3, %v453_v2 }
 0x25f   : > { %v460_v5 = vmul.f32 0.015625, %v459_v4 }
 0x261   : > { %v461_v6 = vadd.f32 1e-05, %v460_v5 }
 0x263   : > { %606 = vrsqrt.f32 %v461_v6 }
 0x26d   : > { %v607_v7 = vpop.eup %606 }
 0x26e   : > { %v463_v8 = vmul.f32 %v607_v7, %v437_v51  ;;  %v464_v9 = vmul.f32 %v607_v7, %v442_v50  ;;  %v465_v10 = vmul.f32 %v607_v7, %v448_v53  ;;  %v466_v11 = vmul.f32 %v607_v7, %v454_v52 }
 0x270   : > { %vm467_vm1 = vcmp.ge.f32.partialorder %v463_v8, 0.0  ;;  %v468_v12 = vmul.f32 0.2, %v463_v8  ;;  %vm470_vm2 = vcmp.ge.f32.partialorder %v464_v9, 0.0  ;;  %v471_v13 = vmul.f32 0.2, %v464_v9 }
 0x271   : > { %vm473_vm3 = vcmp.ge.f32.partialorder %v465_v10, 0.0  ;;  %v474_v14 = vmul.f32 0.2, %v465_v10  ;;  %vm476_vm4 = vcmp.ge.f32.partialorder %v466_v11, 0.0  ;;  %v477_v15 = vmul.f32 0.2, %v466_v11 }
 0x272   : > { %v469_v16 = vsel %vm467_vm1, %v463_v8, %v468_v12  ;;  %v472_v17 = vsel %vm470_vm2, %v464_v9, %v471_v13 }
 0x273   : > { %v475_v18 = vsel %vm473_vm3, %v465_v10, %v474_v14  ;;  %v478_v19 = vsel %vm476_vm4, %v466_v11, %v477_v15  ;;  %479 = vst.msk [vmem:[%s143_s26] sm:$0xff] %vm224_vm0, %v469_v16  ;;  %573 = vst.msk [vmem:[%s143_s26 + $0x8] sm:$0xff] %vm224_vm0, %v472_v17 }
 0x274   : > { %574 = vst.msk [vmem:[%s143_s26 + $0x10] sm:$0xff] %vm224_vm0, %v475_v18  ;;  %575 = vst.msk [vmem:[%s143_s26 + $0x18] sm:$0xff] %vm224_vm0, %v478_v19 }
 0x275 PF: > { %s12_s9 = sadd.s32 1, %s614_s9  }
 0x276   : > { %p9_p4 = scmp.ge.s32.totalorder %s12_s9, 4  }
 0x278   :  { %11 = sbr.rel (!%p9_p4) target bundleno = 1 (0x1), region = 64 }

// kernel: cycle_generator_forward.19
= control target key start
LH: loop header
LB: loop body
LE: loop exit
PB: predicated region body
PF: predicated region fallthrough
CT: control target
= control target key end

     0   :  { %s635_s9 = smov 0   ;;  %s688_s0 = inlined_call_operand.vmem [shape: bf16[2,72,64], index: 0, kind: input, shape index: {}]   ;;  %s689_s1 = inlined_call_operand.vmem [shape: bf16[4,3,72], index: 1, kind: input, shape index: {}]   ;;  %s690_s2 = inlined_call_operand.vmem [shape: f32[2,4,3,64], index: 2, kind: output, shape index: {}]  }
   0x1 LB: > { %s478_s10 = sadd.s32 4294967295, %s616_s9   ;;  %p482_p0 = scmp.ge.s32.totalorder %s616_s9, 1  ;;  %s616_s9 = sphi %s635_s9, %s12_s9  }
   0x2   : > { %p112_p1 = scmp.lt.s32.totalorder %s616_s9, 3 }
   0x4   : > { %p113_p2 = pnand %p482_p0, %p112_p1 }
   0x5   : > { %p134_p3 = scmp.lt.s32.totalorder (!%p113_p2), %s478_s10, 1  ;;  %v618_v0 = vmov (!%p113_p2), 0.0   ;;  %vm619_vm0 = vmmov (!%p113_p2), 0   ;;  %vm186_vm1 = vcmask (!%p113_p2), 1043456   ;;  %v154_v7 = vld [vmem:[%s689_s1] sm:$0x3] (!%p113_p2) }
   0x6   : > { %116 = sbr.rel (%p113_p2) target bundleno = 607 (0x25f), region = 28  ;;  %528 = vmatprep.subr.bf16.mxu0 (!%p113_p2), %v618_v0  ;;  %542 = vmatprep.subr.bf16.mxu1 (!%p113_p2), %v618_v0  ;;  %vm182_vm2 = vcmask (!%p113_p2), 588800   ;;  %v492_v8 = vld [vmem:[%s689_s1 + $0x2] sm:$0x3] (!%p113_p2)  ;;  %v494_v9 = vld [vmem:[%s689_s1 + $0x4] sm:$0x3] (!%p113_p2) }
   0x7   : > { %538 = vmatprep.mubr.msk.bf16.mxu0 (!%p113_p2), %vm619_vm0, %v618_v0  ;;  %552 = vmatprep.mubr.msk.bf16.mxu1 (!%p113_p2), %vm619_vm0, %v618_v0  ;;  %v496_v10 = vld [vmem:[%s689_s1 + $0x6] sm:$0x3] (!%p113_p2)  ;;  %vm365_vm3 = vcmask (!%p113_p2), 518144  }
   0xd   : > { %s692_s10 = smov (!%p134_p3, %s478_s10), 1 }
   0xe   : > { %s584_s11 = smul.u32 36, %s692_s10  ;;  %s503_s23 = sshll.u32 %s692_s10, 4 }
   0xf   : > { %s143_s26 = scalar_lea.vmem %s690_s2, %s503_s23 }
  0x10   : > { %s138_s14 = scalar_lea.vmem %s688_s0, %s584_s11 }
  0x11   : > { %v595_v1 = vld [vmem:[%s138_s14] sm:$0xff]   ;;  %v596_v2 = vld [vmem:[%s138_s14 + $0x8] sm:$0xff]   ;;  %v597_v3 = vld [vmem:[%s138_s14 + $0x10] sm:$0xff]  }
  0x12   : > { %529 = vmatpush3.bf16.msra.mxu0 %v595_v1  ;;  %543 = vmatpush3.bf16.msra.mxu1 %v595_v1  ;;  %v598_v4 = vld [vmem:[%s138_s14 + $0x18] sm:$0xff]   ;;  %v599_v5 = vld [vmem:[%s138_s14 + $0x20] ss:$0 sps:$4 sm:$0xff]  }
  0x13   : > { %530 = vmatprep.subr.bf16.mxu0 %v618_v0  ;;  %544 = vmatprep.subr.bf16.mxu1 %v618_v0  ;;  %v188_v6 = vsel %vm186_vm1, %v599_v5, 0 }
  0x16   : > { %531 = vmatpush3.bf16.msra.mxu0 %v596_v2  ;;  %545 = vmatpush3.bf16.msra.mxu1 %v596_v2 }
  0x17   : > { %532 = vmatprep.subr.bf16.mxu0 %v618_v0  ;;  %546 = vmatprep.subr.bf16.mxu1 %v618_v0 }
  0x1a   : > { %533 = vmatpush3.bf16.msra.mxu0 %v597_v3  ;;  %547 = vmatpush3.bf16.msra.mxu1 %v597_v3 }
  0x1b   : > { %534 = vmatprep.subr.bf16.mxu0 %v618_v0  ;;  %548 = vmatprep.subr.bf16.mxu1 %v618_v0 }
  0x1e   : > { %535 = vmatpush3.bf16.msra.mxu0 %v598_v4  ;;  %549 = vmatpush3.bf16.msra.mxu1 %v598_v4 }
  0x1f   : > { %536 = vmatprep.subr.bf16.mxu0 %v618_v0  ;;  %550 = vmatprep.subr.bf16.mxu1 %v618_v0 }
  0x22   : > { %537 = vmatpush3.bf16.msra.mxu0 %v188_v6  ;;  %551 = vmatpush3.bf16.msra.mxu1 %v188_v6 }
  0x23   : > { %556 = vmatprep.subr.bf16.mxu0 %v618_v0  ;;  %570 = vmatprep.subr.bf16.mxu1 %v618_v0 }
  0x25   : > { %539 = vmatmul.mubr.msk.bf16.vlgmr.msra.gmra.mrb[0].mxu0 %vm182_vm2, %v154_v7  ;;  %553 = vmatmul.mubr.msk.bf16.vlgmr.msra.gmra.mrb[0].mxu1 %vm182_vm2, %v492_v8 }
  0x26   : > { %557 = vmatpush3.bf16.msra.mxu0 %v595_v1  ;;  %571 = vmatpush3.bf16.msra.mxu1 %v595_v1 }
  0x27   : > { %558 = vmatprep.subr.bf16.mxu0 %v618_v0  ;;  %572 = vmatprep.subr.bf16.mxu1 %v618_v0 }
  0x28   : > { %566 = vmatprep.mubr.msk.bf16.mxu0 %vm619_vm0, %v618_v0  ;;  %580 = vmatprep.mubr.msk.bf16.mxu1 %vm619_vm0, %v618_v0 }
  0x2a   : > { %559 = vmatpush3.bf16.msra.mxu0 %v596_v2  ;;  %573 = vmatpush3.bf16.msra.mxu1 %v596_v2 }
  0x2b   : > { %560 = vmatprep.subr.bf16.mxu0 %v618_v0  ;;  %574 = vmatprep.subr.bf16.mxu1 %v618_v0 }
  0x2e   : > { %561 = vmatpush3.bf16.msra.mxu0 %v597_v3  ;;  %575 = vmatpush3.bf16.msra.mxu1 %v597_v3 }
  0x2f   : > { %562 = vmatprep.subr.bf16.mxu0 %v618_v0  ;;  %576 = vmatprep.subr.bf16.mxu1 %v618_v0 }
  0x32   : > { %563 = vmatpush3.bf16.msra.mxu0 %v598_v4  ;;  %577 = vmatpush3.bf16.msra.mxu1 %v598_v4 }
  0x33   : > { %564 = vmatprep.subr.bf16.mxu0 %v618_v0  ;;  %578 = vmatprep.subr.bf16.mxu1 %v618_v0 }
  0x36   : > { %565 = vmatpush3.bf16.msra.mxu0 %v188_v6  ;;  %579 = vmatpush3.bf16.msra.mxu1 %v188_v6 }
  0x39   : > { %567 = vmatmul.mubr.msk.bf16.vlgmr.msra.gmra.mrb[4].mxu0 %vm182_vm2, %v494_v9  ;;  %581 = vmatmul.mubr.msk.bf16.vlgmr.msra.gmra.mrb[4].mxu1 %vm182_vm2, %v496_v10 }
  0xf8   : > { %v224_v11 = vpop.f32.mrb[0].mxu0  ;;  %v269_v12 = vpop.f32.mrb[0].mxu1 }
  0xf9   : > { %v540_v13 = vpop.f32.mrb[1].mxu0  ;;  %v366_v14 = vsel %vm365_vm3, %v224_v11, 0.0  ;;  %v554_v15 = vpop.f32.mrb[1].mxu1  ;;  %v369_v20 = vsel %vm365_vm3, %v269_v12, 0.0 }
  0xfa   : > { %367 = vadd.xlane.f32.xlu0 %v366_v14  ;;  %v227_v16 = vpop.f32.mrb[2].mxu0  ;;  %v272_v17 = vpop.f32.mrb[2].mxu1 }
  0xfb   : > { %v541_v18 = vpop.f32.mrb[3].mxu0  ;;  %v555_v19 = vpop.f32.mrb[3].mxu1 }
  0xfe   : > { %370 = vadd.xlane.f32.xlu0 %v369_v20 }
 0x10c   : > { %v314_v21 = vpop.f32.mrb[4].mxu0  ;;  %v359_v22 = vpop.f32.mrb[4].mxu1 }
 0x10d   : > { %v568_v23 = vpop.f32.mrb[5].mxu0  ;;  %v582_v24 = vpop.f32.mrb[5].mxu1  ;;  %v373_v25 = vsel %vm365_vm3, %v314_v21, 0.0  ;;  %v377_v30 = vsel %vm365_vm3, %v359_v22, 0.0 }
 0x10e   : > { %374 = vadd.xlane.f32.xlu1 %v373_v25  ;;  %v317_v26 = vpop.f32.mrb[6].mxu0  ;;  %v362_v27 = vpop.f32.mrb[6].mxu1 }
 0x10f   : > { %v569_v28 = vpop.f32.mrb[7].mxu0  ;;  %v583_v29 = vpop.f32.mrb[7].mxu1 }
 0x112   : > { %378 = vadd.xlane.f32.xlu1 %v377_v30 }
 0x187   : > { %v368_v31 = vpop.xlane.xlu0 %367 }
 0x18b   : > { %v371_v32 = vpop.xlane.xlu0 %370 }
 0x18c   : > { %v372_v34 = vadd.f32 %v371_v32, %v368_v31 }
 0x19b   : > { %v375_v33 = vpop.xlane.xlu1 %374 }
 0x19c   : > { %v376_v35 = vadd.f32 %v375_v33, %v372_v34 }
 0x19f   : > { %v379_v36 = vpop.xlane.xlu1 %378 }
 0x1a0   : > { %v380_v37 = vadd.f32 %v379_v36, %v376_v35 }
 0x1a2   : > { %v381_v38 = vmul.f32 0.00390625, %v380_v37 }
 0x1a4   : > { %v387_v39 = vsub.f32 %v269_v12, %v381_v38  ;;  %v382_v40 = vsub.f32 %v224_v11, %v381_v38  ;;  %v399_v41 = vsub.f32 %v359_v22, %v381_v38  ;;  %v393_v42 = vsub.f32 %v314_v21, %v381_v38 }
 0x1a6   : > { %v388_v43 = vmul.f32 %v387_v39, %v387_v39  ;;  %v383_v44 = vmul.f32 %v382_v40, %v382_v40  ;;  %v400_v47 = vmul.f32 %v399_v41, %v399_v41  ;;  %v394_v48 = vmul.f32 %v393_v42, %v393_v42 }
 0x1a8   : > { %v389_v45 = vsel %vm365_vm3, %v388_v43, 0.0  ;;  %v384_v46 = vsel %vm365_vm3, %v383_v44, 0.0  ;;  %v401_v49 = vsel %vm365_vm3, %v400_v47, 0.0  ;;  %v395_v50 = vsel %vm365_vm3, %v394_v48, 0.0 }
 0x1a9   : > { %390 = vadd.xlane.f32.xlu1 %v389_v45  ;;  %385 = vadd.xlane.f32.xlu0 %v384_v46 }
 0x1ad   : > { %402 = vadd.xlane.f32.xlu1 %v401_v49  ;;  %396 = vadd.xlane.f32.xlu0 %v395_v50 }
 0x236   : > { %v391_v51 = vpop.xlane.xlu1 %390  ;;  %v386_v52 = vpop.xlane.xlu0 %385 }
 0x237   : > { %v392_v53 = vadd.f32 %v391_v51, %v386_v52 }
 0x23a   : > { %v397_v54 = vpop.xlane.xlu0 %396  ;;  %v403_v56 = vpop.xlane.xlu1 %402 }
 0x23b   : > { %v398_v55 = vadd.f32 %v397_v54, %v392_v53 }
 0x23d   : > { %v404_v57 = vadd.f32 %v403_v56, %v398_v55 }
 0x23f   : > { %v405_v58 = vmul.f32 0.00390625, %v404_v57 }
 0x241   : > { %v406_v59 = vadd.f32 1e-05, %v405_v58 }
 0x243   : > { %600 = vrsqrt.f32 %v406_v59 }
 0x24d   : > { %v601_v60 = vpop.eup %600 }
 0x24e   : > { %v408_v61 = vmul.f32 %v601_v60, %v382_v40  ;;  %v409_v62 = vmul.f32 %v601_v60, %v387_v39  ;;  %v410_v63 = vmul.f32 %v601_v60, %v393_v42  ;;  %v411_v0 = vmul.f32 %v601_v60, %v399_v41 }
 0x250   : > { %602 = vtanh.f32 %v408_v61 }
 0x251   : > { %604 = vtanh.f32 %v409_v62 }
 0x252   : > { %606 = vtanh.f32 %v410_v63 }
 0x253   : > { %608 = vtanh.f32 %v411_v0 }
 0x25a   : > { %v603_v1 = vpop.eup %602 }
 0x25b   : > { %v605_v2 = vpop.eup %604  ;;  %416 = vst.msk [vmem:[%s143_s26] sm:$0x7] %vm365_vm3, %v603_v1 }
 0x25c   : > { %v607_v3 = vpop.eup %606  ;;  %498 = vst.msk [vmem:[%s143_s26 + $0x4] sm:$0x7] %vm365_vm3, %v605_v2 }
 0x25d   : > { %v609_v4 = vpop.eup %608  ;;  %499 = vst.msk [vmem:[%s143_s26 + $0x8] sm:$0x7] %vm365_vm3, %v607_v3 }
 0x25e   : > { %500 = vst.msk [vmem:[%s143_s26 + $0xc] sm:$0x7] %vm365_vm3, %v609_v4 }
 0x25f PF: > { %s12_s9 = sadd.s32 1, %s616_s9  }
 0x260   : > { %p9_p4 = scmp.ge.s32.totalorder %s12_s9, 4  }
 0x262   :  { %11 = sbr.rel (!%p9_p4) target bundleno = 1 (0x1), region = 64 }

</bundles_post_ra>
